<compile_context>
chip_gen: v7x
topology: tpu7x:2x2x1
jax: 0.10.0
libtpu: 0.0.40
codegen_flags: <defaults>
</compile_context>

<pallas_src>
import jax
import jax.numpy as jnp
from jax import lax
from jax.experimental import pallas as pl
from jax.experimental.pallas import tpu as pltpu

NTH = 4                      # module hyper-parameter
D_IN = (4 + NTH) * 32        # 256
HID = 512
D_OUT = 32
LN_EPS = 1e-5


def _round_up(n, m):
    return ((n + m - 1) // m) * m


def _choose_tile_b(B):
    """Batch tile: multiple of 8 sublanes, capped at 1024 rows.

    On v7x the 'parallel' batch axis is what shards work across the two
    TensorCores, so moderately-large batches are split into >= 2 grid steps
    instead of one big tile."""
    tile = min(1024, _round_up(max(B, 8), 8))
    if B >= 256 and _round_up(B, tile) // tile < 2:
        tile = _round_up((B + 1) // 2, 8)
    return tile


def _layer(h, w_ref, vec_ref, row):
    """Linear (bf16 MXU, f32 acc) -> LayerNorm (mean-centered var) -> ReLU.

    Dropout(p=0.2) is identity at inference.  Returns bf16 activations."""
    y = jnp.dot(h, w_ref[...], preferred_element_type=jnp.float32)
    b    = vec_ref[pl.ds(row + 0, 1), :]      # (1, HID) f32
    g    = vec_ref[pl.ds(row + 1, 1), :]
    beta = vec_ref[pl.ds(row + 2, 1), :]
    y = y + b
    mean = jnp.sum(y, axis=-1, keepdims=True) * (1.0 / HID)
    yc = y - mean
    var = jnp.sum(yc * yc, axis=-1, keepdims=True) * (1.0 / HID)
    scale = g * lax.rsqrt(var + LN_EPS)       # gamma folded into rsqrt factor
    y = yc * scale + beta
    return jnp.maximum(y, 0.0).astype(jnp.bfloat16)


def mlp_kernel(x_ref,
               w1_ref, w2_ref, w3_ref, w4_ref, w5_ref,
               vec_ref, b5_ref,
               out_ref):
    h = x_ref[...].astype(jnp.bfloat16)       # single cast straight to bf16
    h = _layer(h, w1_ref, vec_ref, 0)
    h = _layer(h, w2_ref, vec_ref, 3)
    h = _layer(h, w3_ref, vec_ref, 6)
    h = _layer(h, w4_ref, vec_ref, 9)
    out = jnp.dot(h, w5_ref[...], preferred_element_type=jnp.float32) + b5_ref[...]
    out_ref[...] = out.astype(out_ref.dtype)


def mlp_forward(x, params):
    w1, w2, w3, w4, w5, vec, b5 = params
    B = x.shape[0]

    tile_b = _choose_tile_b(B)
    b_pad = _round_up(B, tile_b)
    if b_pad != B:
        x = jnp.pad(x, ((0, b_pad - B), (0, 0)))
    grid = (b_pad // tile_b,)

    def build(single_buffer_consts):
        const_kwargs = (dict(pipeline_mode=pl.Buffered(1))
                        if single_buffer_consts else {})

        def const_spec(shape):
            # Grid-invariant operand: fetched once, VMEM-resident.
            return pl.BlockSpec(shape, lambda i: (0, 0), **const_kwargs)

        return pl.pallas_call(
            mlp_kernel,
            out_shape=jax.ShapeDtypeStruct((b_pad, D_OUT), jnp.float32),
            grid=grid,
            in_specs=[
                pl.BlockSpec((tile_b, D_IN), lambda i: (i, 0)),  # x: pipelined
                const_spec((D_IN, HID)),
                const_spec((HID, HID)),
                const_spec((HID, HID)),
                const_spec((HID, HID)),
                const_spec((HID, D_OUT)),
                const_spec((12, HID)),        # packed bias/gamma/beta
                const_spec((1, D_OUT)),       # final bias
            ],
            out_specs=pl.BlockSpec((tile_b, D_OUT), lambda i: (i, 0)),
            compiler_params=pltpu.CompilerParams(
                dimension_semantics=("parallel",),
                vmem_limit_bytes=48 * 1024 * 1024,
            ),
        )

    try:
        out = build(True)(x, w1, w2, w3, w4, w5, vec, b5)
    except Exception:
        # Fallback if this JAX build rejects Buffered(1) single-buffering.
        out = build(False)(x, w1, w2, w3, w4, w5, vec, b5)

    return out[:B] if b_pad != B else out


def init_params(key):
    """Deterministic parameter init (PyTorch-Linear-style uniform bounds).

    Weights stored (D_in, D_out) in bf16; bias/gamma/beta packed (12, HID) f32."""
    def linear(key, d_in, d_out):
        k1, k2 = jax.random.split(key)
        bound = 1.0 / jnp.sqrt(d_in)
        w = jax.random.uniform(k1, (d_in, d_out), jnp.float32, -bound, bound)
        b = jax.random.uniform(k2, (d_out,), jnp.float32, -bound, bound)
        return w, b

    keys = jax.random.split(key, 5)
    dims = [(D_IN, HID), (HID, HID), (HID, HID), (HID, HID)]
    ws, vec_rows = [], []
    for k, (di, do) in zip(keys[:4], dims):
        w, b = linear(k, di, do)
        ws.append(w.astype(jnp.bfloat16))
        vec_rows += [b, jnp.ones((do,), jnp.float32), jnp.zeros((do,), jnp.float32)]
    w5, b5 = linear(keys[4], HID, D_OUT)
    vec = jnp.stack(vec_rows, axis=0)                 # (12, HID) f32
    return [ws[0], ws[1], ws[2], ws[3],
            w5.astype(jnp.bfloat16), vec, b5.reshape(1, D_OUT)]


def mlp_reference(x, params):
    """Pure-JAX reference using the same bf16 weight/activation handoff."""
    w1, w2, w3, w4, w5, vec, b5 = params
    h = x.astype(jnp.bfloat16)
    for li, w in enumerate([w1, w2, w3, w4]):
        b, g, beta = vec[3 * li], vec[3 * li + 1], vec[3 * li + 2]
        y = jnp.dot(h, w, preferred_element_type=jnp.float32) + b
        mean = jnp.mean(y, axis=-1, keepdims=True)
        var = jnp.mean((y - mean) ** 2, axis=-1, keepdims=True)
        y = (y - mean) * lax.rsqrt(var + LN_EPS) * g + beta
        h = jnp.maximum(y, 0.0).astype(jnp.bfloat16)
    return jnp.dot(h, w5, preferred_element_type=jnp.float32) + b5


if __name__ == "__main__":
    key = jax.random.PRNGKey(0)
    k_x, k_p = jax.random.split(key)
    params = init_params(k_p)

    # Small exact-tile batch.
    B = 8
    x = jax.random.normal(k_x, (B, D_IN), jnp.float32)
    out = mlp_forward(x, params)
    jax.block_until_ready(out)
    assert out.shape == (B, D_OUT), out.shape
    assert bool(jnp.all(jnp.isfinite(out)))
    ref = mlp_reference(x, params)
    assert bool(jnp.allclose(out, ref, rtol=5e-2, atol=5e-2)), \
        float(jnp.max(jnp.abs(out - ref)))

    # Ragged batch exercising the padding path (padded rows are sliced off).
    B2 = 13
    x2 = jax.random.normal(k_x, (B2, D_IN), jnp.float32)
    out2 = mlp_forward(x2, params)
    jax.block_until_ready(out2)
    assert out2.shape == (B2, D_OUT), out2.shape
    ref2 = mlp_reference(x2, params)
    assert bool(jnp.allclose(out2, ref2, rtol=5e-2, atol=5e-2)), \
        float(jnp.max(jnp.abs(out2 - ref2)))

    print("KERNEL_OK")
</pallas_src>

<mosaic_0001>
module attributes {stable_mosaic.version = 11 : i64} {
  func.func @mlp_kernel(%arg0: i32, %arg1: memref<8x256xf32, #tpu.memory_space<vmem>>, %arg2: memref<256x512xbf16, #tpu.memory_space<vmem>>, %arg3: memref<512x512xbf16, #tpu.memory_space<vmem>>, %arg4: memref<512x512xbf16, #tpu.memory_space<vmem>>, %arg5: memref<512x512xbf16, #tpu.memory_space<vmem>>, %arg6: memref<512x32xbf16, #tpu.memory_space<vmem>>, %arg7: memref<12x512xf32, #tpu.memory_space<vmem>>, %arg8: memref<1x32xf32, #tpu.memory_space<vmem>>, %arg9: memref<8x32xf32, #tpu.memory_space<vmem>>) attributes {dimension_semantics = [#tpu.dimension_semantics<parallel>], iteration_bounds = array<i64: 1>, scalar_prefetch = 0 : i64, scratch_operands = 0 : i64, tpu.core_type = #tpu.core_type<tc>, window_params = [{transform_indices = @transform_0, window_bounds = array<i64: 8, 256>}, {pipeline_mode = #tpu.pipeline_mode<synchronous>, transform_indices = @transform_1, window_bounds = array<i64: 256, 512>}, {pipeline_mode = #tpu.pipeline_mode<synchronous>, transform_indices = @transform_2, window_bounds = array<i64: 512, 512>}, {pipeline_mode = #tpu.pipeline_mode<synchronous>, transform_indices = @transform_3, window_bounds = array<i64: 512, 512>}, {pipeline_mode = #tpu.pipeline_mode<synchronous>, transform_indices = @transform_4, window_bounds = array<i64: 512, 512>}, {pipeline_mode = #tpu.pipeline_mode<synchronous>, transform_indices = @transform_5, window_bounds = array<i64: 512, 32>}, {pipeline_mode = #tpu.pipeline_mode<synchronous>, transform_indices = @transform_6, window_bounds = array<i64: 12, 512>}, {pipeline_mode = #tpu.pipeline_mode<synchronous>, transform_indices = @transform_7, window_bounds = array<i64: 1, 32>}, {transform_indices = @transform_8, window_bounds = array<i64: 8, 32>}]} {
    %c0 = arith.constant 0 : index
    %c0_0 = arith.constant 0 : index
    %0 = vector.load %arg1[%c0, %c0_0] : memref<8x256xf32, #tpu.memory_space<vmem>>, vector<8x256xf32>
    %1 = arith.truncf %0 : vector<8x256xf32> to vector<8x256xbf16>
    %c0_1 = arith.constant 0 : index
    %c0_2 = arith.constant 0 : index
    %2 = vector.load %arg2[%c0_1, %c0_2] : memref<256x512xbf16, #tpu.memory_space<vmem>>, vector<256x512xbf16>
    %cst = arith.constant dense<0.000000e+00> : vector<8x512xf32>
    %3 = tpu.matmul %1, %2, %cst {dimension_numbers = #tpu.dot_dimension_numbers<[1], [0], [0], [1], [0, 0, 1, 1], [], []>} : vector<8x256xbf16>, vector<256x512xbf16>, vector<8x512xf32> -> vector<8x512xf32>
    %c0_3 = arith.constant 0 : index
    %c0_4 = arith.constant 0 : index
    %4 = vector.load %arg7[%c0_3, %c0_4] : memref<12x512xf32, #tpu.memory_space<vmem>>, vector<1x512xf32>
    %c1 = arith.constant 1 : index
    %c0_5 = arith.constant 0 : index
    %5 = vector.load %arg7[%c1, %c0_5] : memref<12x512xf32, #tpu.memory_space<vmem>>, vector<1x512xf32>
    %c2 = arith.constant 2 : index
    %c0_6 = arith.constant 0 : index
    %6 = vector.load %arg7[%c2, %c0_6] : memref<12x512xf32, #tpu.memory_space<vmem>>, vector<1x512xf32>
    %7 = vector.broadcast %4 : vector<1x512xf32> to vector<8x512xf32>
    %8 = arith.addf %3, %7 : vector<8x512xf32>
    %cst_7 = arith.constant dense<0.000000e+00> : vector<8xf32>
    %9 = vector.multi_reduction <add>, %8, %cst_7 [1] : vector<8x512xf32> to vector<8xf32>
    %10 = vector.shape_cast %9 : vector<8xf32> to vector<8x1xf32>
    %cst_8 = arith.constant 0.001953125 : f32
    %11 = vector.broadcast %cst_8 : f32 to vector<8x1xf32>
    %12 = arith.mulf %10, %11 : vector<8x1xf32>
    %13 = vector.broadcast %12 : vector<8x1xf32> to vector<8x512xf32>
    %14 = arith.subf %8, %13 : vector<8x512xf32>
    %15 = arith.mulf %14, %14 : vector<8x512xf32>
    %cst_9 = arith.constant dense<0.000000e+00> : vector<8xf32>
    %16 = vector.multi_reduction <add>, %15, %cst_9 [1] : vector<8x512xf32> to vector<8xf32>
    %17 = vector.shape_cast %16 : vector<8xf32> to vector<8x1xf32>
    %cst_10 = arith.constant 0.001953125 : f32
    %18 = vector.broadcast %cst_10 : f32 to vector<8x1xf32>
    %19 = arith.mulf %17, %18 : vector<8x1xf32>
    %cst_11 = arith.constant 9.99999974E-6 : f32
    %20 = vector.broadcast %cst_11 : f32 to vector<8x1xf32>
    %21 = arith.addf %19, %20 : vector<8x1xf32>
    %22 = math.rsqrt %21 : vector<8x1xf32>
    %23 = vector.broadcast %5 : vector<1x512xf32> to vector<8x512xf32>
    %24 = vector.broadcast %22 : vector<8x1xf32> to vector<8x512xf32>
    %25 = arith.mulf %23, %24 : vector<8x512xf32>
    %26 = arith.mulf %14, %25 : vector<8x512xf32>
    %27 = vector.broadcast %6 : vector<1x512xf32> to vector<8x512xf32>
    %28 = arith.addf %26, %27 : vector<8x512xf32>
    %cst_12 = arith.constant 0.000000e+00 : f32
    %29 = vector.broadcast %cst_12 : f32 to vector<8x512xf32>
    %30 = arith.maximumf %28, %29 : vector<8x512xf32>
    %31 = arith.truncf %30 : vector<8x512xf32> to vector<8x512xbf16>
    %c0_13 = arith.constant 0 : index
    %c0_14 = arith.constant 0 : index
    %32 = vector.load %arg3[%c0_13, %c0_14] : memref<512x512xbf16, #tpu.memory_space<vmem>>, vector<512x512xbf16>
    %cst_15 = arith.constant dense<0.000000e+00> : vector<8x512xf32>
    %33 = tpu.matmul %31, %32, %cst_15 {dimension_numbers = #tpu.dot_dimension_numbers<[1], [0], [0], [1], [0, 0, 1, 1], [], []>} : vector<8x512xbf16>, vector<512x512xbf16>, vector<8x512xf32> -> vector<8x512xf32>
    %c3 = arith.constant 3 : index
    %c0_16 = arith.constant 0 : index
    %34 = vector.load %arg7[%c3, %c0_16] : memref<12x512xf32, #tpu.memory_space<vmem>>, vector<1x512xf32>
    %c4 = arith.constant 4 : index
    %c0_17 = arith.constant 0 : index
    %35 = vector.load %arg7[%c4, %c0_17] : memref<12x512xf32, #tpu.memory_space<vmem>>, vector<1x512xf32>
    %c5 = arith.constant 5 : index
    %c0_18 = arith.constant 0 : index
    %36 = vector.load %arg7[%c5, %c0_18] : memref<12x512xf32, #tpu.memory_space<vmem>>, vector<1x512xf32>
    %37 = vector.broadcast %34 : vector<1x512xf32> to vector<8x512xf32>
    %38 = arith.addf %33, %37 : vector<8x512xf32>
    %cst_19 = arith.constant dense<0.000000e+00> : vector<8xf32>
    %39 = vector.multi_reduction <add>, %38, %cst_19 [1] : vector<8x512xf32> to vector<8xf32>
    %40 = vector.shape_cast %39 : vector<8xf32> to vector<8x1xf32>
    %cst_20 = arith.constant 0.001953125 : f32
    %41 = vector.broadcast %cst_20 : f32 to vector<8x1xf32>
    %42 = arith.mulf %40, %41 : vector<8x1xf32>
    %43 = vector.broadcast %42 : vector<8x1xf32> to vector<8x512xf32>
    %44 = arith.subf %38, %43 : vector<8x512xf32>
    %45 = arith.mulf %44, %44 : vector<8x512xf32>
    %cst_21 = arith.constant dense<0.000000e+00> : vector<8xf32>
    %46 = vector.multi_reduction <add>, %45, %cst_21 [1] : vector<8x512xf32> to vector<8xf32>
    %47 = vector.shape_cast %46 : vector<8xf32> to vector<8x1xf32>
    %cst_22 = arith.constant 0.001953125 : f32
    %48 = vector.broadcast %cst_22 : f32 to vector<8x1xf32>
    %49 = arith.mulf %47, %48 : vector<8x1xf32>
    %cst_23 = arith.constant 9.99999974E-6 : f32
    %50 = vector.broadcast %cst_23 : f32 to vector<8x1xf32>
    %51 = arith.addf %49, %50 : vector<8x1xf32>
    %52 = math.rsqrt %51 : vector<8x1xf32>
    %53 = vector.broadcast %35 : vector<1x512xf32> to vector<8x512xf32>
    %54 = vector.broadcast %52 : vector<8x1xf32> to vector<8x512xf32>
    %55 = arith.mulf %53, %54 : vector<8x512xf32>
    %56 = arith.mulf %44, %55 : vector<8x512xf32>
    %57 = vector.broadcast %36 : vector<1x512xf32> to vector<8x512xf32>
    %58 = arith.addf %56, %57 : vector<8x512xf32>
    %cst_24 = arith.constant 0.000000e+00 : f32
    %59 = vector.broadcast %cst_24 : f32 to vector<8x512xf32>
    %60 = arith.maximumf %58, %59 : vector<8x512xf32>
    %61 = arith.truncf %60 : vector<8x512xf32> to vector<8x512xbf16>
    %c0_25 = arith.constant 0 : index
    %c0_26 = arith.constant 0 : index
    %62 = vector.load %arg4[%c0_25, %c0_26] : memref<512x512xbf16, #tpu.memory_space<vmem>>, vector<512x512xbf16>
    %cst_27 = arith.constant dense<0.000000e+00> : vector<8x512xf32>
    %63 = tpu.matmul %61, %62, %cst_27 {dimension_numbers = #tpu.dot_dimension_numbers<[1], [0], [0], [1], [0, 0, 1, 1], [], []>} : vector<8x512xbf16>, vector<512x512xbf16>, vector<8x512xf32> -> vector<8x512xf32>
    %c6 = arith.constant 6 : index
    %c0_28 = arith.constant 0 : index
    %64 = vector.load %arg7[%c6, %c0_28] : memref<12x512xf32, #tpu.memory_space<vmem>>, vector<1x512xf32>
    %c7 = arith.constant 7 : index
    %c0_29 = arith.constant 0 : index
    %65 = vector.load %arg7[%c7, %c0_29] : memref<12x512xf32, #tpu.memory_space<vmem>>, vector<1x512xf32>
    %c8 = arith.constant 8 : index
    %c0_30 = arith.constant 0 : index
    %66 = vector.load %arg7[%c8, %c0_30] : memref<12x512xf32, #tpu.memory_space<vmem>>, vector<1x512xf32>
    %67 = vector.broadcast %64 : vector<1x512xf32> to vector<8x512xf32>
    %68 = arith.addf %63, %67 : vector<8x512xf32>
    %cst_31 = arith.constant dense<0.000000e+00> : vector<8xf32>
    %69 = vector.multi_reduction <add>, %68, %cst_31 [1] : vector<8x512xf32> to vector<8xf32>
    %70 = vector.shape_cast %69 : vector<8xf32> to vector<8x1xf32>
    %cst_32 = arith.constant 0.001953125 : f32
    %71 = vector.broadcast %cst_32 : f32 to vector<8x1xf32>
    %72 = arith.mulf %70, %71 : vector<8x1xf32>
    %73 = vector.broadcast %72 : vector<8x1xf32> to vector<8x512xf32>
    %74 = arith.subf %68, %73 : vector<8x512xf32>
    %75 = arith.mulf %74, %74 : vector<8x512xf32>
    %cst_33 = arith.constant dense<0.000000e+00> : vector<8xf32>
    %76 = vector.multi_reduction <add>, %75, %cst_33 [1] : vector<8x512xf32> to vector<8xf32>
    %77 = vector.shape_cast %76 : vector<8xf32> to vector<8x1xf32>
    %cst_34 = arith.constant 0.001953125 : f32
    %78 = vector.broadcast %cst_34 : f32 to vector<8x1xf32>
    %79 = arith.mulf %77, %78 : vector<8x1xf32>
    %cst_35 = arith.constant 9.99999974E-6 : f32
    %80 = vector.broadcast %cst_35 : f32 to vector<8x1xf32>
    %81 = arith.addf %79, %80 : vector<8x1xf32>
    %82 = math.rsqrt %81 : vector<8x1xf32>
    %83 = vector.broadcast %65 : vector<1x512xf32> to vector<8x512xf32>
    %84 = vector.broadcast %82 : vector<8x1xf32> to vector<8x512xf32>
    %85 = arith.mulf %83, %84 : vector<8x512xf32>
    %86 = arith.mulf %74, %85 : vector<8x512xf32>
    %87 = vector.broadcast %66 : vector<1x512xf32> to vector<8x512xf32>
    %88 = arith.addf %86, %87 : vector<8x512xf32>
    %cst_36 = arith.constant 0.000000e+00 : f32
    %89 = vector.broadcast %cst_36 : f32 to vector<8x512xf32>
    %90 = arith.maximumf %88, %89 : vector<8x512xf32>
    %91 = arith.truncf %90 : vector<8x512xf32> to vector<8x512xbf16>
    %c0_37 = arith.constant 0 : index
    %c0_38 = arith.constant 0 : index
    %92 = vector.load %arg5[%c0_37, %c0_38] : memref<512x512xbf16, #tpu.memory_space<vmem>>, vector<512x512xbf16>
    %cst_39 = arith.constant dense<0.000000e+00> : vector<8x512xf32>
    %93 = tpu.matmul %91, %92, %cst_39 {dimension_numbers = #tpu.dot_dimension_numbers<[1], [0], [0], [1], [0, 0, 1, 1], [], []>} : vector<8x512xbf16>, vector<512x512xbf16>, vector<8x512xf32> -> vector<8x512xf32>
    %c9 = arith.constant 9 : index
    %c0_40 = arith.constant 0 : index
    %94 = vector.load %arg7[%c9, %c0_40] : memref<12x512xf32, #tpu.memory_space<vmem>>, vector<1x512xf32>
    %c10 = arith.constant 10 : index
    %c0_41 = arith.constant 0 : index
    %95 = vector.load %arg7[%c10, %c0_41] : memref<12x512xf32, #tpu.memory_space<vmem>>, vector<1x512xf32>
    %c11 = arith.constant 11 : index
    %c0_42 = arith.constant 0 : index
    %96 = vector.load %arg7[%c11, %c0_42] : memref<12x512xf32, #tpu.memory_space<vmem>>, vector<1x512xf32>
    %97 = vector.broadcast %94 : vector<1x512xf32> to vector<8x512xf32>
    %98 = arith.addf %93, %97 : vector<8x512xf32>
    %cst_43 = arith.constant dense<0.000000e+00> : vector<8xf32>
    %99 = vector.multi_reduction <add>, %98, %cst_43 [1] : vector<8x512xf32> to vector<8xf32>
    %100 = vector.shape_cast %99 : vector<8xf32> to vector<8x1xf32>
    %cst_44 = arith.constant 0.001953125 : f32
    %101 = vector.broadcast %cst_44 : f32 to vector<8x1xf32>
    %102 = arith.mulf %100, %101 : vector<8x1xf32>
    %103 = vector.broadcast %102 : vector<8x1xf32> to vector<8x512xf32>
    %104 = arith.subf %98, %103 : vector<8x512xf32>
    %105 = arith.mulf %104, %104 : vector<8x512xf32>
    %cst_45 = arith.constant dense<0.000000e+00> : vector<8xf32>
    %106 = vector.multi_reduction <add>, %105, %cst_45 [1] : vector<8x512xf32> to vector<8xf32>
    %107 = vector.shape_cast %106 : vector<8xf32> to vector<8x1xf32>
    %cst_46 = arith.constant 0.001953125 : f32
    %108 = vector.broadcast %cst_46 : f32 to vector<8x1xf32>
    %109 = arith.mulf %107, %108 : vector<8x1xf32>
    %cst_47 = arith.constant 9.99999974E-6 : f32
    %110 = vector.broadcast %cst_47 : f32 to vector<8x1xf32>
    %111 = arith.addf %109, %110 : vector<8x1xf32>
    %112 = math.rsqrt %111 : vector<8x1xf32>
    %113 = vector.broadcast %95 : vector<1x512xf32> to vector<8x512xf32>
    %114 = vector.broadcast %112 : vector<8x1xf32> to vector<8x512xf32>
    %115 = arith.mulf %113, %114 : vector<8x512xf32>
    %116 = arith.mulf %104, %115 : vector<8x512xf32>
    %117 = vector.broadcast %96 : vector<1x512xf32> to vector<8x512xf32>
    %118 = arith.addf %116, %117 : vector<8x512xf32>
    %cst_48 = arith.constant 0.000000e+00 : f32
    %119 = vector.broadcast %cst_48 : f32 to vector<8x512xf32>
    %120 = arith.maximumf %118, %119 : vector<8x512xf32>
    %121 = arith.truncf %120 : vector<8x512xf32> to vector<8x512xbf16>
    %c0_49 = arith.constant 0 : index
    %c0_50 = arith.constant 0 : index
    %122 = vector.load %arg6[%c0_49, %c0_50] : memref<512x32xbf16, #tpu.memory_space<vmem>>, vector<512x32xbf16>
    %cst_51 = arith.constant dense<0.000000e+00> : vector<8x32xf32>
    %123 = tpu.matmul %121, %122, %cst_51 {dimension_numbers = #tpu.dot_dimension_numbers<[1], [0], [0], [1], [0, 0, 1, 1], [], []>} : vector<8x512xbf16>, vector<512x32xbf16>, vector<8x32xf32> -> vector<8x32xf32>
    %c0_52 = arith.constant 0 : index
    %c0_53 = arith.constant 0 : index
    %124 = vector.load %arg8[%c0_52, %c0_53] : memref<1x32xf32, #tpu.memory_space<vmem>>, vector<1x32xf32>
    %125 = vector.broadcast %124 : vector<1x32xf32> to vector<8x32xf32>
    %126 = arith.addf %123, %125 : vector<8x32xf32>
    %c0_54 = arith.constant 0 : index
    %c0_55 = arith.constant 0 : index
    %127 = vector.load %arg9[%c0_54, %c0_55] : memref<8x32xf32, #tpu.memory_space<vmem>>, vector<8x32xf32>
    tpu.vector_store %arg9[%c0_54, %c0_55], %126 {strides = array<i32>} : memref<8x32xf32, #tpu.memory_space<vmem>>, vector<8x32xf32>,
    return
  }
  func.func @transform_0(%arg0: i32) -> (i32, i32) {
    %c0_i32 = arith.constant 0 : i32
    %c0_i32_0 = arith.constant 0 : i32
    return %arg0, %c0_i32 : i32, i32
  }
  func.func @transform_1(%arg0: i32) -> (i32, i32) {
    %c0_i32 = arith.constant 0 : i32
    %c0_i32_0 = arith.constant 0 : i32
    %c0_i32_1 = arith.constant 0 : i32
    return %c0_i32, %c0_i32_0 : i32, i32
  }
  func.func @transform_2(%arg0: i32) -> (i32, i32) {
    %c0_i32 = arith.constant 0 : i32
    %c0_i32_0 = arith.constant 0 : i32
    %c0_i32_1 = arith.constant 0 : i32
    return %c0_i32, %c0_i32_0 : i32, i32
  }
  func.func @transform_3(%arg0: i32) -> (i32, i32) {
    %c0_i32 = arith.constant 0 : i32
    %c0_i32_0 = arith.constant 0 : i32
    %c0_i32_1 = arith.constant 0 : i32
    return %c0_i32, %c0_i32_0 : i32, i32
  }
  func.func @transform_4(%arg0: i32) -> (i32, i32) {
    %c0_i32 = arith.constant 0 : i32
    %c0_i32_0 = arith.constant 0 : i32
    %c0_i32_1 = arith.constant 0 : i32
    return %c0_i32, %c0_i32_0 : i32, i32
  }
  func.func @transform_5(%arg0: i32) -> (i32, i32) {
    %c0_i32 = arith.constant 0 : i32
    %c0_i32_0 = arith.constant 0 : i32
    %c0_i32_1 = arith.constant 0 : i32
    return %c0_i32, %c0_i32_0 : i32, i32
  }
  func.func @transform_6(%arg0: i32) -> (i32, i32) {
    %c0_i32 = arith.constant 0 : i32
    %c0_i32_0 = arith.constant 0 : i32
    %c0_i32_1 = arith.constant 0 : i32
    return %c0_i32, %c0_i32_0 : i32, i32
  }
  func.func @transform_7(%arg0: i32) -> (i32, i32) {
    %c0_i32 = arith.constant 0 : i32
    %c0_i32_0 = arith.constant 0 : i32
    %c0_i32_1 = arith.constant 0 : i32
    return %c0_i32, %c0_i32_0 : i32, i32
  }
  func.func @transform_8(%arg0: i32) -> (i32, i32) {
    %c0_i32 = arith.constant 0 : i32
    %c0_i32_0 = arith.constant 0 : i32
    return %arg0, %c0_i32 : i32, i32
  }
}

module attributes {stable_mosaic.version = 11 : i64} {
  func.func @mlp_kernel(%arg0: i32, %arg1: memref<8x256xf32, #tpu.memory_space<vmem>>, %arg2: memref<256x512xbf16, #tpu.memory_space<vmem>>, %arg3: memref<512x512xbf16, #tpu.memory_space<vmem>>, %arg4: memref<512x512xbf16, #tpu.memory_space<vmem>>, %arg5: memref<512x512xbf16, #tpu.memory_space<vmem>>, %arg6: memref<512x32xbf16, #tpu.memory_space<vmem>>, %arg7: memref<12x512xf32, #tpu.memory_space<vmem>>, %arg8: memref<1x32xf32, #tpu.memory_space<vmem>>, %arg9: memref<8x32xf32, #tpu.memory_space<vmem>>) attributes {dimension_semantics = [#tpu.dimension_semantics<parallel>], iteration_bounds = array<i64: 1>, scalar_prefetch = 0 : i64, scratch_operands = 0 : i64, tpu.core_type = #tpu.core_type<tc>, window_params = [{transform_indices = @transform_0, window_bounds = array<i64: 8, 256>}, {pipeline_mode = #tpu.pipeline_mode<synchronous>, transform_indices = @transform_1, window_bounds = array<i64: 256, 512>}, {pipeline_mode = #tpu.pipeline_mode<synchronous>, transform_indices = @transform_2, window_bounds = array<i64: 512, 512>}, {pipeline_mode = #tpu.pipeline_mode<synchronous>, transform_indices = @transform_3, window_bounds = array<i64: 512, 512>}, {pipeline_mode = #tpu.pipeline_mode<synchronous>, transform_indices = @transform_4, window_bounds = array<i64: 512, 512>}, {pipeline_mode = #tpu.pipeline_mode<synchronous>, transform_indices = @transform_5, window_bounds = array<i64: 512, 32>}, {pipeline_mode = #tpu.pipeline_mode<synchronous>, transform_indices = @transform_6, window_bounds = array<i64: 12, 512>}, {pipeline_mode = #tpu.pipeline_mode<synchronous>, transform_indices = @transform_7, window_bounds = array<i64: 1, 32>}, {transform_indices = @transform_8, window_bounds = array<i64: 8, 32>}]} {
    %c0 = arith.constant 0 : index
    %c0_0 = arith.constant 0 : index
    %0 = vector.load %arg1[%c0, %c0_0] : memref<8x256xf32, #tpu.memory_space<vmem>>, vector<8x256xf32>
    %1 = arith.truncf %0 : vector<8x256xf32> to vector<8x256xbf16>
    %c0_1 = arith.constant 0 : index
    %c0_2 = arith.constant 0 : index
    %2 = vector.load %arg2[%c0_1, %c0_2] : memref<256x512xbf16, #tpu.memory_space<vmem>>, vector<256x512xbf16>
    %cst = arith.constant dense<0.000000e+00> : vector<8x512xf32>
    %3 = tpu.matmul %1, %2, %cst {dimension_numbers = #tpu.dot_dimension_numbers<[1], [0], [0], [1], [0, 0, 1, 1], [], []>} : vector<8x256xbf16>, vector<256x512xbf16>, vector<8x512xf32> -> vector<8x512xf32>
    %c0_3 = arith.constant 0 : index
    %c0_4 = arith.constant 0 : index
    %4 = vector.load %arg7[%c0_3, %c0_4] : memref<12x512xf32, #tpu.memory_space<vmem>>, vector<1x512xf32>
    %c1 = arith.constant 1 : index
    %c0_5 = arith.constant 0 : index
    %5 = vector.load %arg7[%c1, %c0_5] : memref<12x512xf32, #tpu.memory_space<vmem>>, vector<1x512xf32>
    %c2 = arith.constant 2 : index
    %c0_6 = arith.constant 0 : index
    %6 = vector.load %arg7[%c2, %c0_6] : memref<12x512xf32, #tpu.memory_space<vmem>>, vector<1x512xf32>
    %7 = vector.broadcast %4 : vector<1x512xf32> to vector<8x512xf32>
    %8 = arith.addf %3, %7 : vector<8x512xf32>
    %cst_7 = arith.constant dense<0.000000e+00> : vector<8xf32>
    %9 = vector.multi_reduction <add>, %8, %cst_7 [1] : vector<8x512xf32> to vector<8xf32>
    %10 = vector.shape_cast %9 : vector<8xf32> to vector<8x1xf32>
    %cst_8 = arith.constant 0.001953125 : f32
    %11 = vector.broadcast %cst_8 : f32 to vector<8x1xf32>
    %12 = arith.mulf %10, %11 : vector<8x1xf32>
    %13 = vector.broadcast %12 : vector<8x1xf32> to vector<8x512xf32>
    %14 = arith.subf %8, %13 : vector<8x512xf32>
    %15 = arith.mulf %14, %14 : vector<8x512xf32>
    %cst_9 = arith.constant dense<0.000000e+00> : vector<8xf32>
    %16 = vector.multi_reduction <add>, %15, %cst_9 [1] : vector<8x512xf32> to vector<8xf32>
    %17 = vector.shape_cast %16 : vector<8xf32> to vector<8x1xf32>
    %cst_10 = arith.constant 0.001953125 : f32
    %18 = vector.broadcast %cst_10 : f32 to vector<8x1xf32>
    %19 = arith.mulf %17, %18 : vector<8x1xf32>
    %cst_11 = arith.constant 9.99999974E-6 : f32
    %20 = vector.broadcast %cst_11 : f32 to vector<8x1xf32>
    %21 = arith.addf %19, %20 : vector<8x1xf32>
    %22 = math.rsqrt %21 : vector<8x1xf32>
    %23 = vector.broadcast %5 : vector<1x512xf32> to vector<8x512xf32>
    %24 = vector.broadcast %22 : vector<8x1xf32> to vector<8x512xf32>
    %25 = arith.mulf %23, %24 : vector<8x512xf32>
    %26 = arith.mulf %14, %25 : vector<8x512xf32>
    %27 = vector.broadcast %6 : vector<1x512xf32> to vector<8x512xf32>
    %28 = arith.addf %26, %27 : vector<8x512xf32>
    %cst_12 = arith.constant 0.000000e+00 : f32
    %29 = vector.broadcast %cst_12 : f32 to vector<8x512xf32>
    %30 = arith.maximumf %28, %29 : vector<8x512xf32>
    %31 = arith.truncf %30 : vector<8x512xf32> to vector<8x512xbf16>
    %c0_13 = arith.constant 0 : index
    %c0_14 = arith.constant 0 : index
    %32 = vector.load %arg3[%c0_13, %c0_14] : memref<512x512xbf16, #tpu.memory_space<vmem>>, vector<512x512xbf16>
    %cst_15 = arith.constant dense<0.000000e+00> : vector<8x512xf32>
    %33 = tpu.matmul %31, %32, %cst_15 {dimension_numbers = #tpu.dot_dimension_numbers<[1], [0], [0], [1], [0, 0, 1, 1], [], []>} : vector<8x512xbf16>, vector<512x512xbf16>, vector<8x512xf32> -> vector<8x512xf32>
    %c3 = arith.constant 3 : index
    %c0_16 = arith.constant 0 : index
    %34 = vector.load %arg7[%c3, %c0_16] : memref<12x512xf32, #tpu.memory_space<vmem>>, vector<1x512xf32>
    %c4 = arith.constant 4 : index
    %c0_17 = arith.constant 0 : index
    %35 = vector.load %arg7[%c4, %c0_17] : memref<12x512xf32, #tpu.memory_space<vmem>>, vector<1x512xf32>
    %c5 = arith.constant 5 : index
    %c0_18 = arith.constant 0 : index
    %36 = vector.load %arg7[%c5, %c0_18] : memref<12x512xf32, #tpu.memory_space<vmem>>, vector<1x512xf32>
    %37 = vector.broadcast %34 : vector<1x512xf32> to vector<8x512xf32>
    %38 = arith.addf %33, %37 : vector<8x512xf32>
    %cst_19 = arith.constant dense<0.000000e+00> : vector<8xf32>
    %39 = vector.multi_reduction <add>, %38, %cst_19 [1] : vector<8x512xf32> to vector<8xf32>
    %40 = vector.shape_cast %39 : vector<8xf32> to vector<8x1xf32>
    %cst_20 = arith.constant 0.001953125 : f32
    %41 = vector.broadcast %cst_20 : f32 to vector<8x1xf32>
    %42 = arith.mulf %40, %41 : vector<8x1xf32>
    %43 = vector.broadcast %42 : vector<8x1xf32> to vector<8x512xf32>
    %44 = arith.subf %38, %43 : vector<8x512xf32>
    %45 = arith.mulf %44, %44 : vector<8x512xf32>
    %cst_21 = arith.constant dense<0.000000e+00> : vector<8xf32>
    %46 = vector.multi_reduction <add>, %45, %cst_21 [1] : vector<8x512xf32> to vector<8xf32>
    %47 = vector.shape_cast %46 : vector<8xf32> to vector<8x1xf32>
    %cst_22 = arith.constant 0.001953125 : f32
    %48 = vector.broadcast %cst_22 : f32 to vector<8x1xf32>
    %49 = arith.mulf %47, %48 : vector<8x1xf32>
    %cst_23 = arith.constant 9.99999974E-6 : f32
    %50 = vector.broadcast %cst_23 : f32 to vector<8x1xf32>
    %51 = arith.addf %49, %50 : vector<8x1xf32>
    %52 = math.rsqrt %51 : vector<8x1xf32>
    %53 = vector.broadcast %35 : vector<1x512xf32> to vector<8x512xf32>
    %54 = vector.broadcast %52 : vector<8x1xf32> to vector<8x512xf32>
    %55 = arith.mulf %53, %54 : vector<8x512xf32>
    %56 = arith.mulf %44, %55 : vector<8x512xf32>
    %57 = vector.broadcast %36 : vector<1x512xf32> to vector<8x512xf32>
    %58 = arith.addf %56, %57 : vector<8x512xf32>
    %cst_24 = arith.constant 0.000000e+00 : f32
    %59 = vector.broadcast %cst_24 : f32 to vector<8x512xf32>
    %60 = arith.maximumf %58, %59 : vector<8x512xf32>
    %61 = arith.truncf %60 : vector<8x512xf32> to vector<8x512xbf16>
    %c0_25 = arith.constant 0 : index
    %c0_26 = arith.constant 0 : index
    %62 = vector.load %arg4[%c0_25, %c0_26] : memref<512x512xbf16, #tpu.memory_space<vmem>>, vector<512x512xbf16>
    %cst_27 = arith.constant dense<0.000000e+00> : vector<8x512xf32>
    %63 = tpu.matmul %61, %62, %cst_27 {dimension_numbers = #tpu.dot_dimension_numbers<[1], [0], [0], [1], [0, 0, 1, 1], [], []>} : vector<8x512xbf16>, vector<512x512xbf16>, vector<8x512xf32> -> vector<8x512xf32>
    %c6 = arith.constant 6 : index
    %c0_28 = arith.constant 0 : index
    %64 = vector.load %arg7[%c6, %c0_28] : memref<12x512xf32, #tpu.memory_space<vmem>>, vector<1x512xf32>
    %c7 = arith.constant 7 : index
    %c0_29 = arith.constant 0 : index
    %65 = vector.load %arg7[%c7, %c0_29] : memref<12x512xf32, #tpu.memory_space<vmem>>, vector<1x512xf32>
    %c8 = arith.constant 8 : index
    %c0_30 = arith.constant 0 : index
    %66 = vector.load %arg7[%c8, %c0_30] : memref<12x512xf32, #tpu.memory_space<vmem>>, vector<1x512xf32>
    %67 = vector.broadcast %64 : vector<1x512xf32> to vector<8x512xf32>
    %68 = arith.addf %63, %67 : vector<8x512xf32>
    %cst_31 = arith.constant dense<0.000000e+00> : vector<8xf32>
    %69 = vector.multi_reduction <add>, %68, %cst_31 [1] : vector<8x512xf32> to vector<8xf32>
    %70 = vector.shape_cast %69 : vector<8xf32> to vector<8x1xf32>
    %cst_32 = arith.constant 0.001953125 : f32
    %71 = vector.broadcast %cst_32 : f32 to vector<8x1xf32>
    %72 = arith.mulf %70, %71 : vector<8x1xf32>
    %73 = vector.broadcast %72 : vector<8x1xf32> to vector<8x512xf32>
    %74 = arith.subf %68, %73 : vector<8x512xf32>
    %75 = arith.mulf %74, %74 : vector<8x512xf32>
    %cst_33 = arith.constant dense<0.000000e+00> : vector<8xf32>
    %76 = vector.multi_reduction <add>, %75, %cst_33 [1] : vector<8x512xf32> to vector<8xf32>
    %77 = vector.shape_cast %76 : vector<8xf32> to vector<8x1xf32>
    %cst_34 = arith.constant 0.001953125 : f32
    %78 = vector.broadcast %cst_34 : f32 to vector<8x1xf32>
    %79 = arith.mulf %77, %78 : vector<8x1xf32>
    %cst_35 = arith.constant 9.99999974E-6 : f32
    %80 = vector.broadcast %cst_35 : f32 to vector<8x1xf32>
    %81 = arith.addf %79, %80 : vector<8x1xf32>
    %82 = math.rsqrt %81 : vector<8x1xf32>
    %83 = vector.broadcast %65 : vector<1x512xf32> to vector<8x512xf32>
    %84 = vector.broadcast %82 : vector<8x1xf32> to vector<8x512xf32>
    %85 = arith.mulf %83, %84 : vector<8x512xf32>
    %86 = arith.mulf %74, %85 : vector<8x512xf32>
    %87 = vector.broadcast %66 : vector<1x512xf32> to vector<8x512xf32>
    %88 = arith.addf %86, %87 : vector<8x512xf32>
    %cst_36 = arith.constant 0.000000e+00 : f32
    %89 = vector.broadcast %cst_36 : f32 to vector<8x512xf32>
    %90 = arith.maximumf %88, %89 : vector<8x512xf32>
    %91 = arith.truncf %90 : vector<8x512xf32> to vector<8x512xbf16>
    %c0_37 = arith.constant 0 : index
    %c0_38 = arith.constant 0 : index
    %92 = vector.load %arg5[%c0_37, %c0_38] : memref<512x512xbf16, #tpu.memory_space<vmem>>, vector<512x512xbf16>
    %cst_39 = arith.constant dense<0.000000e+00> : vector<8x512xf32>
    %93 = tpu.matmul %91, %92, %cst_39 {dimension_numbers = #tpu.dot_dimension_numbers<[1], [0], [0], [1], [0, 0, 1, 1], [], []>} : vector<8x512xbf16>, vector<512x512xbf16>, vector<8x512xf32> -> vector<8x512xf32>
    %c9 = arith.constant 9 : index
    %c0_40 = arith.constant 0 : index
    %94 = vector.load %arg7[%c9, %c0_40] : memref<12x512xf32, #tpu.memory_space<vmem>>, vector<1x512xf32>
    %c10 = arith.constant 10 : index
    %c0_41 = arith.constant 0 : index
    %95 = vector.load %arg7[%c10, %c0_41] : memref<12x512xf32, #tpu.memory_space<vmem>>, vector<1x512xf32>
    %c11 = arith.constant 11 : index
    %c0_42 = arith.constant 0 : index
    %96 = vector.load %arg7[%c11, %c0_42] : memref<12x512xf32, #tpu.memory_space<vmem>>, vector<1x512xf32>
    %97 = vector.broadcast %94 : vector<1x512xf32> to vector<8x512xf32>
    %98 = arith.addf %93, %97 : vector<8x512xf32>
    %cst_43 = arith.constant dense<0.000000e+00> : vector<8xf32>
    %99 = vector.multi_reduction <add>, %98, %cst_43 [1] : vector<8x512xf32> to vector<8xf32>
    %100 = vector.shape_cast %99 : vector<8xf32> to vector<8x1xf32>
    %cst_44 = arith.constant 0.001953125 : f32
    %101 = vector.broadcast %cst_44 : f32 to vector<8x1xf32>
    %102 = arith.mulf %100, %101 : vector<8x1xf32>
    %103 = vector.broadcast %102 : vector<8x1xf32> to vector<8x512xf32>
    %104 = arith.subf %98, %103 : vector<8x512xf32>
    %105 = arith.mulf %104, %104 : vector<8x512xf32>
    %cst_45 = arith.constant dense<0.000000e+00> : vector<8xf32>
    %106 = vector.multi_reduction <add>, %105, %cst_45 [1] : vector<8x512xf32> to vector<8xf32>
    %107 = vector.shape_cast %106 : vector<8xf32> to vector<8x1xf32>
    %cst_46 = arith.constant 0.001953125 : f32
    %108 = vector.broadcast %cst_46 : f32 to vector<8x1xf32>
    %109 = arith.mulf %107, %108 : vector<8x1xf32>
    %cst_47 = arith.constant 9.99999974E-6 : f32
    %110 = vector.broadcast %cst_47 : f32 to vector<8x1xf32>
    %111 = arith.addf %109, %110 : vector<8x1xf32>
    %112 = math.rsqrt %111 : vector<8x1xf32>
    %113 = vector.broadcast %95 : vector<1x512xf32> to vector<8x512xf32>
    %114 = vector.broadcast %112 : vector<8x1xf32> to vector<8x512xf32>
    %115 = arith.mulf %113, %114 : vector<8x512xf32>
    %116 = arith.mulf %104, %115 : vector<8x512xf32>
    %117 = vector.broadcast %96 : vector<1x512xf32> to vector<8x512xf32>
    %118 = arith.addf %116, %117 : vector<8x512xf32>
    %cst_48 = arith.constant 0.000000e+00 : f32
    %119 = vector.broadcast %cst_48 : f32 to vector<8x512xf32>
    %120 = arith.maximumf %118, %119 : vector<8x512xf32>
    %121 = arith.truncf %120 : vector<8x512xf32> to vector<8x512xbf16>
    %c0_49 = arith.constant 0 : index
    %c0_50 = arith.constant 0 : index
    %122 = vector.load %arg6[%c0_49, %c0_50] : memref<512x32xbf16, #tpu.memory_space<vmem>>, vector<512x32xbf16>
    %cst_51 = arith.constant dense<0.000000e+00> : vector<8x32xf32>
    %123 = tpu.matmul %121, %122, %cst_51 {dimension_numbers = #tpu.dot_dimension_numbers<[1], [0], [0], [1], [0, 0, 1, 1], [], []>} : vector<8x512xbf16>, vector<512x32xbf16>, vector<8x32xf32> -> vector<8x32xf32>
    %c0_52 = arith.constant 0 : index
    %c0_53 = arith.constant 0 : index
    %124 = vector.load %arg8[%c0_52, %c0_53] : memref<1x32xf32, #tpu.memory_space<vmem>>, vector<1x32xf32>
    %125 = vector.broadcast %124 : vector<1x32xf32> to vector<8x32xf32>
    %126 = arith.addf %123, %125 : vector<8x32xf32>
    %c0_54 = arith.constant 0 : index
    %c0_55 = arith.constant 0 : index
    %127 = vector.load %arg9[%c0_54, %c0_55] : memref<8x32xf32, #tpu.memory_space<vmem>>, vector<8x32xf32>
    tpu.vector_store %arg9[%c0_54, %c0_55], %126 {strides = array<i32>} : memref<8x32xf32, #tpu.memory_space<vmem>>, vector<8x32xf32>,
    return
  }
  func.func @transform_0(%arg0: i32) -> (i32, i32) {
    %c0_i32 = arith.constant 0 : i32
    %c0_i32_0 = arith.constant 0 : i32
    return %arg0, %c0_i32 : i32, i32
  }
  func.func @transform_1(%arg0: i32) -> (i32, i32) {
    %c0_i32 = arith.constant 0 : i32
    %c0_i32_0 = arith.constant 0 : i32
    %c0_i32_1 = arith.constant 0 : i32
    return %c0_i32, %c0_i32_0 : i32, i32
  }
  func.func @transform_2(%arg0: i32) -> (i32, i32) {
    %c0_i32 = arith.constant 0 : i32
    %c0_i32_0 = arith.constant 0 : i32
    %c0_i32_1 = arith.constant 0 : i32
    return %c0_i32, %c0_i32_0 : i32, i32
  }
  func.func @transform_3(%arg0: i32) -> (i32, i32) {
    %c0_i32 = arith.constant 0 : i32
    %c0_i32_0 = arith.constant 0 : i32
    %c0_i32_1 = arith.constant 0 : i32
    return %c0_i32, %c0_i32_0 : i32, i32
  }
  func.func @transform_4(%arg0: i32) -> (i32, i32) {
    %c0_i32 = arith.constant 0 : i32
    %c0_i32_0 = arith.constant 0 : i32
    %c0_i32_1 = arith.constant 0 : i32
    return %c0_i32, %c0_i32_0 : i32, i32
  }
  func.func @transform_5(%arg0: i32) -> (i32, i32) {
    %c0_i32 = arith.constant 0 : i32
    %c0_i32_0 = arith.constant 0 : i32
    %c0_i32_1 = arith.constant 0 : i32
    return %c0_i32, %c0_i32_0 : i32, i32
  }
  func.func @transform_6(%arg0: i32) -> (i32, i32) {
    %c0_i32 = arith.constant 0 : i32
    %c0_i32_0 = arith.constant 0 : i32
    %c0_i32_1 = arith.constant 0 : i32
    return %c0_i32, %c0_i32_0 : i32, i32
  }
  func.func @transform_7(%arg0: i32) -> (i32, i32) {
    %c0_i32 = arith.constant 0 : i32
    %c0_i32_0 = arith.constant 0 : i32
    %c0_i32_1 = arith.constant 0 : i32
    return %c0_i32, %c0_i32_0 : i32, i32
  }
  func.func @transform_8(%arg0: i32) -> (i32, i32) {
    %c0_i32 = arith.constant 0 : i32
    %c0_i32_0 = arith.constant 0 : i32
    return %arg0, %c0_i32 : i32, i32
  }
}

</mosaic_0001>

<bundles_post_ra>
// kernel: tpu_custom_call.1
= control target key start
LH: loop header
LB: loop body
LE: loop exit
PB: predicated region body
PF: predicated region fallthrough
CT: control target
= control target key end

     0   :  { %13 = vsyncpa [#allocation3], 0  ;;  %s6038_s0 = inlined_call_operand.vmem [shape: f32[8,256], index: 0, kind: input, shape index: {}]   ;;  %s6039_s1 = inlined_call_operand.hbm [shape: bf16[256,512], index: 1, kind: input, shape index: {}]   ;;  %s6040_s2 = inlined_call_operand.hbm [shape: bf16[512,512], index: 2, kind: input, shape index: {}]   ;;  %s6041_s3 = inlined_call_operand.hbm [shape: bf16[512,512], index: 3, kind: input, shape index: {}]   ;;  %s6042_s4 = inlined_call_operand.hbm [shape: bf16[512,512], index: 4, kind: input, shape index: {}]   ;;  %s6043_s5 = inlined_call_operand.vmem [shape: bf16[512,32], index: 5, kind: input, shape index: {}]   ;;  %s6044_s6 = inlined_call_operand.vmem [shape: f32[12,512], index: 6, kind: input, shape index: {}]   ;;  %s6045_s7 = inlined_call_operand.vmem [shape: f32[1,32], index: 7, kind: input, shape index: {}]   ;;  %s6046_s8 = inlined_call_operand.hbm [shape: f32[8,32], index: 8, kind: output, shape index: {}]  }
   0x1   :  { %14 = vsyncpa [#allocation6], 0 }
   0x2   :  { %15 = vsyncpa [#allocation9], 0 }
   0x3   :  { %16 = vsyncpa [#allocation4], 0  ;;  %s5566_s27 = smov [#allocation5]   ;;  %s5567_s29 = smov [#allocation2]  }
   0x4   :  { %s36_s28 = sshll.u32 %s5566_s27, 4  ;;  %s24_s30 = sshll.u32 %s5567_s29, 4  ;;  %s37_s28 = int_to_ptr.vmem [resolvable:$true] %s36_s28  ;;  %s5618_s30 = int_to_ptr.vmem [resolvable:$true] %s24_s30 }
   0x5   :  { %s5448_s11 = scalar_lea.hbm %s6040_s2, 16384 }
   0x6   :  { %p5449_p0 = scmp.ne.s32.totalorder %s6040_s2, %s5448_s11  ;;  %p5452_p1 = scmp.lt.u32.totalorder %s5448_s11, %s6040_s2 }
   0x8   :  { %p5454_p2 = pnand %p5452_p1, %p5449_p0 }
   0xa   :  { %5457 = shalt.err (!%p5454_p2)
}
   0xb   :  { %s5458_s16 = scalar_lea.vmem %s37_s28, 16384  ;;  %p5463_p4 = scmp.lt.s32.totalorder %s37_s28, %s37_s28 }
   0xc   :  { %p5459_p3 = scmp.ne.s32.totalorder %s37_s28, %s5458_s16  ;;  %p5464_p5 = scmp.lt.s32.totalorder %s5458_s16, %s5458_s16 }
   0xe   :  { %p5465_p6 = por %p5464_p5, %p5463_p4 }
  0x10   :  { %p5466_p7 = pnand %p5465_p6, %p5459_p3 }
  0x12   :  { %5469 = shalt.err (!%p5466_p7)
}
  0x13   :  { %s5568_s17 = smov 256   ;;  %s5569_s18 = smov 16  }
  0x14   :  { %42 = dma.hbm_to_vmem [thread:$0]  %s6040_s2, 16384, %s37_s28, [#allocation6], %s5568_s17, %s5568_s17, %s5569_s18  }
  0x15   :  { %s5470_s23 = scalar_lea.hbm %s6039_s1, 8192 }
  0x16   :  { %p5471_p8 = scmp.ne.s32.totalorder %s6039_s1, %s5470_s23  ;;  %p5474_p9 = scmp.lt.u32.totalorder %s5470_s23, %s6039_s1 }
  0x18   :  { %p5476_p10 = pnand %p5474_p9, %p5471_p8 }
  0x1a   :  { %5479 = shalt.err (!%p5476_p10)
}
  0x1b   :  { %s5480_s29 = scalar_lea.vmem %s5618_s30, 8192  ;;  %p5485_p12 = scmp.lt.s32.totalorder %s5618_s30, %s5618_s30 }
  0x1c   :  { %p5481_p11 = scmp.ne.s32.totalorder %s5618_s30, %s5480_s29  ;;  %p5486_p13 = scmp.lt.s32.totalorder %s5480_s29, %s5480_s29 }
  0x1e   :  { %p5487_p0 = por %p5486_p13, %p5485_p12 }
  0x20   :  { %p5488_p1 = pnand %p5487_p0, %p5481_p11 }
  0x22   :  { %5491 = shalt.err (!%p5488_p1)
}
  0x23   :  { %30 = dma.hbm_to_vmem [thread:$0]  %s6039_s1, 8192, %s5618_s30, [#allocation3], %s5568_s17, %s5568_s17, %s5569_s18  }
  0x24   :  { %s5570_s9 = smov [#allocation7]   ;;  %s5571_s11 = smov [#allocation8]  }
  0x25   :  { %s48_s10 = sshll.u32 %s5570_s9, 4  ;;  %s60_s12 = sshll.u32 %s5571_s11, 4  ;;  %s49_s10 = int_to_ptr.vmem [resolvable:$true] %s48_s10  ;;  %s5655_s12 = int_to_ptr.vmem [resolvable:$true] %s60_s12 }
  0x26   :  { %s5492_s15 = scalar_lea.hbm %s6041_s3, 16384 }
  0x27   :  { %p5493_p2 = scmp.ne.s32.totalorder %s6041_s3, %s5492_s15  ;;  %p5496_p3 = scmp.lt.u32.totalorder %s5492_s15, %s6041_s3 }
  0x29   :  { %p5498_p4 = pnand %p5496_p3, %p5493_p2 }
  0x2b   :  { %5501 = shalt.err (!%p5498_p4)
}
  0x2c   :  { %s5502_s1 = scalar_lea.vmem %s49_s10, 16384  ;;  %p5507_p6 = scmp.lt.s32.totalorder %s49_s10, %s49_s10 }
  0x2d   :  { %p5503_p5 = scmp.ne.s32.totalorder %s49_s10, %s5502_s1  ;;  %p5508_p7 = scmp.lt.s32.totalorder %s5502_s1, %s5502_s1 }
  0x2f   :  { %p5509_p8 = por %p5508_p7, %p5507_p6 }
  0x31   :  { %p5510_p9 = pnand %p5509_p8, %p5503_p5 }
  0x33   :  { %5513 = shalt.err (!%p5510_p9)
}
  0x34   :  { %54 = dma.hbm_to_vmem [thread:$0]  %s6041_s3, 16384, %s49_s10, [#allocation6], %s5568_s17, %s5568_s17, %s5569_s18  }
  0x35   :  { %s5514_s25 = scalar_lea.hbm %s6042_s4, 16384 }
  0x36   :  { %p5515_p10 = scmp.ne.s32.totalorder %s6042_s4, %s5514_s25  ;;  %p5518_p11 = scmp.lt.u32.totalorder %s5514_s25, %s6042_s4 }
  0x38   :  { %p5520_p12 = pnand %p5518_p11, %p5515_p10 }
  0x3a   :  { %5523 = shalt.err (!%p5520_p12)
}
  0x3b   :  { %s5524_s28 = scalar_lea.vmem %s5655_s12, 16384  ;;  %p5529_p0 = scmp.lt.s32.totalorder %s5655_s12, %s5655_s12 }
  0x3c   :  { %p5525_p13 = scmp.ne.s32.totalorder %s5655_s12, %s5524_s28  ;;  %p5530_p1 = scmp.lt.s32.totalorder %s5524_s28, %s5524_s28 }
  0x3e   :  { %p5531_p2 = por %p5530_p1, %p5529_p0 }
  0x40   :  { %p5532_p3 = pnand %p5531_p2, %p5525_p13 }
  0x42   :  { %5535 = shalt.err (!%p5532_p3)
}
  0x43   :  { %66 = dma.hbm_to_vmem [thread:$0]  %s6042_s4, 16384, %s5655_s12, [#allocation9], %s5568_s17, %s5568_s17, %s5569_s18  }
  0x44   :  { %5558 = dma.done.wait [#allocation3], 8192  }
  0x45   :  { %5559 = vsyncadd [#allocation3], 4294959104 }
  0x46   :  { %5560 = dma.done.wait [#allocation6], 32768  }
  0x47   :  { %5561 = vsyncadd [#allocation6], 4294934528 }
  0x48   :  { %5562 = dma.done.wait [#allocation9], 16384  }
  0x49   :  { %5563 = vsyncadd [#allocation9], 4294950912  ;;  %v4736_v0 = vld [vmem:[#allocation2 + $0x4] ss:$16 sps:$4 sm:$0xff]   ;;  %v4738_v1 = vld [vmem:[#allocation2 + $0xc] ss:$16 sps:$4 sm:$0xff]  }
  0x4a   :  { %500 = vmatprep.subr.bf16.mxu0 %v4736_v0  ;;  %v4740_v2 = vld [vmem:[#allocation2] ss:$16 sps:$4 sm:$0xff]   ;;  %v4741_v3 = vld [vmem:[#allocation2 + $0x8] ss:$16 sps:$4 sm:$0xff]   ;;  %541 = vmatprep.subr.bf16.mxu1 %v4738_v1  ;;  %v4742_v4 = vld [vmem:[#allocation2 + $0x24] ss:$16 sps:$4 sm:$0xff]  }
  0x4b   :  { %501 = vmatpush1.bf16.msra.mxu0 %v4740_v2  ;;  %542 = vmatpush1.bf16.msra.mxu1 %v4741_v3  ;;  %v4744_v5 = vld [vmem:[#allocation2 + $0x2c] ss:$16 sps:$4 sm:$0xff]   ;;  %v4746_v6 = vld [vmem:[#allocation2 + $0x20] ss:$16 sps:$4 sm:$0xff]   ;;  %v4747_v7 = vld [vmem:[#allocation2 + $0x28] ss:$16 sps:$4 sm:$0xff]  }
  0x4c   :  { %502 = vmatprep.subr.bf16.mxu0 %v4742_v4  ;;  %543 = vmatprep.subr.bf16.mxu1 %v4744_v5  ;;  %v4748_v8 = vld [vmem:[#allocation2 + $0x44] ss:$16 sps:$4 sm:$0xff]   ;;  %v4750_v9 = vld [vmem:[#allocation2 + $0x4c] ss:$16 sps:$4 sm:$0xff]   ;;  %v4752_v10 = vld [vmem:[#allocation2 + $0x40] ss:$16 sps:$4 sm:$0xff]   ;;  %v160_v4 = vlaneseq }
  0x4d   :  { %v4753_v11 = vld [vmem:[#allocation2 + $0x48] ss:$16 sps:$4 sm:$0xff]   ;;  %v4754_v12 = vld [vmem:[#allocation2 + $0x64] ss:$16 sps:$4 sm:$0xff]   ;;  %v4756_v13 = vld [vmem:[#allocation2 + $0x6c] ss:$16 sps:$4 sm:$0xff]  }
  0x4e   :  { %v4758_v14 = vld [vmem:[#allocation2 + $0x60] ss:$16 sps:$4 sm:$0xff]   ;;  %v4759_v15 = vld [vmem:[#allocation2 + $0x68] ss:$16 sps:$4 sm:$0xff]   ;;  %v4760_v16 = vld [vmem:[#allocation2 + $0x84] ss:$16 sps:$4 sm:$0xff]  }
  0x4f   :  { %503 = vmatpush1.bf16.msra.mxu0 %v4746_v6  ;;  %544 = vmatpush1.bf16.msra.mxu1 %v4747_v7  ;;  %v4762_v17 = vld [vmem:[#allocation2 + $0x8c] ss:$16 sps:$4 sm:$0xff]   ;;  %v4764_v18 = vld [vmem:[#allocation2 + $0x80] ss:$16 sps:$4 sm:$0xff]   ;;  %v4765_v19 = vld [vmem:[#allocation2 + $0x88] ss:$16 sps:$4 sm:$0xff]  }
  0x50   :  { %504 = vmatprep.subr.bf16.mxu0 %v4748_v8  ;;  %545 = vmatprep.subr.bf16.mxu1 %v4750_v9  ;;  %v4766_v20 = vld [vmem:[#allocation2 + $0xa4] ss:$16 sps:$4 sm:$0xff]   ;;  %v4768_v21 = vld [vmem:[#allocation2 + $0xac] ss:$16 sps:$4 sm:$0xff]   ;;  %v4770_v22 = vld [vmem:[#allocation2 + $0xa0] ss:$16 sps:$4 sm:$0xff]  }
  0x51   :  { %v4771_v23 = vld [vmem:[#allocation2 + $0xa8] ss:$16 sps:$4 sm:$0xff]   ;;  %v4772_v24 = vld [vmem:[#allocation2 + $0xc4] ss:$16 sps:$4 sm:$0xff]   ;;  %v4774_v25 = vld [vmem:[#allocation2 + $0xcc] ss:$16 sps:$4 sm:$0xff]  }
  0x52   :  { %v4776_v26 = vld [vmem:[#allocation2 + $0xc0] ss:$16 sps:$4 sm:$0xff]   ;;  %v4777_v27 = vld [vmem:[#allocation2 + $0xc8] ss:$16 sps:$4 sm:$0xff]   ;;  %v4778_v28 = vld [vmem:[#allocation2 + $0xe4] ss:$16 sps:$4 sm:$0xff]  }
  0x53   :  { %505 = vmatpush1.bf16.msra.mxu0 %v4752_v10  ;;  %546 = vmatpush1.bf16.msra.mxu1 %v4753_v11  ;;  %v4780_v29 = vld [vmem:[#allocation2 + $0xec] ss:$16 sps:$4 sm:$0xff]   ;;  %v4782_v30 = vld [vmem:[#allocation2 + $0xe0] ss:$16 sps:$4 sm:$0xff]   ;;  %v4783_v31 = vld [vmem:[#allocation2 + $0xe8] ss:$16 sps:$4 sm:$0xff]  }
  0x54   :  { %506 = vmatprep.subr.bf16.mxu0 %v4754_v12  ;;  %547 = vmatprep.subr.bf16.mxu1 %v4756_v13  ;;  %v4784_v32 = vld [vmem:[#allocation2 + $0x104] ss:$16 sps:$4 sm:$0xff]   ;;  %v4786_v33 = vld [vmem:[#allocation2 + $0x10c] ss:$16 sps:$4 sm:$0xff]   ;;  %v4788_v34 = vld [vmem:[#allocation2 + $0x100] ss:$16 sps:$4 sm:$0xff]  }
  0x55   :  { %v4789_v35 = vld [vmem:[#allocation2 + $0x108] ss:$16 sps:$4 sm:$0xff]   ;;  %v4790_v36 = vld [vmem:[#allocation2 + $0x124] ss:$16 sps:$4 sm:$0xff]   ;;  %v4792_v37 = vld [vmem:[#allocation2 + $0x12c] ss:$16 sps:$4 sm:$0xff]  }
  0x56   :  { %v4794_v38 = vld [vmem:[#allocation2 + $0x120] ss:$16 sps:$4 sm:$0xff]   ;;  %v4795_v39 = vld [vmem:[#allocation2 + $0x128] ss:$16 sps:$4 sm:$0xff]   ;;  %v4796_v40 = vld [vmem:[#allocation2 + $0x144] ss:$16 sps:$4 sm:$0xff]  }
  0x57   :  { %507 = vmatpush1.bf16.msra.mxu0 %v4758_v14  ;;  %548 = vmatpush1.bf16.msra.mxu1 %v4759_v15  ;;  %v4798_v41 = vld [vmem:[#allocation2 + $0x14c] ss:$16 sps:$4 sm:$0xff]   ;;  %v4800_v42 = vld [vmem:[#allocation2 + $0x140] ss:$16 sps:$4 sm:$0xff]   ;;  %v4801_v43 = vld [vmem:[#allocation2 + $0x148] ss:$16 sps:$4 sm:$0xff]  }
  0x58   :  { %508 = vmatprep.subr.bf16.mxu0 %v4760_v16  ;;  %549 = vmatprep.subr.bf16.mxu1 %v4762_v17  ;;  %v4802_v44 = vld [vmem:[#allocation2 + $0x164] ss:$16 sps:$4 sm:$0xff]   ;;  %v4804_v45 = vld [vmem:[#allocation2 + $0x16c] ss:$16 sps:$4 sm:$0xff]   ;;  %v4806_v46 = vld [vmem:[#allocation2 + $0x160] ss:$16 sps:$4 sm:$0xff]  }
  0x59   :  { %v4807_v47 = vld [vmem:[#allocation2 + $0x168] ss:$16 sps:$4 sm:$0xff]   ;;  %v4808_v49 = vld [vmem:[#allocation2 + $0x184] ss:$16 sps:$4 sm:$0xff]   ;;  %v4810_v50 = vld [vmem:[#allocation2 + $0x18c] ss:$16 sps:$4 sm:$0xff]  }
  0x5a   :  { %v87_v48 = vld [vmem:[%s6038_s0 + $0x8] sm:$0xff]  ;;  %v4812_v52 = vld [vmem:[#allocation2 + $0x180] ss:$16 sps:$4 sm:$0xff]   ;;  %v4814_v54 = vld [vmem:[#allocation2 + $0x1a4] ss:$16 sps:$4 sm:$0xff]   ;;  %v161_v5 = vshrl.u32 %v160_v4, 7 }
  0x5b   :  { %509 = vmatpush1.bf16.msra.mxu0 %v4764_v18  ;;  %550 = vmatpush1.bf16.msra.mxu1 %v4765_v19  ;;  %v89_v51 = vpack.c.bf16 %v87_v48, %v87_v48  ;;  %v4813_v53 = vld [vmem:[#allocation2 + $0x188] ss:$16 sps:$4 sm:$0xff]   ;;  %v4816_v55 = vld [vmem:[#allocation2 + $0x1ac] ss:$16 sps:$4 sm:$0xff]   ;;  %v4818_v56 = vld [vmem:[#allocation2 + $0x1a0] ss:$16 sps:$4 sm:$0xff]  }
  0x5c   :  { %510 = vmatprep.subr.bf16.mxu0 %v4766_v20  ;;  %551 = vmatprep.subr.bf16.mxu1 %v4768_v21  ;;  %v4819_v57 = vld [vmem:[#allocation2 + $0x1a8] ss:$16 sps:$4 sm:$0xff]   ;;  %v4820_v58 = vld [vmem:[#allocation2 + $0x1c4] ss:$16 sps:$4 sm:$0xff]   ;;  %v4822_v59 = vld [vmem:[#allocation2 + $0x1cc] ss:$16 sps:$4 sm:$0xff]  }
  0x5d   :  { %532 = vmatprep.mubr.bf16.mxu0 %v89_v51  ;;  %573 = vmatprep.mubr.bf16.mxu1 %v89_v51  ;;  %v4824_v60 = vld [vmem:[#allocation2 + $0x1c0] ss:$16 sps:$4 sm:$0xff]   ;;  %v4825_v61 = vld [vmem:[#allocation2 + $0x1c8] ss:$16 sps:$4 sm:$0xff]   ;;  %v4826_v62 = vld [vmem:[#allocation2 + $0x1e4] ss:$16 sps:$4 sm:$0xff]  }
  0x5e   :  { %v4828_v63 = vld [vmem:[#allocation2 + $0x1ec] ss:$16 sps:$4 sm:$0xff]   ;;  %v4830_v0 = vld [vmem:[#allocation2 + $0x1e0] ss:$16 sps:$4 sm:$0xff]   ;;  %v4831_v1 = vld [vmem:[#allocation2 + $0x1e8] ss:$16 sps:$4 sm:$0xff]  }
  0x5f   :  { %511 = vmatpush1.bf16.msra.mxu0 %v4770_v22  ;;  %552 = vmatpush1.bf16.msra.mxu1 %v4771_v23  ;;  %v86_v2 = vld [vmem:[%s6038_s0] sm:$0xff]  ;;  %v5698_v6 = vsub.s32 0, %v161_v5  ;;  %v5703_v8 = vsub.s32 2, %v161_v5  ;;  %v5705_v9 = vsub.s32 1, %v161_v5  ;;  %v5710_v13 = vsub.s32 3, %v161_v5  ;;  %s5572_s19 = smov [#allocation10]  }
  0x60   :  { %512 = vmatprep.subr.bf16.mxu0 %v4772_v24  ;;  %553 = vmatprep.subr.bf16.mxu1 %v4774_v25  ;;  %v88_v3 = vpack.c.bf16 %v86_v2, %v86_v2  ;;  %v154_v7 = vld [vmem:[%s6044_s6] ss:$8 sm:$0xf]  ;;  %v4867_v51 = vld [vmem:[#allocation5 + $0xac] ss:$16 sps:$4 sm:$0xff]   ;;  %s4146_s20 = sshll.u32 %s5572_s19, 4  ;;  %s4147_s20 = int_to_ptr.vmem [resolvable:$true] %s4146_s20 }
  0x61   :  { %v163_v10 = vrot.slane %v154_v7, %v5698_v6  ;;  %v171_v11 = vrot.slane %v154_v7, %v5703_v8  ;;  %v167_v12 = vrot.slane %v154_v7, %v5705_v9  ;;  %v175_v21 = vrot.slane %v154_v7, %v5710_v13  ;;  %v4856_v48 = vld [vmem:[#allocation5 + $0x80] ss:$16 sps:$4 sm:$0xff]   ;;  %v4888_v2 = vld [vmem:[#allocation5 + $0x124] ss:$16 sps:$4 sm:$0xff]   ;;  %v4889_v5 = vld [vmem:[#allocation5 + $0x128] ss:$16 sps:$4 sm:$0xff]   ;;  %p5541_p5 = scmp.lt.s32.totalorder %s4147_s20, %s4147_s20 }
  0x62   :  { %v4886_v4 = vld [vmem:[#allocation5 + $0x120] ss:$16 sps:$4 sm:$0xff]   ;;  %vm4138_vm0 = vcmask 261120   ;;  %s5536_s21 = scalar_lea.vmem %s4147_s20, 128 }
  0x63   :  { %513 = vmatpush1.bf16.msra.mxu0 %v4776_v26  ;;  %554 = vmatpush1.bf16.msra.mxu1 %v4777_v27  ;;  %p5537_p4 = scmp.ne.s32.totalorder %s4147_s20, %s5536_s21  ;;  %p5542_p6 = scmp.lt.s32.totalorder %s5536_s21, %s5536_s21 }
  0x64   :  { %514 = vmatprep.subr.bf16.mxu0 %v4778_v28  ;;  %555 = vmatprep.subr.bf16.mxu1 %v4780_v29 }
  0x65   :  { %p5543_p7 = por %p5542_p6, %p5541_p5 }
  0x67   :  { %515 = vmatpush1.bf16.msra.mxu0 %v4782_v30  ;;  %556 = vmatpush1.bf16.msra.mxu1 %v4783_v31  ;;  %v4832_v30 = vld [vmem:[#allocation5] ss:$16 sps:$4 sm:$0xff]   ;;  %v4834_v31 = vld [vmem:[#allocation5 + $0x4] ss:$16 sps:$4 sm:$0xff]   ;;  %p5544_p8 = pnand %p5543_p7, %p5537_p4 }
  0x68   :  { %516 = vmatprep.subr.bf16.mxu0 %v4784_v32  ;;  %557 = vmatprep.subr.bf16.mxu1 %v4786_v33  ;;  %v4835_v32 = vld [vmem:[#allocation5 + $0x8] ss:$16 sps:$4 sm:$0xff]   ;;  %v4837_v33 = vld [vmem:[#allocation5 + $0xc] ss:$16 sps:$4 sm:$0xff]  }
  0x6b   :  { %517 = vmatpush1.bf16.msra.mxu0 %v4788_v34  ;;  %558 = vmatpush1.bf16.msra.mxu1 %v4789_v35  ;;  %v4840_v34 = vld [vmem:[#allocation5 + $0x24] ss:$16 sps:$4 sm:$0xff]   ;;  %v4843_v35 = vld [vmem:[#allocation5 + $0x2c] ss:$16 sps:$4 sm:$0xff]  }
  0x6c   :  { %518 = vmatprep.subr.bf16.mxu0 %v4790_v36  ;;  %559 = vmatprep.subr.bf16.mxu1 %v4792_v37  ;;  %v4838_v36 = vld [vmem:[#allocation5 + $0x20] ss:$16 sps:$4 sm:$0xff]   ;;  %v4841_v37 = vld [vmem:[#allocation5 + $0x28] ss:$16 sps:$4 sm:$0xff]  }
  0x6f   :  { %519 = vmatpush1.bf16.msra.mxu0 %v4794_v38  ;;  %560 = vmatpush1.bf16.msra.mxu1 %v4795_v39  ;;  %v4846_v38 = vld [vmem:[#allocation5 + $0x44] ss:$16 sps:$4 sm:$0xff]   ;;  %v4849_v39 = vld [vmem:[#allocation5 + $0x4c] ss:$16 sps:$4 sm:$0xff]  }
  0x70   :  { %520 = vmatprep.subr.bf16.mxu0 %v4796_v40  ;;  %561 = vmatprep.subr.bf16.mxu1 %v4798_v41  ;;  %v4844_v40 = vld [vmem:[#allocation5 + $0x40] ss:$16 sps:$4 sm:$0xff]   ;;  %v4847_v41 = vld [vmem:[#allocation5 + $0x48] ss:$16 sps:$4 sm:$0xff]  }
  0x73   :  { %521 = vmatpush1.bf16.msra.mxu0 %v4800_v42  ;;  %562 = vmatpush1.bf16.msra.mxu1 %v4801_v43  ;;  %v4852_v42 = vld [vmem:[#allocation5 + $0x64] ss:$16 sps:$4 sm:$0xff]   ;;  %v4855_v43 = vld [vmem:[#allocation5 + $0x6c] ss:$16 sps:$4 sm:$0xff]  }
  0x74   :  { %522 = vmatprep.subr.bf16.mxu0 %v4802_v44  ;;  %563 = vmatprep.subr.bf16.mxu1 %v4804_v45  ;;  %v4850_v44 = vld [vmem:[#allocation5 + $0x60] ss:$16 sps:$4 sm:$0xff]   ;;  %v4853_v45 = vld [vmem:[#allocation5 + $0x68] ss:$16 sps:$4 sm:$0xff]  }
  0x77   :  { %523 = vmatpush1.bf16.msra.mxu0 %v4806_v46  ;;  %564 = vmatpush1.bf16.msra.mxu1 %v4807_v47  ;;  %v4858_v46 = vld [vmem:[#allocation5 + $0x84] ss:$16 sps:$4 sm:$0xff]   ;;  %v4861_v47 = vld [vmem:[#allocation5 + $0x8c] ss:$16 sps:$4 sm:$0xff]  }
  0x78   :  { %524 = vmatprep.subr.bf16.mxu0 %v4808_v49  ;;  %565 = vmatprep.subr.bf16.mxu1 %v4810_v50  ;;  %v4859_v49 = vld [vmem:[#allocation5 + $0x88] ss:$16 sps:$4 sm:$0xff]   ;;  %v4864_v50 = vld [vmem:[#allocation5 + $0xa4] ss:$16 sps:$4 sm:$0xff]  }
  0x7b   :  { %525 = vmatpush1.bf16.msra.mxu0 %v4812_v52  ;;  %566 = vmatpush1.bf16.msra.mxu1 %v4813_v53  ;;  %v4862_v52 = vld [vmem:[#allocation5 + $0xa0] ss:$16 sps:$4 sm:$0xff]   ;;  %v4865_v53 = vld [vmem:[#allocation5 + $0xa8] ss:$16 sps:$4 sm:$0xff]  }
  0x7c   :  { %526 = vmatprep.subr.bf16.mxu0 %v4814_v54  ;;  %567 = vmatprep.subr.bf16.mxu1 %v4816_v55  ;;  %v4870_v54 = vld [vmem:[#allocation5 + $0xc4] ss:$16 sps:$4 sm:$0xff]   ;;  %v4873_v55 = vld [vmem:[#allocation5 + $0xcc] ss:$16 sps:$4 sm:$0xff]  }
  0x7f   :  { %527 = vmatpush1.bf16.msra.mxu0 %v4818_v56  ;;  %568 = vmatpush1.bf16.msra.mxu1 %v4819_v57  ;;  %v4868_v56 = vld [vmem:[#allocation5 + $0xc0] ss:$16 sps:$4 sm:$0xff]   ;;  %v4871_v57 = vld [vmem:[#allocation5 + $0xc8] ss:$16 sps:$4 sm:$0xff]  }
  0x80   :  { %528 = vmatprep.subr.bf16.mxu0 %v4820_v58  ;;  %569 = vmatprep.subr.bf16.mxu1 %v4822_v59  ;;  %v4876_v58 = vld [vmem:[#allocation5 + $0xe4] ss:$16 sps:$4 sm:$0xff]   ;;  %v4879_v59 = vld [vmem:[#allocation5 + $0xec] ss:$16 sps:$4 sm:$0xff]  }
  0x83   :  { %529 = vmatpush1.bf16.msra.mxu0 %v4824_v60  ;;  %570 = vmatpush1.bf16.msra.mxu1 %v4825_v61  ;;  %v4874_v60 = vld [vmem:[#allocation5 + $0xe0] ss:$16 sps:$4 sm:$0xff]   ;;  %v4877_v61 = vld [vmem:[#allocation5 + $0xe8] ss:$16 sps:$4 sm:$0xff]  }
  0x84   :  { %530 = vmatprep.subr.bf16.mxu0 %v4826_v62  ;;  %571 = vmatprep.subr.bf16.mxu1 %v4828_v63  ;;  %v4882_v62 = vld [vmem:[#allocation5 + $0x104] ss:$16 sps:$4 sm:$0xff]   ;;  %v4885_v63 = vld [vmem:[#allocation5 + $0x10c] ss:$16 sps:$4 sm:$0xff]  }
  0x87   :  { %531 = vmatpush1.bf16.msra.mxu0 %v4830_v0  ;;  %572 = vmatpush1.bf16.msra.mxu1 %v4831_v1  ;;  %v4880_v0 = vld [vmem:[#allocation5 + $0x100] ss:$16 sps:$4 sm:$0xff]   ;;  %v4883_v1 = vld [vmem:[#allocation5 + $0x108] ss:$16 sps:$4 sm:$0xff]  }
  0x88   :  { %1461 = vmatprep.subr.bf16.mxu0 %v4834_v31  ;;  %1543 = vmatprep.subr.bf16.mxu1 %v4837_v33  ;;  %v4906_v31 = vld [vmem:[#allocation5 + $0x184] ss:$16 sps:$4 sm:$0xff]   ;;  %v4904_v33 = vld [vmem:[#allocation5 + $0x180] ss:$16 sps:$4 sm:$0xff]  }
  0x8a   :  { %533 = vmatmul.mubr.bf16.vlgmr.msra.gmra.mrb[0].mxu0 %v88_v3  ;;  %574 = vmatmul.mubr.bf16.vlgmr.msra.gmra.mrb[0].mxu1 %v88_v3  ;;  %v4891_v3 = vld [vmem:[#allocation5 + $0x12c] ss:$16 sps:$4 sm:$0xff]  }
  0x8b   :  { %1462 = vmatpush1.bf16.msra.mxu0 %v4832_v30  ;;  %1544 = vmatpush1.bf16.msra.mxu1 %v4835_v32  ;;  %v4901_v30 = vld [vmem:[#allocation5 + $0x168] ss:$16 sps:$4 sm:$0xff]   ;;  %v4909_v32 = vld [vmem:[#allocation5 + $0x18c] ss:$16 sps:$4 sm:$0xff]  }
  0x8c   :  { %1463 = vmatprep.subr.bf16.mxu0 %v4840_v34  ;;  %1545 = vmatprep.subr.bf16.mxu1 %v4843_v35  ;;  %v4907_v34 = vld [vmem:[#allocation5 + $0x188] ss:$16 sps:$4 sm:$0xff]   ;;  %v4912_v35 = vld [vmem:[#allocation5 + $0x1a4] ss:$16 sps:$4 sm:$0xff]  }
  0x8f   :  { %1464 = vmatpush1.bf16.msra.mxu0 %v4838_v36  ;;  %1546 = vmatpush1.bf16.msra.mxu1 %v4841_v37  ;;  %v4915_v36 = vld [vmem:[#allocation5 + $0x1ac] ss:$16 sps:$4 sm:$0xff]   ;;  %v4910_v37 = vld [vmem:[#allocation5 + $0x1a0] ss:$16 sps:$4 sm:$0xff]  }
  0x90   :  { %1465 = vmatprep.subr.bf16.mxu0 %v4846_v38  ;;  %1547 = vmatprep.subr.bf16.mxu1 %v4849_v39  ;;  %v4913_v38 = vld [vmem:[#allocation5 + $0x1a8] ss:$16 sps:$4 sm:$0xff]   ;;  %v4918_v39 = vld [vmem:[#allocation5 + $0x1c4] ss:$16 sps:$4 sm:$0xff]  }
  0x93   :  { %1466 = vmatpush1.bf16.msra.mxu0 %v4844_v40  ;;  %1548 = vmatpush1.bf16.msra.mxu1 %v4847_v41  ;;  %v4921_v40 = vld [vmem:[#allocation5 + $0x1cc] ss:$16 sps:$4 sm:$0xff]   ;;  %v4916_v41 = vld [vmem:[#allocation5 + $0x1c0] ss:$16 sps:$4 sm:$0xff]  }
  0x94   :  { %1467 = vmatprep.subr.bf16.mxu0 %v4852_v42  ;;  %1549 = vmatprep.subr.bf16.mxu1 %v4855_v43  ;;  %v4919_v42 = vld [vmem:[#allocation5 + $0x1c8] ss:$16 sps:$4 sm:$0xff]   ;;  %v4924_v43 = vld [vmem:[#allocation5 + $0x1e4] ss:$16 sps:$4 sm:$0xff]  }
  0x97   :  { %1468 = vmatpush1.bf16.msra.mxu0 %v4850_v44  ;;  %1550 = vmatpush1.bf16.msra.mxu1 %v4853_v45  ;;  %v4927_v44 = vld [vmem:[#allocation5 + $0x1ec] ss:$16 sps:$4 sm:$0xff]   ;;  %v4922_v45 = vld [vmem:[#allocation5 + $0x1e0] ss:$16 sps:$4 sm:$0xff]  }
  0x98   :  { %1469 = vmatprep.subr.bf16.mxu0 %v4858_v46  ;;  %1551 = vmatprep.subr.bf16.mxu1 %v4861_v47  ;;  %v4925_v46 = vld [vmem:[#allocation5 + $0x1e8] ss:$16 sps:$4 sm:$0xff]   ;;  %v4930_v47 = vld [vmem:[#allocation5 + $0x204] ss:$16 sps:$4 sm:$0xff]  }
  0x9b   :  { %1470 = vmatpush1.bf16.msra.mxu0 %v4856_v48  ;;  %1552 = vmatpush1.bf16.msra.mxu1 %v4859_v49  ;;  %v4933_v48 = vld [vmem:[#allocation5 + $0x20c] ss:$16 sps:$4 sm:$0xff]  }
  0x9c   :  { %1471 = vmatprep.subr.bf16.mxu0 %v4864_v50  ;;  %1553 = vmatprep.subr.bf16.mxu1 %v4867_v51 }
  0x9f   :  { %1472 = vmatpush1.bf16.msra.mxu0 %v4862_v52  ;;  %1554 = vmatpush1.bf16.msra.mxu1 %v4865_v53  ;;  %v4157_v52 = vld [vmem:[%s6044_s6 + $0x1] ss:$8 sm:$0xf]  ;;  %v4158_v53 = vld [vmem:[%s6044_s6 + $0x2] ss:$8 sm:$0xf] }
  0xa0   :  { %1473 = vmatprep.subr.bf16.mxu0 %v4870_v54  ;;  %1555 = vmatprep.subr.bf16.mxu1 %v4873_v55  ;;  %v612_v54 = vrot.slane %v4157_v52, %v5705_v9  ;;  %v608_v55 = vrot.slane %v4157_v52, %v5698_v6 }
  0xa3   :  { %1474 = vmatpush1.bf16.msra.mxu0 %v4868_v56  ;;  %1556 = vmatpush1.bf16.msra.mxu1 %v4871_v57  ;;  %v620_v56 = vrot.slane %v4157_v52, %v5710_v13  ;;  %v616_v57 = vrot.slane %v4157_v52, %v5703_v8  ;;  %v4981_v52 = vld [vmem:[#allocation5 + $0x30c] ss:$16 sps:$4 sm:$0xff]  }
  0xa4   :  { %1475 = vmatprep.subr.bf16.mxu0 %v4876_v58  ;;  %1557 = vmatprep.subr.bf16.mxu1 %v4879_v59  ;;  %v641_v59 = vrot.slane %v4158_v53, %v5705_v9 }
  0xa7   :  { %1476 = vmatpush1.bf16.msra.mxu0 %v4874_v60  ;;  %1558 = vmatpush1.bf16.msra.mxu1 %v4877_v61  ;;  %v637_v60 = vrot.slane %v4158_v53, %v5698_v6  ;;  %v649_v61 = vrot.slane %v4158_v53, %v5710_v13 }
  0xa8   :  { %1477 = vmatprep.subr.bf16.mxu0 %v4882_v62  ;;  %1559 = vmatprep.subr.bf16.mxu1 %v4885_v63  ;;  %v645_v62 = vrot.slane %v4158_v53, %v5703_v8  ;;  %v4976_v53 = vld [vmem:[#allocation5 + $0x300] ss:$16 sps:$4 sm:$0xff]  }
  0xab   :  { %1478 = vmatpush1.bf16.msra.mxu0 %v4880_v0  ;;  %1560 = vmatpush1.bf16.msra.mxu1 %v4883_v1 }
  0xac   :  { %1479 = vmatprep.subr.bf16.mxu0 %v4888_v2  ;;  %1561 = vmatprep.subr.bf16.mxu1 %v4891_v3 }
  0xaf   :  { %1480 = vmatpush1.bf16.msra.mxu0 %v4886_v4  ;;  %1562 = vmatpush1.bf16.msra.mxu1 %v4889_v5 }
 0x15d   :  { %v534_v14 = vpop.f32.mrb[0].mxu0  ;;  %v575_v15 = vpop.f32.mrb[0].mxu1 }
 0x15e   :  { %v5712_v16 = vadd.f32 %v534_v14, %v163_v10  ;;  %v536_v17 = vpop.f32.mrb[1].mxu0  ;;  %v577_v18 = vpop.f32.mrb[1].mxu1  ;;  %v5714_v19 = vadd.f32 %v575_v15, %v171_v11 }
 0x15f   :  { %v5716_v20 = vadd.f32 %v536_v17, %v167_v12  ;;  %v538_v22 = vpop.f32.mrb[2].mxu0  ;;  %v579_v23 = vpop.f32.mrb[2].mxu1  ;;  %v5721_v27 = vadd.f32 %v577_v18, %v175_v21 }
 0x160   :  { %v539_v24 = vpop.f32.mrb[3].mxu0  ;;  %v580_v25 = vpop.f32.mrb[3].mxu1 }
 0x161   :  { %v582_v26 = vadd.f32 %v5716_v20, %v5712_v16  ;;  %v4897_v24 = vld [vmem:[#allocation5 + $0x14c] ss:$16 sps:$4 sm:$0xff]   ;;  %v4892_v25 = vld [vmem:[#allocation5 + $0x140] ss:$16 sps:$4 sm:$0xff]  }
 0x162   :  { %1563 = vmatprep.subr.bf16.mxu1 %v4897_v24  ;;  %v4931_v24 = vld [vmem:[#allocation5 + $0x208] ss:$16 sps:$4 sm:$0xff]  }
 0x163   :  { %v583_v28 = vadd.f32 %v582_v26, %v5714_v19  ;;  %v4895_v26 = vld [vmem:[#allocation5 + $0x148] ss:$16 sps:$4 sm:$0xff]  }
 0x164   :  { %1564 = vmatpush1.bf16.msra.mxu1 %v4895_v26  ;;  %v4937_v26 = vld [vmem:[#allocation5 + $0x228] ss:$16 sps:$4 sm:$0xff]  }
 0x165   :  { %v584_v29 = vadd.f32 %v583_v28, %v5721_v27  ;;  %v4903_v28 = vld [vmem:[#allocation5 + $0x16c] ss:$16 sps:$4 sm:$0xff]  }
 0x166   :  { %1565 = vmatprep.subr.bf16.mxu1 %v4903_v28  ;;  %v4945_v28 = vld [vmem:[#allocation5 + $0x24c] ss:$16 sps:$4 sm:$0xff]  }
 0x167   :  { %585 = vadd.xlane.f32.xlu0 %v584_v29  ;;  %v4898_v29 = vld [vmem:[#allocation5 + $0x160] ss:$16 sps:$4 sm:$0xff]  }
 0x168   :  { %1566 = vmatpush1.bf16.msra.mxu1 %v4901_v30  ;;  %v4943_v30 = vld [vmem:[#allocation5 + $0x248] ss:$16 sps:$4 sm:$0xff]  }
 0x169   :  { %1567 = vmatprep.subr.bf16.mxu1 %v4909_v32  ;;  %v4951_v32 = vld [vmem:[#allocation5 + $0x26c] ss:$16 sps:$4 sm:$0xff]  }
 0x16c   :  { %1568 = vmatpush1.bf16.msra.mxu1 %v4907_v34  ;;  %v4949_v34 = vld [vmem:[#allocation5 + $0x268] ss:$16 sps:$4 sm:$0xff]  }
 0x16d   :  { %1569 = vmatprep.subr.bf16.mxu1 %v4915_v36  ;;  %v4957_v36 = vld [vmem:[#allocation5 + $0x28c] ss:$16 sps:$4 sm:$0xff]  }
 0x170   :  { %1570 = vmatpush1.bf16.msra.mxu1 %v4913_v38  ;;  %v4955_v38 = vld [vmem:[#allocation5 + $0x288] ss:$16 sps:$4 sm:$0xff]  }
 0x171   :  { %1571 = vmatprep.subr.bf16.mxu1 %v4921_v40  ;;  %v4963_v40 = vld [vmem:[#allocation5 + $0x2ac] ss:$16 sps:$4 sm:$0xff]  }
 0x174   :  { %1572 = vmatpush1.bf16.msra.mxu1 %v4919_v42  ;;  %v4961_v42 = vld [vmem:[#allocation5 + $0x2a8] ss:$16 sps:$4 sm:$0xff]  }
 0x175   :  { %1573 = vmatprep.subr.bf16.mxu1 %v4927_v44  ;;  %v4969_v44 = vld [vmem:[#allocation5 + $0x2cc] ss:$16 sps:$4 sm:$0xff]  }
 0x178   :  { %1574 = vmatpush1.bf16.msra.mxu1 %v4925_v46  ;;  %v4967_v46 = vld [vmem:[#allocation5 + $0x2c8] ss:$16 sps:$4 sm:$0xff]  }
 0x179   :  { %1584 = vmatprep.subr.bf16.mxu1 %v4933_v48  ;;  %v4975_v48 = vld [vmem:[#allocation5 + $0x2ec] ss:$16 sps:$4 sm:$0xff]  }
 0x1f4   :  { %v586_v7 = vpop.xlane.xlu0 %585 }
 0x1f5   :  { %v587_v10 = vmul.f32 0.001953125, %v586_v7 }
 0x1f7   :  { %v5726_v11 = vsub.f32 %v5712_v16, %v587_v10  ;;  %v5729_v12 = vsub.f32 %v5716_v20, %v587_v10  ;;  %v5732_v14 = vsub.f32 %v5714_v19, %v587_v10  ;;  %v5735_v15 = vsub.f32 %v5721_v27, %v587_v10  ;;  %v4894_v19 = vld [vmem:[#allocation5 + $0x144] ss:$16 sps:$4 sm:$0xff]  }
 0x1f8   :  { %1481 = vmatprep.subr.bf16.mxu0 %v4894_v19  ;;  %v4900_v27 = vld [vmem:[#allocation5 + $0x164] ss:$16 sps:$4 sm:$0xff]   ;;  %v4928_v19 = vld [vmem:[#allocation5 + $0x200] ss:$16 sps:$4 sm:$0xff]  }
 0x1f9   :  { %v592_v17 = vmul.f32 %v5726_v11, %v5726_v11  ;;  %v593_v18 = vmul.f32 %v5729_v12, %v5729_v12  ;;  %v594_v21 = vmul.f32 %v5732_v14, %v5732_v14  ;;  %v595_v20 = vmul.f32 %v5735_v15, %v5735_v15  ;;  %1482 = vmatpush1.bf16.msra.mxu0 %v4892_v25 }
 0x1fa   :  { %1483 = vmatprep.subr.bf16.mxu0 %v4900_v27  ;;  %v4942_v27 = vld [vmem:[#allocation5 + $0x244] ss:$16 sps:$4 sm:$0xff]  }
 0x1fb   :  { %v596_v16 = vadd.f32 %v593_v18, %v592_v17 }
 0x1fd   :  { %v597_v22 = vadd.f32 %v596_v16, %v594_v21  ;;  %1484 = vmatpush1.bf16.msra.mxu0 %v4898_v29  ;;  %v4940_v29 = vld [vmem:[#allocation5 + $0x240] ss:$16 sps:$4 sm:$0xff]  }
 0x1fe   :  { %1485 = vmatprep.subr.bf16.mxu0 %v4906_v31  ;;  %v4948_v31 = vld [vmem:[#allocation5 + $0x264] ss:$16 sps:$4 sm:$0xff]  }
 0x1ff   :  { %v598_v23 = vadd.f32 %v597_v22, %v595_v20 }
 0x201   :  { %599 = vadd.xlane.f32.xlu0 %v598_v23  ;;  %1486 = vmatpush1.bf16.msra.mxu0 %v4904_v33  ;;  %v4946_v33 = vld [vmem:[#allocation5 + $0x260] ss:$16 sps:$4 sm:$0xff]  }
 0x202   :  { %1487 = vmatprep.subr.bf16.mxu0 %v4912_v35  ;;  %v4954_v35 = vld [vmem:[#allocation5 + $0x284] ss:$16 sps:$4 sm:$0xff]  }
 0x205   :  { %1488 = vmatpush1.bf16.msra.mxu0 %v4910_v37  ;;  %v4952_v37 = vld [vmem:[#allocation5 + $0x280] ss:$16 sps:$4 sm:$0xff]  }
 0x206   :  { %1489 = vmatprep.subr.bf16.mxu0 %v4918_v39  ;;  %v4960_v39 = vld [vmem:[#allocation5 + $0x2a4] ss:$16 sps:$4 sm:$0xff]  }
 0x209   :  { %1490 = vmatpush1.bf16.msra.mxu0 %v4916_v41  ;;  %v4958_v41 = vld [vmem:[#allocation5 + $0x2a0] ss:$16 sps:$4 sm:$0xff]  }
 0x20a   :  { %1491 = vmatprep.subr.bf16.mxu0 %v4924_v43  ;;  %v4966_v43 = vld [vmem:[#allocation5 + $0x2c4] ss:$16 sps:$4 sm:$0xff]  }
 0x20d   :  { %1492 = vmatpush1.bf16.msra.mxu0 %v4922_v45  ;;  %v4964_v45 = vld [vmem:[#allocation5 + $0x2c0] ss:$16 sps:$4 sm:$0xff]  }
 0x20e   :  { %1502 = vmatprep.subr.bf16.mxu0 %v4930_v47  ;;  %v4972_v47 = vld [vmem:[#allocation5 + $0x2e4] ss:$16 sps:$4 sm:$0xff]  }
 0x28e   :  { %v600_v49 = vpop.xlane.xlu0 %599 }
 0x28f   :  { %v601_v50 = vmul.f32 0.001953125, %v600_v49  ;;  %v4970_v49 = vld [vmem:[#allocation5 + $0x2e0] ss:$16 sps:$4 sm:$0xff]  }
 0x291   :  { %v602_v51 = vadd.f32 1e-05, %v601_v50  ;;  %v4973_v50 = vld [vmem:[#allocation5 + $0x2e8] ss:$16 sps:$4 sm:$0xff]  }
 0x293   :  { %5440 = vrsqrt.f32 %v602_v51  ;;  %v4978_v51 = vld [vmem:[#allocation5 + $0x304] ss:$16 sps:$4 sm:$0xff]  }
 0x29d   :  { %v5441_v58 = vpop.eup %5440 }
 0x29e   :  { %v626_v63 = vmul.f32 %v5441_v58, %v612_v54  ;;  %v625_v0 = vmul.f32 %v5441_v58, %v608_v55  ;;  %v628_v1 = vmul.f32 %v5441_v58, %v620_v56  ;;  %v627_v2 = vmul.f32 %v5441_v58, %v616_v57  ;;  %v4979_v54 = vld [vmem:[#allocation5 + $0x308] ss:$16 sps:$4 sm:$0xff]   ;;  %v4984_v55 = vld [vmem:[#allocation5 + $0x324] ss:$16 sps:$4 sm:$0xff]   ;;  %v4987_v56 = vld [vmem:[#allocation5 + $0x32c] ss:$16 sps:$4 sm:$0xff]  }
 0x29f   :  { %v4982_v57 = vld [vmem:[#allocation5 + $0x320] ss:$16 sps:$4 sm:$0xff]   ;;  %v4985_v58 = vld [vmem:[#allocation5 + $0x328] ss:$16 sps:$4 sm:$0xff]  }
 0x2a0   :  { %v630_v3 = vmul.f32 %v626_v63, %v5729_v12  ;;  %v629_v4 = vmul.f32 %v625_v0, %v5726_v11  ;;  %v632_v5 = vmul.f32 %v628_v1, %v5735_v15  ;;  %v631_v7 = vmul.f32 %v627_v2, %v5732_v14  ;;  %v4936_v12 = vld [vmem:[#allocation5 + $0x224] ss:$16 sps:$4 sm:$0xff]   ;;  %v4939_v11 = vld [vmem:[#allocation5 + $0x22c] ss:$16 sps:$4 sm:$0xff]   ;;  %v4934_v14 = vld [vmem:[#allocation5 + $0x220] ss:$16 sps:$4 sm:$0xff]  }
 0x2a1   :  { %v4996_v63 = vld [vmem:[#allocation5 + $0x364] ss:$16 sps:$4 sm:$0xff]   ;;  %v4999_v0 = vld [vmem:[#allocation5 + $0x36c] ss:$16 sps:$4 sm:$0xff]   ;;  %v4994_v1 = vld [vmem:[#allocation5 + $0x360] ss:$16 sps:$4 sm:$0xff]  }
 0x2a2   :  { %v655_v10 = vadd.f32 %v641_v59, %v630_v3  ;;  %v654_v17 = vadd.f32 %v637_v60, %v629_v4  ;;  %v657_v18 = vadd.f32 %v649_v61, %v632_v5  ;;  %v5763_v21 = vadd.f32 %v645_v62, %v631_v7  ;;  %v4990_v59 = vld [vmem:[#allocation5 + $0x344] ss:$16 sps:$4 sm:$0xff]   ;;  %v4993_v60 = vld [vmem:[#allocation5 + $0x34c] ss:$16 sps:$4 sm:$0xff]   ;;  %v4988_v61 = vld [vmem:[#allocation5 + $0x340] ss:$16 sps:$4 sm:$0xff]  }
 0x2a3   :  { %v4991_v62 = vld [vmem:[#allocation5 + $0x348] ss:$16 sps:$4 sm:$0xff]   ;;  %v5002_v3 = vld [vmem:[#allocation5 + $0x384] ss:$16 sps:$4 sm:$0xff]   ;;  %v5005_v4 = vld [vmem:[#allocation5 + $0x38c] ss:$16 sps:$4 sm:$0xff]  }
 0x2a4   :  { %v659_v16 = vmax.f32 %v655_v10, 0.0  ;;  %v658_v20 = vmax.f32 %v654_v17, 0.0  ;;  %v661_v22 = vmax.f32 %v657_v18, 0.0  ;;  %v4997_v2 = vld [vmem:[#allocation5 + $0x368] ss:$16 sps:$4 sm:$0xff]  }
 0x2a5   :  { %v5000_v5 = vld [vmem:[#allocation5 + $0x380] ss:$16 sps:$4 sm:$0xff]   ;;  %v5003_v7 = vld [vmem:[#allocation5 + $0x388] ss:$16 sps:$4 sm:$0xff]   ;;  %v5008_v10 = vld [vmem:[#allocation5 + $0x3a4] ss:$16 sps:$4 sm:$0xff]  }
 0x2a6   :  { %v663_v23 = vpack.c.bf16 %v659_v16, %v659_v16  ;;  %v662_v25 = vpack.c.bf16 %v658_v20, %v658_v20  ;;  %v665_v15 = vpack.c.bf16 %v661_v22, %v661_v22  ;;  %v5011_v17 = vld [vmem:[#allocation5 + $0x3ac] ss:$16 sps:$4 sm:$0xff]   ;;  %v5006_v18 = vld [vmem:[#allocation5 + $0x3a0] ss:$16 sps:$4 sm:$0xff]   ;;  %v5009_v16 = vld [vmem:[#allocation5 + $0x3a8] ss:$16 sps:$4 sm:$0xff]  }
 0x2a7   :  { %v5014_v20 = vld [vmem:[#allocation5 + $0x3c4] ss:$16 sps:$4 sm:$0xff]   ;;  %v5017_v22 = vld [vmem:[#allocation5 + $0x3cc] ss:$16 sps:$4 sm:$0xff]  }
 0x2a8   :  { %1493 = vmatprep.mubr.bf16.mxu0 %v663_v23  ;;  %1575 = vmatprep.mubr.bf16.mxu1 %v663_v23  ;;  %v5012_v23 = vld [vmem:[#allocation5 + $0x3c0] ss:$16 sps:$4 sm:$0xff]  }
 0x2a9   :  { %1494 = vmatmul.mubr.bf16.vlgmr.msra.gmra.mrb[4].mxu0 %v662_v25  ;;  %1576 = vmatmul.mubr.bf16.vlgmr.msra.gmra.mrb[4].mxu1 %v662_v25  ;;  %v5023_v25 = vld [vmem:[#allocation5 + $0x3ec] ss:$16 sps:$4 sm:$0xff]  }
 0x2aa   :  { %1503 = vmatpush1.bf16.msra.mxu0 %v4928_v19  ;;  %1585 = vmatpush1.bf16.msra.mxu1 %v4931_v24  ;;  %v5015_v19 = vld [vmem:[#allocation5 + $0x3c8] ss:$16 sps:$4 sm:$0xff]   ;;  %v5020_v24 = vld [vmem:[#allocation5 + $0x3e4] ss:$16 sps:$4 sm:$0xff]  }
 0x2ab   :  { %1534 = vmatprep.mubr.bf16.mxu0 %v665_v15  ;;  %1616 = vmatprep.mubr.bf16.mxu1 %v665_v15  ;;  %v660_v15 = vmax.f32 %v5763_v21, 0.0 }
 0x2ac   :  { %1504 = vmatprep.subr.bf16.mxu0 %v4936_v12  ;;  %1586 = vmatprep.subr.bf16.mxu1 %v4939_v11  ;;  %v5018_v12 = vld [vmem:[#allocation5 + $0x3e0] ss:$16 sps:$4 sm:$0xff]   ;;  %v5021_v11 = vld [vmem:[#allocation5 + $0x3e8] ss:$16 sps:$4 sm:$0xff]  }
 0x2ae   :  { %1505 = vmatpush1.bf16.msra.mxu0 %v4934_v14  ;;  %1587 = vmatpush1.bf16.msra.mxu1 %v4937_v26  ;;  %v664_v14 = vpack.c.bf16 %v660_v15, %v660_v15  ;;  %v4223_v26 = vld [vmem:[%s6044_s6 + $0x3] ss:$8 sm:$0xf] }
 0x2af   :  { %1506 = vmatprep.subr.bf16.mxu0 %v4942_v27  ;;  %1588 = vmatprep.subr.bf16.mxu1 %v4945_v28  ;;  %v804_v27 = vrot.slane %v4223_v26, %v5698_v6  ;;  %v808_v28 = vrot.slane %v4223_v26, %v5705_v9  ;;  %v5078_v15 = vld [vmem:[#allocation7 + $0x120] ss:$16 sps:$4 sm:$0xff]  }
 0x2b2   :  { %1507 = vmatpush1.bf16.msra.mxu0 %v4940_v29  ;;  %1589 = vmatpush1.bf16.msra.mxu1 %v4943_v30  ;;  %v812_v30 = vrot.slane %v4223_v26, %v5703_v8 }
 0x2b3   :  { %1508 = vmatprep.subr.bf16.mxu0 %v4948_v31  ;;  %1590 = vmatprep.subr.bf16.mxu1 %v4951_v32 }
 0x2b6   :  { %1509 = vmatpush1.bf16.msra.mxu0 %v4946_v33  ;;  %1591 = vmatpush1.bf16.msra.mxu1 %v4949_v34 }
 0x2b7   :  { %1510 = vmatprep.subr.bf16.mxu0 %v4954_v35  ;;  %1592 = vmatprep.subr.bf16.mxu1 %v4957_v36  ;;  %v816_v35 = vrot.slane %v4223_v26, %v5710_v13 }
 0x2ba   :  { %1511 = vmatpush1.bf16.msra.mxu0 %v4952_v37  ;;  %1593 = vmatpush1.bf16.msra.mxu1 %v4955_v38 }
 0x2bb   :  { %1512 = vmatprep.subr.bf16.mxu0 %v4960_v39  ;;  %1594 = vmatprep.subr.bf16.mxu1 %v4963_v40 }
 0x2be   :  { %1513 = vmatpush1.bf16.msra.mxu0 %v4958_v41  ;;  %1595 = vmatpush1.bf16.msra.mxu1 %v4961_v42 }
 0x2bf   :  { %1514 = vmatprep.subr.bf16.mxu0 %v4966_v43  ;;  %1596 = vmatprep.subr.bf16.mxu1 %v4969_v44 }
 0x2c2   :  { %1515 = vmatpush1.bf16.msra.mxu0 %v4964_v45  ;;  %1597 = vmatpush1.bf16.msra.mxu1 %v4967_v46  ;;  %v5024_v45 = vld [vmem:[#allocation7] ss:$16 sps:$4 sm:$0xff]   ;;  %v5026_v46 = vld [vmem:[#allocation7 + $0x4] ss:$16 sps:$4 sm:$0xff]  }
 0x2c3   :  { %1516 = vmatprep.subr.bf16.mxu0 %v4972_v47  ;;  %1598 = vmatprep.subr.bf16.mxu1 %v4975_v48  ;;  %v5027_v47 = vld [vmem:[#allocation7 + $0x8] ss:$16 sps:$4 sm:$0xff]   ;;  %v5029_v48 = vld [vmem:[#allocation7 + $0xc] ss:$16 sps:$4 sm:$0xff]  }
 0x2c6   :  { %1517 = vmatpush1.bf16.msra.mxu0 %v4970_v49  ;;  %1599 = vmatpush1.bf16.msra.mxu1 %v4973_v50  ;;  %v5032_v49 = vld [vmem:[#allocation7 + $0x24] ss:$16 sps:$4 sm:$0xff]   ;;  %v5035_v50 = vld [vmem:[#allocation7 + $0x2c] ss:$16 sps:$4 sm:$0xff]  }
 0x2c7   :  { %1518 = vmatprep.subr.bf16.mxu0 %v4978_v51  ;;  %1600 = vmatprep.subr.bf16.mxu1 %v4981_v52  ;;  %v5030_v51 = vld [vmem:[#allocation7 + $0x20] ss:$16 sps:$4 sm:$0xff]   ;;  %v5033_v52 = vld [vmem:[#allocation7 + $0x28] ss:$16 sps:$4 sm:$0xff]  }
 0x2ca   :  { %1519 = vmatpush1.bf16.msra.mxu0 %v4976_v53  ;;  %1601 = vmatpush1.bf16.msra.mxu1 %v4979_v54  ;;  %v5038_v53 = vld [vmem:[#allocation7 + $0x44] ss:$16 sps:$4 sm:$0xff]   ;;  %v5041_v54 = vld [vmem:[#allocation7 + $0x4c] ss:$16 sps:$4 sm:$0xff]  }
 0x2cb   :  { %1520 = vmatprep.subr.bf16.mxu0 %v4984_v55  ;;  %1602 = vmatprep.subr.bf16.mxu1 %v4987_v56  ;;  %v5036_v55 = vld [vmem:[#allocation7 + $0x40] ss:$16 sps:$4 sm:$0xff]   ;;  %v5039_v56 = vld [vmem:[#allocation7 + $0x48] ss:$16 sps:$4 sm:$0xff]  }
 0x2ce   :  { %1521 = vmatpush1.bf16.msra.mxu0 %v4982_v57  ;;  %1603 = vmatpush1.bf16.msra.mxu1 %v4985_v58  ;;  %v5044_v57 = vld [vmem:[#allocation7 + $0x64] ss:$16 sps:$4 sm:$0xff]   ;;  %v5047_v58 = vld [vmem:[#allocation7 + $0x6c] ss:$16 sps:$4 sm:$0xff]  }
 0x2cf   :  { %1522 = vmatprep.subr.bf16.mxu0 %v4990_v59  ;;  %1604 = vmatprep.subr.bf16.mxu1 %v4993_v60  ;;  %v5042_v59 = vld [vmem:[#allocation7 + $0x60] ss:$16 sps:$4 sm:$0xff]   ;;  %v5045_v60 = vld [vmem:[#allocation7 + $0x68] ss:$16 sps:$4 sm:$0xff]  }
 0x2d2   :  { %1523 = vmatpush1.bf16.msra.mxu0 %v4988_v61  ;;  %1605 = vmatpush1.bf16.msra.mxu1 %v4991_v62  ;;  %v5050_v61 = vld [vmem:[#allocation7 + $0x84] ss:$16 sps:$4 sm:$0xff]   ;;  %v5053_v62 = vld [vmem:[#allocation7 + $0x8c] ss:$16 sps:$4 sm:$0xff]  }
 0x2d3   :  { %1524 = vmatprep.subr.bf16.mxu0 %v4996_v63  ;;  %1606 = vmatprep.subr.bf16.mxu1 %v4999_v0  ;;  %v5048_v63 = vld [vmem:[#allocation7 + $0x80] ss:$16 sps:$4 sm:$0xff]   ;;  %v5051_v0 = vld [vmem:[#allocation7 + $0x88] ss:$16 sps:$4 sm:$0xff]  }
 0x2d6   :  { %1525 = vmatpush1.bf16.msra.mxu0 %v4994_v1  ;;  %1607 = vmatpush1.bf16.msra.mxu1 %v4997_v2  ;;  %v5056_v1 = vld [vmem:[#allocation7 + $0xa4] ss:$16 sps:$4 sm:$0xff]   ;;  %v5059_v2 = vld [vmem:[#allocation7 + $0xac] ss:$16 sps:$4 sm:$0xff]  }
 0x2d7   :  { %1526 = vmatprep.subr.bf16.mxu0 %v5002_v3  ;;  %1608 = vmatprep.subr.bf16.mxu1 %v5005_v4  ;;  %v5054_v3 = vld [vmem:[#allocation7 + $0xa0] ss:$16 sps:$4 sm:$0xff]   ;;  %v5057_v4 = vld [vmem:[#allocation7 + $0xa8] ss:$16 sps:$4 sm:$0xff]  }
 0x2da   :  { %1527 = vmatpush1.bf16.msra.mxu0 %v5000_v5  ;;  %1609 = vmatpush1.bf16.msra.mxu1 %v5003_v7  ;;  %v5062_v5 = vld [vmem:[#allocation7 + $0xc4] ss:$16 sps:$4 sm:$0xff]   ;;  %v5065_v7 = vld [vmem:[#allocation7 + $0xcc] ss:$16 sps:$4 sm:$0xff]  }
 0x2db   :  { %1528 = vmatprep.subr.bf16.mxu0 %v5008_v10  ;;  %1610 = vmatprep.subr.bf16.mxu1 %v5011_v17  ;;  %v5060_v10 = vld [vmem:[#allocation7 + $0xc0] ss:$16 sps:$4 sm:$0xff]   ;;  %v5063_v17 = vld [vmem:[#allocation7 + $0xc8] ss:$16 sps:$4 sm:$0xff]  }
 0x2de   :  { %1529 = vmatpush1.bf16.msra.mxu0 %v5006_v18  ;;  %1611 = vmatpush1.bf16.msra.mxu1 %v5009_v16  ;;  %v5068_v18 = vld [vmem:[#allocation7 + $0xe4] ss:$16 sps:$4 sm:$0xff]   ;;  %v5071_v16 = vld [vmem:[#allocation7 + $0xec] ss:$16 sps:$4 sm:$0xff]  }
 0x2df   :  { %1530 = vmatprep.subr.bf16.mxu0 %v5014_v20  ;;  %1612 = vmatprep.subr.bf16.mxu1 %v5017_v22  ;;  %v5066_v20 = vld [vmem:[#allocation7 + $0xe0] ss:$16 sps:$4 sm:$0xff]   ;;  %v5069_v22 = vld [vmem:[#allocation7 + $0xe8] ss:$16 sps:$4 sm:$0xff]  }
 0x2e2   :  { %1531 = vmatpush1.bf16.msra.mxu0 %v5012_v23  ;;  %1613 = vmatpush1.bf16.msra.mxu1 %v5015_v19  ;;  %v5074_v23 = vld [vmem:[#allocation7 + $0x104] ss:$16 sps:$4 sm:$0xff]   ;;  %v5077_v19 = vld [vmem:[#allocation7 + $0x10c] ss:$16 sps:$4 sm:$0xff]  }
 0x2e3   :  { %1532 = vmatprep.subr.bf16.mxu0 %v5020_v24  ;;  %1614 = vmatprep.subr.bf16.mxu1 %v5023_v25  ;;  %v5072_v24 = vld [vmem:[#allocation7 + $0x100] ss:$16 sps:$4 sm:$0xff]   ;;  %v5075_v25 = vld [vmem:[#allocation7 + $0x108] ss:$16 sps:$4 sm:$0xff]  }
 0x2e6   :  { %1533 = vmatpush1.bf16.msra.mxu0 %v5018_v12  ;;  %1615 = vmatpush1.bf16.msra.mxu1 %v5021_v11  ;;  %v5080_v12 = vld [vmem:[#allocation7 + $0x124] ss:$16 sps:$4 sm:$0xff]   ;;  %v5083_v11 = vld [vmem:[#allocation7 + $0x12c] ss:$16 sps:$4 sm:$0xff]  }
 0x2e7   :  { %2504 = vmatprep.subr.bf16.mxu0 %v5026_v46  ;;  %2586 = vmatprep.subr.bf16.mxu1 %v5029_v48  ;;  %v5098_v46 = vld [vmem:[#allocation7 + $0x184] ss:$16 sps:$4 sm:$0xff]   ;;  %v5096_v48 = vld [vmem:[#allocation7 + $0x180] ss:$16 sps:$4 sm:$0xff]  }
 0x2e9   :  { %1535 = vmatmul.mubr.bf16.vlgmr.msra.gmra.mrb[4].mxu0 %v664_v14  ;;  %1617 = vmatmul.mubr.bf16.vlgmr.msra.gmra.mrb[4].mxu1 %v664_v14  ;;  %v5081_v14 = vld [vmem:[#allocation7 + $0x128] ss:$16 sps:$4 sm:$0xff]  }
 0x2ea   :  { %2505 = vmatpush1.bf16.msra.mxu0 %v5024_v45  ;;  %2587 = vmatpush1.bf16.msra.mxu1 %v5027_v47  ;;  %v5093_v45 = vld [vmem:[#allocation7 + $0x168] ss:$16 sps:$4 sm:$0xff]   ;;  %v5101_v47 = vld [vmem:[#allocation7 + $0x18c] ss:$16 sps:$4 sm:$0xff]  }
 0x2eb   :  { %2506 = vmatprep.subr.bf16.mxu0 %v5032_v49  ;;  %2588 = vmatprep.subr.bf16.mxu1 %v5035_v50  ;;  %v5099_v49 = vld [vmem:[#allocation7 + $0x188] ss:$16 sps:$4 sm:$0xff]   ;;  %v5104_v50 = vld [vmem:[#allocation7 + $0x1a4] ss:$16 sps:$4 sm:$0xff]  }
 0x2ee   :  { %2507 = vmatpush1.bf16.msra.mxu0 %v5030_v51  ;;  %2589 = vmatpush1.bf16.msra.mxu1 %v5033_v52  ;;  %v5107_v51 = vld [vmem:[#allocation7 + $0x1ac] ss:$16 sps:$4 sm:$0xff]   ;;  %v5102_v52 = vld [vmem:[#allocation7 + $0x1a0] ss:$16 sps:$4 sm:$0xff]  }
 0x2ef   :  { %2508 = vmatprep.subr.bf16.mxu0 %v5038_v53  ;;  %2590 = vmatprep.subr.bf16.mxu1 %v5041_v54  ;;  %v5105_v53 = vld [vmem:[#allocation7 + $0x1a8] ss:$16 sps:$4 sm:$0xff]   ;;  %v5110_v54 = vld [vmem:[#allocation7 + $0x1c4] ss:$16 sps:$4 sm:$0xff]  }
 0x2f2   :  { %2509 = vmatpush1.bf16.msra.mxu0 %v5036_v55  ;;  %2591 = vmatpush1.bf16.msra.mxu1 %v5039_v56  ;;  %v5113_v55 = vld [vmem:[#allocation7 + $0x1cc] ss:$16 sps:$4 sm:$0xff]   ;;  %v5108_v56 = vld [vmem:[#allocation7 + $0x1c0] ss:$16 sps:$4 sm:$0xff]  }
 0x2f3   :  { %2510 = vmatprep.subr.bf16.mxu0 %v5044_v57  ;;  %2592 = vmatprep.subr.bf16.mxu1 %v5047_v58  ;;  %v5111_v57 = vld [vmem:[#allocation7 + $0x1c8] ss:$16 sps:$4 sm:$0xff]   ;;  %v5116_v58 = vld [vmem:[#allocation7 + $0x1e4] ss:$16 sps:$4 sm:$0xff]  }
 0x2f6   :  { %2511 = vmatpush1.bf16.msra.mxu0 %v5042_v59  ;;  %2593 = vmatpush1.bf16.msra.mxu1 %v5045_v60  ;;  %v5119_v59 = vld [vmem:[#allocation7 + $0x1ec] ss:$16 sps:$4 sm:$0xff]   ;;  %v5114_v60 = vld [vmem:[#allocation7 + $0x1e0] ss:$16 sps:$4 sm:$0xff]  }
 0x2f7   :  { %2512 = vmatprep.subr.bf16.mxu0 %v5050_v61  ;;  %2594 = vmatprep.subr.bf16.mxu1 %v5053_v62  ;;  %v5117_v61 = vld [vmem:[#allocation7 + $0x1e8] ss:$16 sps:$4 sm:$0xff]   ;;  %v5122_v62 = vld [vmem:[#allocation7 + $0x204] ss:$16 sps:$4 sm:$0xff]  }
 0x2fa   :  { %2513 = vmatpush1.bf16.msra.mxu0 %v5048_v63  ;;  %2595 = vmatpush1.bf16.msra.mxu1 %v5051_v0  ;;  %v5125_v63 = vld [vmem:[#allocation7 + $0x20c] ss:$16 sps:$4 sm:$0xff]  }
 0x2fb   :  { %2514 = vmatprep.subr.bf16.mxu0 %v5056_v1  ;;  %2596 = vmatprep.subr.bf16.mxu1 %v5059_v2 }
 0x2fe   :  { %2515 = vmatpush1.bf16.msra.mxu0 %v5054_v3  ;;  %2597 = vmatpush1.bf16.msra.mxu1 %v5057_v4  ;;  %v4224_v3 = vld [vmem:[%s6044_s6 + $0x4] ss:$8 sm:$0xf]  ;;  %v4225_v4 = vld [vmem:[%s6044_s6 + $0x5] ss:$8 sm:$0xf] }
 0x2ff   :  { %2516 = vmatprep.subr.bf16.mxu0 %v5062_v5  ;;  %2598 = vmatprep.subr.bf16.mxu1 %v5065_v7  ;;  %v1655_v5 = vrot.slane %v4224_v3, %v5705_v9  ;;  %v1651_v7 = vrot.slane %v4224_v3, %v5698_v6 }
 0x302   :  { %2517 = vmatpush1.bf16.msra.mxu0 %v5060_v10  ;;  %2599 = vmatpush1.bf16.msra.mxu1 %v5063_v17  ;;  %v1663_v10 = vrot.slane %v4224_v3, %v5710_v13  ;;  %v1659_v17 = vrot.slane %v4224_v3, %v5703_v8  ;;  %v5173_v3 = vld [vmem:[#allocation7 + $0x30c] ss:$16 sps:$4 sm:$0xff]  }
 0x303   :  { %2518 = vmatprep.subr.bf16.mxu0 %v5068_v18  ;;  %2600 = vmatprep.subr.bf16.mxu1 %v5071_v16  ;;  %v1684_v16 = vrot.slane %v4225_v4, %v5705_v9 }
 0x306   :  { %2519 = vmatpush1.bf16.msra.mxu0 %v5066_v20  ;;  %2601 = vmatpush1.bf16.msra.mxu1 %v5069_v22  ;;  %v1680_v20 = vrot.slane %v4225_v4, %v5698_v6  ;;  %v1692_v22 = vrot.slane %v4225_v4, %v5710_v13 }
 0x307   :  { %2520 = vmatprep.subr.bf16.mxu0 %v5074_v23  ;;  %2602 = vmatprep.subr.bf16.mxu1 %v5077_v19  ;;  %v1688_v23 = vrot.slane %v4225_v4, %v5703_v8  ;;  %v5168_v4 = vld [vmem:[#allocation7 + $0x300] ss:$16 sps:$4 sm:$0xff]  }
 0x30a   :  { %2521 = vmatpush1.bf16.msra.mxu0 %v5072_v24  ;;  %2603 = vmatpush1.bf16.msra.mxu1 %v5075_v25 }
 0x30b   :  { %2522 = vmatprep.subr.bf16.mxu0 %v5080_v12  ;;  %2604 = vmatprep.subr.bf16.mxu1 %v5083_v11 }
 0x30e   :  { %2523 = vmatpush1.bf16.msra.mxu0 %v5078_v15  ;;  %2605 = vmatpush1.bf16.msra.mxu1 %v5081_v14 }
 0x3bc   :  { %v1536_v29 = vpop.f32.mrb[4].mxu0  ;;  %v1618_v31 = vpop.f32.mrb[4].mxu1 }
 0x3bd   :  { %v5772_v32 = vadd.f32 %v1536_v29, %v804_v27  ;;  %v1538_v21 = vpop.f32.mrb[5].mxu0  ;;  %v1620_v33 = vpop.f32.mrb[5].mxu1  ;;  %v5777_v40 = vadd.f32 %v1618_v31, %v812_v30 }
 0x3be   :  { %v5774_v34 = vadd.f32 %v1538_v21, %v808_v28  ;;  %v1540_v36 = vpop.f32.mrb[6].mxu0  ;;  %v1622_v37 = vpop.f32.mrb[6].mxu1  ;;  %v5781_v42 = vadd.f32 %v1620_v33, %v816_v35 }
 0x3bf   :  { %v1541_v38 = vpop.f32.mrb[7].mxu0  ;;  %v1623_v39 = vpop.f32.mrb[7].mxu1 }
 0x3c0   :  { %v1625_v41 = vadd.f32 %v5774_v34, %v5772_v32  ;;  %v5086_v38 = vld [vmem:[#allocation7 + $0x144] ss:$16 sps:$4 sm:$0xff]   ;;  %v5089_v39 = vld [vmem:[#allocation7 + $0x14c] ss:$16 sps:$4 sm:$0xff]  }
 0x3c1   :  { %2524 = vmatprep.subr.bf16.mxu0 %v5086_v38  ;;  %2606 = vmatprep.subr.bf16.mxu1 %v5089_v39  ;;  %v5120_v38 = vld [vmem:[#allocation7 + $0x200] ss:$16 sps:$4 sm:$0xff]   ;;  %v5123_v39 = vld [vmem:[#allocation7 + $0x208] ss:$16 sps:$4 sm:$0xff]  }
 0x3c2   :  { %v1626_v43 = vadd.f32 %v5777_v40, %v1625_v41  ;;  %v5087_v41 = vld [vmem:[#allocation7 + $0x148] ss:$16 sps:$4 sm:$0xff]  }
 0x3c3   :  { %2607 = vmatpush1.bf16.msra.mxu1 %v5087_v41  ;;  %v5129_v41 = vld [vmem:[#allocation7 + $0x228] ss:$16 sps:$4 sm:$0xff]  }
 0x3c4   :  { %v1627_v44 = vadd.f32 %v5781_v42, %v1626_v43  ;;  %v5095_v43 = vld [vmem:[#allocation7 + $0x16c] ss:$16 sps:$4 sm:$0xff]  }
 0x3c5   :  { %2608 = vmatprep.subr.bf16.mxu1 %v5095_v43  ;;  %v5137_v43 = vld [vmem:[#allocation7 + $0x24c] ss:$16 sps:$4 sm:$0xff]  }
 0x3c6   :  { %1628 = vadd.xlane.f32.xlu1 %v1627_v44  ;;  %v5090_v44 = vld [vmem:[#allocation7 + $0x160] ss:$16 sps:$4 sm:$0xff]  }
 0x3c7   :  { %2609 = vmatpush1.bf16.msra.mxu1 %v5093_v45  ;;  %v5135_v45 = vld [vmem:[#allocation7 + $0x248] ss:$16 sps:$4 sm:$0xff]  }
 0x3c8   :  { %2610 = vmatprep.subr.bf16.mxu1 %v5101_v47  ;;  %v5143_v47 = vld [vmem:[#allocation7 + $0x26c] ss:$16 sps:$4 sm:$0xff]  }
 0x3cb   :  { %2611 = vmatpush1.bf16.msra.mxu1 %v5099_v49  ;;  %v5141_v49 = vld [vmem:[#allocation7 + $0x268] ss:$16 sps:$4 sm:$0xff]  }
 0x3cc   :  { %2612 = vmatprep.subr.bf16.mxu1 %v5107_v51  ;;  %v5149_v51 = vld [vmem:[#allocation7 + $0x28c] ss:$16 sps:$4 sm:$0xff]  }
 0x3cf   :  { %2613 = vmatpush1.bf16.msra.mxu1 %v5105_v53  ;;  %v5147_v53 = vld [vmem:[#allocation7 + $0x288] ss:$16 sps:$4 sm:$0xff]  }
 0x3d0   :  { %2614 = vmatprep.subr.bf16.mxu1 %v5113_v55  ;;  %v5155_v55 = vld [vmem:[#allocation7 + $0x2ac] ss:$16 sps:$4 sm:$0xff]  }
 0x3d3   :  { %2615 = vmatpush1.bf16.msra.mxu1 %v5111_v57  ;;  %v5153_v57 = vld [vmem:[#allocation7 + $0x2a8] ss:$16 sps:$4 sm:$0xff]  }
 0x3d4   :  { %2616 = vmatprep.subr.bf16.mxu1 %v5119_v59  ;;  %v5161_v59 = vld [vmem:[#allocation7 + $0x2cc] ss:$16 sps:$4 sm:$0xff]  }
 0x3d7   :  { %2617 = vmatpush1.bf16.msra.mxu1 %v5117_v61  ;;  %v5159_v61 = vld [vmem:[#allocation7 + $0x2c8] ss:$16 sps:$4 sm:$0xff]  }
 0x3d8   :  { %2627 = vmatprep.subr.bf16.mxu1 %v5125_v63  ;;  %v5167_v63 = vld [vmem:[#allocation7 + $0x2ec] ss:$16 sps:$4 sm:$0xff]  }
 0x453   :  { %v1629_v26 = vpop.xlane.xlu1 %1628 }
 0x454   :  { %v1630_v27 = vmul.f32 0.001953125, %v1629_v26 }
 0x456   :  { %v5786_v28 = vsub.f32 %v5772_v32, %v1630_v27  ;;  %v5789_v29 = vsub.f32 %v5774_v34, %v1630_v27  ;;  %v5792_v30 = vsub.f32 %v5777_v40, %v1630_v27  ;;  %v5795_v31 = vsub.f32 %v5781_v42, %v1630_v27  ;;  %v5084_v40 = vld [vmem:[#allocation7 + $0x140] ss:$16 sps:$4 sm:$0xff]   ;;  %v5092_v42 = vld [vmem:[#allocation7 + $0x164] ss:$16 sps:$4 sm:$0xff]  }
 0x457   :  { %2525 = vmatpush1.bf16.msra.mxu0 %v5084_v40 }
 0x458   :  { %v1635_v21 = vmul.f32 %v5786_v28, %v5786_v28  ;;  %v1636_v33 = vmul.f32 %v5789_v29, %v5789_v29  ;;  %v1637_v35 = vmul.f32 %v5792_v30, %v5792_v30  ;;  %v1638_v34 = vmul.f32 %v5795_v31, %v5795_v31  ;;  %2526 = vmatprep.subr.bf16.mxu0 %v5092_v42  ;;  %v5134_v42 = vld [vmem:[#allocation7 + $0x244] ss:$16 sps:$4 sm:$0xff]  }
 0x45a   :  { %v1639_v32 = vadd.f32 %v1636_v33, %v1635_v21 }
 0x45b   :  { %2527 = vmatpush1.bf16.msra.mxu0 %v5090_v44  ;;  %v5132_v44 = vld [vmem:[#allocation7 + $0x240] ss:$16 sps:$4 sm:$0xff]  }
 0x45c   :  { %v1640_v36 = vadd.f32 %v1639_v32, %v1637_v35  ;;  %2528 = vmatprep.subr.bf16.mxu0 %v5098_v46  ;;  %v5140_v46 = vld [vmem:[#allocation7 + $0x264] ss:$16 sps:$4 sm:$0xff]  }
 0x45e   :  { %v1641_v37 = vadd.f32 %v1640_v36, %v1638_v34 }
 0x45f   :  { %2529 = vmatpush1.bf16.msra.mxu0 %v5096_v48  ;;  %v5138_v48 = vld [vmem:[#allocation7 + $0x260] ss:$16 sps:$4 sm:$0xff]  }
 0x460   :  { %1642 = vadd.xlane.f32.xlu1 %v1641_v37  ;;  %2530 = vmatprep.subr.bf16.mxu0 %v5104_v50  ;;  %v5146_v50 = vld [vmem:[#allocation7 + $0x284] ss:$16 sps:$4 sm:$0xff]  }
 0x463   :  { %2531 = vmatpush1.bf16.msra.mxu0 %v5102_v52  ;;  %v5144_v52 = vld [vmem:[#allocation7 + $0x280] ss:$16 sps:$4 sm:$0xff]  }
 0x464   :  { %2532 = vmatprep.subr.bf16.mxu0 %v5110_v54  ;;  %v5152_v54 = vld [vmem:[#allocation7 + $0x2a4] ss:$16 sps:$4 sm:$0xff]  }
 0x467   :  { %2533 = vmatpush1.bf16.msra.mxu0 %v5108_v56  ;;  %v5150_v56 = vld [vmem:[#allocation7 + $0x2a0] ss:$16 sps:$4 sm:$0xff]  }
 0x468   :  { %2534 = vmatprep.subr.bf16.mxu0 %v5116_v58  ;;  %v5158_v58 = vld [vmem:[#allocation7 + $0x2c4] ss:$16 sps:$4 sm:$0xff]  }
 0x46b   :  { %2535 = vmatpush1.bf16.msra.mxu0 %v5114_v60  ;;  %v5156_v60 = vld [vmem:[#allocation7 + $0x2c0] ss:$16 sps:$4 sm:$0xff]  }
 0x46c   :  { %2545 = vmatprep.subr.bf16.mxu0 %v5122_v62  ;;  %v5164_v62 = vld [vmem:[#allocation7 + $0x2e4] ss:$16 sps:$4 sm:$0xff]  }
 0x4ed   :  { %v1643_v0 = vpop.xlane.xlu1 %1642 }
 0x4ee   :  { %v1644_v1 = vmul.f32 0.001953125, %v1643_v0  ;;  %v5162_v0 = vld [vmem:[#allocation7 + $0x2e0] ss:$16 sps:$4 sm:$0xff]  }
 0x4f0   :  { %v1645_v2 = vadd.f32 1e-05, %v1644_v1  ;;  %v5165_v1 = vld [vmem:[#allocation7 + $0x2e8] ss:$16 sps:$4 sm:$0xff]  }
 0x4f2   :  { %5442 = vrsqrt.f32 %v1645_v2  ;;  %v5170_v2 = vld [vmem:[#allocation7 + $0x304] ss:$16 sps:$4 sm:$0xff]  }
 0x4fc   :  { %v5443_v18 = vpop.eup %5442 }
 0x4fd   :  { %v1669_v19 = vmul.f32 %v5443_v18, %v1655_v5  ;;  %v1668_v24 = vmul.f32 %v5443_v18, %v1651_v7  ;;  %v1671_v25 = vmul.f32 %v5443_v18, %v1663_v10  ;;  %v1670_v12 = vmul.f32 %v5443_v18, %v1659_v17  ;;  %v5171_v5 = vld [vmem:[#allocation7 + $0x308] ss:$16 sps:$4 sm:$0xff]   ;;  %v5176_v7 = vld [vmem:[#allocation7 + $0x324] ss:$16 sps:$4 sm:$0xff]   ;;  %v5179_v10 = vld [vmem:[#allocation7 + $0x32c] ss:$16 sps:$4 sm:$0xff]  }
 0x4fe   :  { %v5174_v17 = vld [vmem:[#allocation7 + $0x320] ss:$16 sps:$4 sm:$0xff]   ;;  %v5177_v18 = vld [vmem:[#allocation7 + $0x328] ss:$16 sps:$4 sm:$0xff]  }
 0x4ff   :  { %v1673_v11 = vmul.f32 %v1669_v19, %v5789_v29  ;;  %v1672_v15 = vmul.f32 %v1668_v24, %v5786_v28  ;;  %v1675_v14 = vmul.f32 %v1671_v25, %v5795_v31  ;;  %v1674_v26 = vmul.f32 %v1670_v12, %v5792_v30  ;;  %v5128_v29 = vld [vmem:[#allocation7 + $0x224] ss:$16 sps:$4 sm:$0xff]   ;;  %v5131_v28 = vld [vmem:[#allocation7 + $0x22c] ss:$16 sps:$4 sm:$0xff]   ;;  %v5126_v30 = vld [vmem:[#allocation7 + $0x220] ss:$16 sps:$4 sm:$0xff]  }
 0x500   :  { %v5188_v19 = vld [vmem:[#allocation7 + $0x364] ss:$16 sps:$4 sm:$0xff]   ;;  %v5191_v24 = vld [vmem:[#allocation7 + $0x36c] ss:$16 sps:$4 sm:$0xff]   ;;  %v5186_v25 = vld [vmem:[#allocation7 + $0x360] ss:$16 sps:$4 sm:$0xff]  }
 0x501   :  { %v1698_v27 = vadd.f32 %v1684_v16, %v1673_v11  ;;  %v1697_v21 = vadd.f32 %v1680_v20, %v1672_v15  ;;  %v1700_v33 = vadd.f32 %v1692_v22, %v1675_v14  ;;  %v5823_v35 = vadd.f32 %v1688_v23, %v1674_v26  ;;  %v5182_v16 = vld [vmem:[#allocation7 + $0x344] ss:$16 sps:$4 sm:$0xff]   ;;  %v5185_v20 = vld [vmem:[#allocation7 + $0x34c] ss:$16 sps:$4 sm:$0xff]   ;;  %v5180_v22 = vld [vmem:[#allocation7 + $0x340] ss:$16 sps:$4 sm:$0xff]  }
 0x502   :  { %v5183_v23 = vld [vmem:[#allocation7 + $0x348] ss:$16 sps:$4 sm:$0xff]   ;;  %v5194_v11 = vld [vmem:[#allocation7 + $0x384] ss:$16 sps:$4 sm:$0xff]   ;;  %v5197_v15 = vld [vmem:[#allocation7 + $0x38c] ss:$16 sps:$4 sm:$0xff]  }
 0x503   :  { %v1702_v32 = vmax.f32 %v1698_v27, 0.0  ;;  %v1701_v34 = vmax.f32 %v1697_v21, 0.0  ;;  %v1704_v36 = vmax.f32 %v1700_v33, 0.0  ;;  %v5189_v12 = vld [vmem:[#allocation7 + $0x368] ss:$16 sps:$4 sm:$0xff]  }
 0x504   :  { %v5192_v14 = vld [vmem:[#allocation7 + $0x380] ss:$16 sps:$4 sm:$0xff]   ;;  %v5195_v26 = vld [vmem:[#allocation7 + $0x388] ss:$16 sps:$4 sm:$0xff]   ;;  %v5200_v27 = vld [vmem:[#allocation7 + $0x3a4] ss:$16 sps:$4 sm:$0xff]  }
 0x505   :  { %v1706_v37 = vpack.c.bf16 %v1702_v32, %v1702_v32  ;;  %v1705_v40 = vpack.c.bf16 %v1701_v34, %v1701_v34  ;;  %v1708_v31 = vpack.c.bf16 %v1704_v36, %v1704_v36  ;;  %v5203_v21 = vld [vmem:[#allocation7 + $0x3ac] ss:$16 sps:$4 sm:$0xff]   ;;  %v5198_v33 = vld [vmem:[#allocation7 + $0x3a0] ss:$16 sps:$4 sm:$0xff]   ;;  %v5201_v32 = vld [vmem:[#allocation7 + $0x3a8] ss:$16 sps:$4 sm:$0xff]  }
 0x506   :  { %v5206_v34 = vld [vmem:[#allocation7 + $0x3c4] ss:$16 sps:$4 sm:$0xff]   ;;  %v5209_v36 = vld [vmem:[#allocation7 + $0x3cc] ss:$16 sps:$4 sm:$0xff]  }
 0x507   :  { %2536 = vmatprep.mubr.bf16.mxu0 %v1706_v37  ;;  %2618 = vmatprep.mubr.bf16.mxu1 %v1706_v37  ;;  %v5204_v37 = vld [vmem:[#allocation7 + $0x3c0] ss:$16 sps:$4 sm:$0xff]  }
 0x508   :  { %2537 = vmatmul.mubr.bf16.vlgmr.msra.gmra.mrb[8].mxu0 %v1705_v40  ;;  %2619 = vmatmul.mubr.bf16.vlgmr.msra.gmra.mrb[8].mxu1 %v1705_v40  ;;  %v5215_v40 = vld [vmem:[#allocation7 + $0x3ec] ss:$16 sps:$4 sm:$0xff]  }
 0x509   :  { %2546 = vmatpush1.bf16.msra.mxu0 %v5120_v38  ;;  %2628 = vmatpush1.bf16.msra.mxu1 %v5123_v39  ;;  %v5207_v38 = vld [vmem:[#allocation7 + $0x3c8] ss:$16 sps:$4 sm:$0xff]   ;;  %v5212_v39 = vld [vmem:[#allocation7 + $0x3e4] ss:$16 sps:$4 sm:$0xff]  }
 0x50a   :  { %2577 = vmatprep.mubr.bf16.mxu0 %v1708_v31  ;;  %2659 = vmatprep.mubr.bf16.mxu1 %v1708_v31  ;;  %v1703_v31 = vmax.f32 %v5823_v35, 0.0 }
 0x50b   :  { %2547 = vmatprep.subr.bf16.mxu0 %v5128_v29  ;;  %2629 = vmatprep.subr.bf16.mxu1 %v5131_v28  ;;  %v5210_v29 = vld [vmem:[#allocation7 + $0x3e0] ss:$16 sps:$4 sm:$0xff]   ;;  %v5213_v28 = vld [vmem:[#allocation7 + $0x3e8] ss:$16 sps:$4 sm:$0xff]  }
 0x50d   :  { %2548 = vmatpush1.bf16.msra.mxu0 %v5126_v30  ;;  %2630 = vmatpush1.bf16.msra.mxu1 %v5129_v41  ;;  %v1707_v30 = vpack.c.bf16 %v1703_v31, %v1703_v31  ;;  %v4354_v41 = vld [vmem:[%s6044_s6 + $0x6] ss:$8 sm:$0xf]  ;;  %v5270_v31 = vld [vmem:[#allocation8 + $0x120] ss:$16 sps:$4 sm:$0xff]  }
 0x50e   :  { %2549 = vmatprep.subr.bf16.mxu0 %v5134_v42  ;;  %2631 = vmatprep.subr.bf16.mxu1 %v5137_v43  ;;  %v1847_v42 = vrot.slane %v4354_v41, %v5698_v6  ;;  %v1851_v43 = vrot.slane %v4354_v41, %v5705_v9 }
 0x511   :  { %2550 = vmatpush1.bf16.msra.mxu0 %v5132_v44  ;;  %2632 = vmatpush1.bf16.msra.mxu1 %v5135_v45  ;;  %v1855_v45 = vrot.slane %v4354_v41, %v5703_v8 }
 0x512   :  { %2551 = vmatprep.subr.bf16.mxu0 %v5140_v46  ;;  %2633 = vmatprep.subr.bf16.mxu1 %v5143_v47 }
 0x515   :  { %2552 = vmatpush1.bf16.msra.mxu0 %v5138_v48  ;;  %2634 = vmatpush1.bf16.msra.mxu1 %v5141_v49 }
 0x516   :  { %2553 = vmatprep.subr.bf16.mxu0 %v5146_v50  ;;  %2635 = vmatprep.subr.bf16.mxu1 %v5149_v51  ;;  %v1859_v50 = vrot.slane %v4354_v41, %v5710_v13 }
 0x519   :  { %2554 = vmatpush1.bf16.msra.mxu0 %v5144_v52  ;;  %2636 = vmatpush1.bf16.msra.mxu1 %v5147_v53 }
 0x51a   :  { %2555 = vmatprep.subr.bf16.mxu0 %v5152_v54  ;;  %2637 = vmatprep.subr.bf16.mxu1 %v5155_v55 }
 0x51d   :  { %2556 = vmatpush1.bf16.msra.mxu0 %v5150_v56  ;;  %2638 = vmatpush1.bf16.msra.mxu1 %v5153_v57 }
 0x51e   :  { %2557 = vmatprep.subr.bf16.mxu0 %v5158_v58  ;;  %2639 = vmatprep.subr.bf16.mxu1 %v5161_v59 }
 0x521   :  { %2558 = vmatpush1.bf16.msra.mxu0 %v5156_v60  ;;  %2640 = vmatpush1.bf16.msra.mxu1 %v5159_v61  ;;  %v5216_v60 = vld [vmem:[#allocation8] ss:$16 sps:$4 sm:$0xff]   ;;  %v5218_v61 = vld [vmem:[#allocation8 + $0x4] ss:$16 sps:$4 sm:$0xff]  }
 0x522   :  { %2559 = vmatprep.subr.bf16.mxu0 %v5164_v62  ;;  %2641 = vmatprep.subr.bf16.mxu1 %v5167_v63  ;;  %v5219_v62 = vld [vmem:[#allocation8 + $0x8] ss:$16 sps:$4 sm:$0xff]   ;;  %v5221_v63 = vld [vmem:[#allocation8 + $0xc] ss:$16 sps:$4 sm:$0xff]  }
 0x525   :  { %2560 = vmatpush1.bf16.msra.mxu0 %v5162_v0  ;;  %2642 = vmatpush1.bf16.msra.mxu1 %v5165_v1  ;;  %v5224_v0 = vld [vmem:[#allocation8 + $0x24] ss:$16 sps:$4 sm:$0xff]   ;;  %v5227_v1 = vld [vmem:[#allocation8 + $0x2c] ss:$16 sps:$4 sm:$0xff]  }
 0x526   :  { %2561 = vmatprep.subr.bf16.mxu0 %v5170_v2  ;;  %2643 = vmatprep.subr.bf16.mxu1 %v5173_v3  ;;  %v5222_v2 = vld [vmem:[#allocation8 + $0x20] ss:$16 sps:$4 sm:$0xff]   ;;  %v5225_v3 = vld [vmem:[#allocation8 + $0x28] ss:$16 sps:$4 sm:$0xff]  }
 0x529   :  { %2562 = vmatpush1.bf16.msra.mxu0 %v5168_v4  ;;  %2644 = vmatpush1.bf16.msra.mxu1 %v5171_v5  ;;  %v5230_v4 = vld [vmem:[#allocation8 + $0x44] ss:$16 sps:$4 sm:$0xff]   ;;  %v5233_v5 = vld [vmem:[#allocation8 + $0x4c] ss:$16 sps:$4 sm:$0xff]  }
 0x52a   :  { %2563 = vmatprep.subr.bf16.mxu0 %v5176_v7  ;;  %2645 = vmatprep.subr.bf16.mxu1 %v5179_v10  ;;  %v5228_v7 = vld [vmem:[#allocation8 + $0x40] ss:$16 sps:$4 sm:$0xff]   ;;  %v5231_v10 = vld [vmem:[#allocation8 + $0x48] ss:$16 sps:$4 sm:$0xff]  }
 0x52d   :  { %2564 = vmatpush1.bf16.msra.mxu0 %v5174_v17  ;;  %2646 = vmatpush1.bf16.msra.mxu1 %v5177_v18  ;;  %v5236_v17 = vld [vmem:[#allocation8 + $0x64] ss:$16 sps:$4 sm:$0xff]   ;;  %v5239_v18 = vld [vmem:[#allocation8 + $0x6c] ss:$16 sps:$4 sm:$0xff]  }
 0x52e   :  { %2565 = vmatprep.subr.bf16.mxu0 %v5182_v16  ;;  %2647 = vmatprep.subr.bf16.mxu1 %v5185_v20  ;;  %v5234_v16 = vld [vmem:[#allocation8 + $0x60] ss:$16 sps:$4 sm:$0xff]   ;;  %v5237_v20 = vld [vmem:[#allocation8 + $0x68] ss:$16 sps:$4 sm:$0xff]  }
 0x531   :  { %2566 = vmatpush1.bf16.msra.mxu0 %v5180_v22  ;;  %2648 = vmatpush1.bf16.msra.mxu1 %v5183_v23  ;;  %v5242_v22 = vld [vmem:[#allocation8 + $0x84] ss:$16 sps:$4 sm:$0xff]   ;;  %v5245_v23 = vld [vmem:[#allocation8 + $0x8c] ss:$16 sps:$4 sm:$0xff]  }
 0x532   :  { %2567 = vmatprep.subr.bf16.mxu0 %v5188_v19  ;;  %2649 = vmatprep.subr.bf16.mxu1 %v5191_v24  ;;  %v5240_v19 = vld [vmem:[#allocation8 + $0x80] ss:$16 sps:$4 sm:$0xff]   ;;  %v5243_v24 = vld [vmem:[#allocation8 + $0x88] ss:$16 sps:$4 sm:$0xff]  }
 0x535   :  { %2568 = vmatpush1.bf16.msra.mxu0 %v5186_v25  ;;  %2650 = vmatpush1.bf16.msra.mxu1 %v5189_v12  ;;  %v5248_v25 = vld [vmem:[#allocation8 + $0xa4] ss:$16 sps:$4 sm:$0xff]   ;;  %v5251_v12 = vld [vmem:[#allocation8 + $0xac] ss:$16 sps:$4 sm:$0xff]  }
 0x536   :  { %2569 = vmatprep.subr.bf16.mxu0 %v5194_v11  ;;  %2651 = vmatprep.subr.bf16.mxu1 %v5197_v15  ;;  %v5246_v11 = vld [vmem:[#allocation8 + $0xa0] ss:$16 sps:$4 sm:$0xff]   ;;  %v5249_v15 = vld [vmem:[#allocation8 + $0xa8] ss:$16 sps:$4 sm:$0xff]  }
 0x539   :  { %2570 = vmatpush1.bf16.msra.mxu0 %v5192_v14  ;;  %2652 = vmatpush1.bf16.msra.mxu1 %v5195_v26  ;;  %v5254_v14 = vld [vmem:[#allocation8 + $0xc4] ss:$16 sps:$4 sm:$0xff]   ;;  %v5257_v26 = vld [vmem:[#allocation8 + $0xcc] ss:$16 sps:$4 sm:$0xff]  }
 0x53a   :  { %2571 = vmatprep.subr.bf16.mxu0 %v5200_v27  ;;  %2653 = vmatprep.subr.bf16.mxu1 %v5203_v21  ;;  %v5252_v27 = vld [vmem:[#allocation8 + $0xc0] ss:$16 sps:$4 sm:$0xff]   ;;  %v5255_v21 = vld [vmem:[#allocation8 + $0xc8] ss:$16 sps:$4 sm:$0xff]  }
 0x53d   :  { %2572 = vmatpush1.bf16.msra.mxu0 %v5198_v33  ;;  %2654 = vmatpush1.bf16.msra.mxu1 %v5201_v32  ;;  %v5260_v33 = vld [vmem:[#allocation8 + $0xe4] ss:$16 sps:$4 sm:$0xff]   ;;  %v5263_v32 = vld [vmem:[#allocation8 + $0xec] ss:$16 sps:$4 sm:$0xff]  }
 0x53e   :  { %2573 = vmatprep.subr.bf16.mxu0 %v5206_v34  ;;  %2655 = vmatprep.subr.bf16.mxu1 %v5209_v36  ;;  %v5258_v34 = vld [vmem:[#allocation8 + $0xe0] ss:$16 sps:$4 sm:$0xff]   ;;  %v5261_v36 = vld [vmem:[#allocation8 + $0xe8] ss:$16 sps:$4 sm:$0xff]  }
 0x541   :  { %2574 = vmatpush1.bf16.msra.mxu0 %v5204_v37  ;;  %2656 = vmatpush1.bf16.msra.mxu1 %v5207_v38  ;;  %v5266_v37 = vld [vmem:[#allocation8 + $0x104] ss:$16 sps:$4 sm:$0xff]   ;;  %v5269_v38 = vld [vmem:[#allocation8 + $0x10c] ss:$16 sps:$4 sm:$0xff]  }
 0x542   :  { %2575 = vmatprep.subr.bf16.mxu0 %v5212_v39  ;;  %2657 = vmatprep.subr.bf16.mxu1 %v5215_v40  ;;  %v5264_v39 = vld [vmem:[#allocation8 + $0x100] ss:$16 sps:$4 sm:$0xff]   ;;  %v5267_v40 = vld [vmem:[#allocation8 + $0x108] ss:$16 sps:$4 sm:$0xff]  }
 0x545   :  { %2576 = vmatpush1.bf16.msra.mxu0 %v5210_v29  ;;  %2658 = vmatpush1.bf16.msra.mxu1 %v5213_v28  ;;  %v5272_v29 = vld [vmem:[#allocation8 + $0x124] ss:$16 sps:$4 sm:$0xff]   ;;  %v5275_v28 = vld [vmem:[#allocation8 + $0x12c] ss:$16 sps:$4 sm:$0xff]  }
 0x546   :  { %3547 = vmatprep.subr.bf16.mxu0 %v5218_v61  ;;  %3629 = vmatprep.subr.bf16.mxu1 %v5221_v63  ;;  %v5290_v61 = vld [vmem:[#allocation8 + $0x184] ss:$16 sps:$4 sm:$0xff]   ;;  %v5288_v63 = vld [vmem:[#allocation8 + $0x180] ss:$16 sps:$4 sm:$0xff]  }
 0x548   :  { %2578 = vmatmul.mubr.bf16.vlgmr.msra.gmra.mrb[8].mxu0 %v1707_v30  ;;  %2660 = vmatmul.mubr.bf16.vlgmr.msra.gmra.mrb[8].mxu1 %v1707_v30  ;;  %v5273_v30 = vld [vmem:[#allocation8 + $0x128] ss:$16 sps:$4 sm:$0xff]  }
 0x549   :  { %3548 = vmatpush1.bf16.msra.mxu0 %v5216_v60  ;;  %3630 = vmatpush1.bf16.msra.mxu1 %v5219_v62  ;;  %v5285_v60 = vld [vmem:[#allocation8 + $0x168] ss:$16 sps:$4 sm:$0xff]   ;;  %v5293_v62 = vld [vmem:[#allocation8 + $0x18c] ss:$16 sps:$4 sm:$0xff]  }
 0x54a   :  { %3549 = vmatprep.subr.bf16.mxu0 %v5224_v0  ;;  %3631 = vmatprep.subr.bf16.mxu1 %v5227_v1  ;;  %v5291_v0 = vld [vmem:[#allocation8 + $0x188] ss:$16 sps:$4 sm:$0xff]   ;;  %v5296_v1 = vld [vmem:[#allocation8 + $0x1a4] ss:$16 sps:$4 sm:$0xff]  }
 0x54d   :  { %3550 = vmatpush1.bf16.msra.mxu0 %v5222_v2  ;;  %3632 = vmatpush1.bf16.msra.mxu1 %v5225_v3  ;;  %v5299_v2 = vld [vmem:[#allocation8 + $0x1ac] ss:$16 sps:$4 sm:$0xff]   ;;  %v5294_v3 = vld [vmem:[#allocation8 + $0x1a0] ss:$16 sps:$4 sm:$0xff]  }
 0x54e   :  { %3551 = vmatprep.subr.bf16.mxu0 %v5230_v4  ;;  %3633 = vmatprep.subr.bf16.mxu1 %v5233_v5  ;;  %v5297_v4 = vld [vmem:[#allocation8 + $0x1a8] ss:$16 sps:$4 sm:$0xff]   ;;  %v5302_v5 = vld [vmem:[#allocation8 + $0x1c4] ss:$16 sps:$4 sm:$0xff]  }
 0x551   :  { %3552 = vmatpush1.bf16.msra.mxu0 %v5228_v7  ;;  %3634 = vmatpush1.bf16.msra.mxu1 %v5231_v10  ;;  %v5305_v7 = vld [vmem:[#allocation8 + $0x1cc] ss:$16 sps:$4 sm:$0xff]   ;;  %v5300_v10 = vld [vmem:[#allocation8 + $0x1c0] ss:$16 sps:$4 sm:$0xff]  }
 0x552   :  { %3553 = vmatprep.subr.bf16.mxu0 %v5236_v17  ;;  %3635 = vmatprep.subr.bf16.mxu1 %v5239_v18  ;;  %v5303_v17 = vld [vmem:[#allocation8 + $0x1c8] ss:$16 sps:$4 sm:$0xff]   ;;  %v5308_v18 = vld [vmem:[#allocation8 + $0x1e4] ss:$16 sps:$4 sm:$0xff]  }
 0x555   :  { %3554 = vmatpush1.bf16.msra.mxu0 %v5234_v16  ;;  %3636 = vmatpush1.bf16.msra.mxu1 %v5237_v20  ;;  %v5311_v16 = vld [vmem:[#allocation8 + $0x1ec] ss:$16 sps:$4 sm:$0xff]   ;;  %v5306_v20 = vld [vmem:[#allocation8 + $0x1e0] ss:$16 sps:$4 sm:$0xff]  }
 0x556   :  { %3555 = vmatprep.subr.bf16.mxu0 %v5242_v22  ;;  %3637 = vmatprep.subr.bf16.mxu1 %v5245_v23  ;;  %v5309_v22 = vld [vmem:[#allocation8 + $0x1e8] ss:$16 sps:$4 sm:$0xff]   ;;  %v5314_v23 = vld [vmem:[#allocation8 + $0x204] ss:$16 sps:$4 sm:$0xff]  }
 0x559   :  { %3556 = vmatpush1.bf16.msra.mxu0 %v5240_v19  ;;  %3638 = vmatpush1.bf16.msra.mxu1 %v5243_v24  ;;  %v5317_v19 = vld [vmem:[#allocation8 + $0x20c] ss:$16 sps:$4 sm:$0xff]  }
 0x55a   :  { %3557 = vmatprep.subr.bf16.mxu0 %v5248_v25  ;;  %3639 = vmatprep.subr.bf16.mxu1 %v5251_v12 }
 0x55d   :  { %3558 = vmatpush1.bf16.msra.mxu0 %v5246_v11  ;;  %3640 = vmatpush1.bf16.msra.mxu1 %v5249_v15  ;;  %v4355_v11 = vld [vmem:[%s6044_s6 + $0x7] ss:$8 sm:$0xf]  ;;  %v4356_v15 = vld [vmem:[%s6044_s6 + $0x20] ss:$8 sm:$0xf] }
 0x55e   :  { %3559 = vmatprep.subr.bf16.mxu0 %v5254_v14  ;;  %3641 = vmatprep.subr.bf16.mxu1 %v5257_v26  ;;  %v2698_v14 = vrot.slane %v4355_v11, %v5705_v9  ;;  %v2694_v26 = vrot.slane %v4355_v11, %v5698_v6 }
 0x561   :  { %3560 = vmatpush1.bf16.msra.mxu0 %v5252_v27  ;;  %3642 = vmatpush1.bf16.msra.mxu1 %v5255_v21  ;;  %v2706_v27 = vrot.slane %v4355_v11, %v5710_v13  ;;  %v2702_v21 = vrot.slane %v4355_v11, %v5703_v8  ;;  %v5365_v11 = vld [vmem:[#allocation8 + $0x30c] ss:$16 sps:$4 sm:$0xff]  }
 0x562   :  { %3561 = vmatprep.subr.bf16.mxu0 %v5260_v33  ;;  %3643 = vmatprep.subr.bf16.mxu1 %v5263_v32  ;;  %v2727_v32 = vrot.slane %v4356_v15, %v5705_v9 }
 0x565   :  { %3562 = vmatpush1.bf16.msra.mxu0 %v5258_v34  ;;  %3644 = vmatpush1.bf16.msra.mxu1 %v5261_v36  ;;  %v2723_v34 = vrot.slane %v4356_v15, %v5698_v6  ;;  %v2735_v36 = vrot.slane %v4356_v15, %v5710_v13 }
 0x566   :  { %3563 = vmatprep.subr.bf16.mxu0 %v5266_v37  ;;  %3645 = vmatprep.subr.bf16.mxu1 %v5269_v38  ;;  %v2731_v37 = vrot.slane %v4356_v15, %v5703_v8  ;;  %v5360_v15 = vld [vmem:[#allocation8 + $0x300] ss:$16 sps:$4 sm:$0xff]  }
 0x569   :  { %3564 = vmatpush1.bf16.msra.mxu0 %v5264_v39  ;;  %3646 = vmatpush1.bf16.msra.mxu1 %v5267_v40 }
 0x56a   :  { %3565 = vmatprep.subr.bf16.mxu0 %v5272_v29  ;;  %3647 = vmatprep.subr.bf16.mxu1 %v5275_v28 }
 0x56d   :  { %3566 = vmatpush1.bf16.msra.mxu0 %v5270_v31  ;;  %3648 = vmatpush1.bf16.msra.mxu1 %v5273_v30 }
 0x61b   :  { %v2579_v44 = vpop.f32.mrb[8].mxu0  ;;  %v2661_v46 = vpop.f32.mrb[8].mxu1 }
 0x61c   :  { %v5832_v47 = vadd.f32 %v2579_v44, %v1847_v42  ;;  %v2581_v35 = vpop.f32.mrb[9].mxu0  ;;  %v2663_v48 = vpop.f32.mrb[9].mxu1  ;;  %v5837_v55 = vadd.f32 %v2661_v46, %v1855_v45 }
 0x61d   :  { %v5834_v49 = vadd.f32 %v2581_v35, %v1851_v43  ;;  %v2583_v51 = vpop.f32.mrb[10].mxu0  ;;  %v2665_v52 = vpop.f32.mrb[10].mxu1  ;;  %v5841_v57 = vadd.f32 %v2663_v48, %v1859_v50 }
 0x61e   :  { %v2584_v53 = vpop.f32.mrb[11].mxu0  ;;  %v2666_v54 = vpop.f32.mrb[11].mxu1 }
 0x61f   :  { %v2668_v56 = vadd.f32 %v5834_v49, %v5832_v47  ;;  %v5278_v53 = vld [vmem:[#allocation8 + $0x144] ss:$16 sps:$4 sm:$0xff]   ;;  %v5281_v54 = vld [vmem:[#allocation8 + $0x14c] ss:$16 sps:$4 sm:$0xff]  }
 0x620   :  { %3567 = vmatprep.subr.bf16.mxu0 %v5278_v53  ;;  %3649 = vmatprep.subr.bf16.mxu1 %v5281_v54  ;;  %v5312_v53 = vld [vmem:[#allocation8 + $0x200] ss:$16 sps:$4 sm:$0xff]   ;;  %v5315_v54 = vld [vmem:[#allocation8 + $0x208] ss:$16 sps:$4 sm:$0xff]  }
 0x621   :  { %v2669_v58 = vadd.f32 %v5837_v55, %v2668_v56  ;;  %v5279_v56 = vld [vmem:[#allocation8 + $0x148] ss:$16 sps:$4 sm:$0xff]  }
 0x622   :  { %3650 = vmatpush1.bf16.msra.mxu1 %v5279_v56  ;;  %v5321_v56 = vld [vmem:[#allocation8 + $0x228] ss:$16 sps:$4 sm:$0xff]  }
 0x623   :  { %v2670_v59 = vadd.f32 %v5841_v57, %v2669_v58  ;;  %v5287_v58 = vld [vmem:[#allocation8 + $0x16c] ss:$16 sps:$4 sm:$0xff]  }
 0x624   :  { %3651 = vmatprep.subr.bf16.mxu1 %v5287_v58  ;;  %v5329_v58 = vld [vmem:[#allocation8 + $0x24c] ss:$16 sps:$4 sm:$0xff]  }
 0x625   :  { %2671 = vadd.xlane.f32.xlu0 %v2670_v59  ;;  %v5282_v59 = vld [vmem:[#allocation8 + $0x160] ss:$16 sps:$4 sm:$0xff]  }
 0x626   :  { %3652 = vmatpush1.bf16.msra.mxu1 %v5285_v60  ;;  %v5327_v60 = vld [vmem:[#allocation8 + $0x248] ss:$16 sps:$4 sm:$0xff]  }
 0x627   :  { %3653 = vmatprep.subr.bf16.mxu1 %v5293_v62  ;;  %v5335_v62 = vld [vmem:[#allocation8 + $0x26c] ss:$16 sps:$4 sm:$0xff]  }
 0x62a   :  { %3654 = vmatpush1.bf16.msra.mxu1 %v5291_v0  ;;  %v5333_v0 = vld [vmem:[#allocation8 + $0x268] ss:$16 sps:$4 sm:$0xff]  }
 0x62b   :  { %3655 = vmatprep.subr.bf16.mxu1 %v5299_v2  ;;  %v5341_v2 = vld [vmem:[#allocation8 + $0x28c] ss:$16 sps:$4 sm:$0xff]  }
 0x62e   :  { %3656 = vmatpush1.bf16.msra.mxu1 %v5297_v4  ;;  %v5339_v4 = vld [vmem:[#allocation8 + $0x288] ss:$16 sps:$4 sm:$0xff]  }
 0x62f   :  { %3657 = vmatprep.subr.bf16.mxu1 %v5305_v7  ;;  %v5347_v7 = vld [vmem:[#allocation8 + $0x2ac] ss:$16 sps:$4 sm:$0xff]  }
 0x632   :  { %3658 = vmatpush1.bf16.msra.mxu1 %v5303_v17  ;;  %v5345_v17 = vld [vmem:[#allocation8 + $0x2a8] ss:$16 sps:$4 sm:$0xff]  }
 0x633   :  { %3659 = vmatprep.subr.bf16.mxu1 %v5311_v16  ;;  %v5353_v16 = vld [vmem:[#allocation8 + $0x2cc] ss:$16 sps:$4 sm:$0xff]  }
 0x636   :  { %3660 = vmatpush1.bf16.msra.mxu1 %v5309_v22  ;;  %v5351_v22 = vld [vmem:[#allocation8 + $0x2c8] ss:$16 sps:$4 sm:$0xff]  }
 0x637   :  { %3670 = vmatprep.subr.bf16.mxu1 %v5317_v19  ;;  %v5359_v19 = vld [vmem:[#allocation8 + $0x2ec] ss:$16 sps:$4 sm:$0xff]  }
 0x6b2   :  { %v2672_v41 = vpop.xlane.xlu0 %2671 }
 0x6b3   :  { %v2673_v42 = vmul.f32 0.001953125, %v2672_v41 }
 0x6b5   :  { %v5846_v43 = vsub.f32 %v5832_v47, %v2673_v42  ;;  %v5849_v44 = vsub.f32 %v5834_v49, %v2673_v42  ;;  %v5852_v45 = vsub.f32 %v5837_v55, %v2673_v42  ;;  %v5855_v46 = vsub.f32 %v5841_v57, %v2673_v42  ;;  %v5276_v55 = vld [vmem:[#allocation8 + $0x140] ss:$16 sps:$4 sm:$0xff]   ;;  %v5284_v57 = vld [vmem:[#allocation8 + $0x164] ss:$16 sps:$4 sm:$0xff]  }
 0x6b6   :  { %3568 = vmatpush1.bf16.msra.mxu0 %v5276_v55 }
 0x6b7   :  { %v2678_v35 = vmul.f32 %v5846_v43, %v5846_v43  ;;  %v2679_v48 = vmul.f32 %v5849_v44, %v5849_v44  ;;  %v2680_v50 = vmul.f32 %v5852_v45, %v5852_v45  ;;  %v2681_v49 = vmul.f32 %v5855_v46, %v5855_v46  ;;  %3569 = vmatprep.subr.bf16.mxu0 %v5284_v57  ;;  %v5326_v57 = vld [vmem:[#allocation8 + $0x244] ss:$16 sps:$4 sm:$0xff]  }
 0x6b9   :  { %v2682_v47 = vadd.f32 %v2679_v48, %v2678_v35 }
 0x6ba   :  { %3570 = vmatpush1.bf16.msra.mxu0 %v5282_v59  ;;  %v5324_v59 = vld [vmem:[#allocation8 + $0x240] ss:$16 sps:$4 sm:$0xff]  }
 0x6bb   :  { %v2683_v51 = vadd.f32 %v2682_v47, %v2680_v50  ;;  %3571 = vmatprep.subr.bf16.mxu0 %v5290_v61  ;;  %v5332_v61 = vld [vmem:[#allocation8 + $0x264] ss:$16 sps:$4 sm:$0xff]  }
 0x6bd   :  { %v2684_v52 = vadd.f32 %v2683_v51, %v2681_v49 }
 0x6be   :  { %3572 = vmatpush1.bf16.msra.mxu0 %v5288_v63  ;;  %v5330_v63 = vld [vmem:[#allocation8 + $0x260] ss:$16 sps:$4 sm:$0xff]  }
 0x6bf   :  { %2685 = vadd.xlane.f32.xlu1 %v2684_v52  ;;  %3573 = vmatprep.subr.bf16.mxu0 %v5296_v1  ;;  %v5338_v1 = vld [vmem:[#allocation8 + $0x284] ss:$16 sps:$4 sm:$0xff]  }
 0x6c2   :  { %3574 = vmatpush1.bf16.msra.mxu0 %v5294_v3  ;;  %v5336_v3 = vld [vmem:[#allocation8 + $0x280] ss:$16 sps:$4 sm:$0xff]  }
 0x6c3   :  { %3575 = vmatprep.subr.bf16.mxu0 %v5302_v5  ;;  %v5344_v5 = vld [vmem:[#allocation8 + $0x2a4] ss:$16 sps:$4 sm:$0xff]  }
 0x6c6   :  { %3576 = vmatpush1.bf16.msra.mxu0 %v5300_v10  ;;  %v5342_v10 = vld [vmem:[#allocation8 + $0x2a0] ss:$16 sps:$4 sm:$0xff]  }
 0x6c7   :  { %3577 = vmatprep.subr.bf16.mxu0 %v5308_v18  ;;  %v5350_v18 = vld [vmem:[#allocation8 + $0x2c4] ss:$16 sps:$4 sm:$0xff]  }
 0x6ca   :  { %3578 = vmatpush1.bf16.msra.mxu0 %v5306_v20  ;;  %v5348_v20 = vld [vmem:[#allocation8 + $0x2c0] ss:$16 sps:$4 sm:$0xff]  }
 0x6cb   :  { %3588 = vmatprep.subr.bf16.mxu0 %v5314_v23  ;;  %v5356_v23 = vld [vmem:[#allocation8 + $0x2e4] ss:$16 sps:$4 sm:$0xff]  }
 0x74c   :  { %v2686_v24 = vpop.xlane.xlu1 %2685 }
 0x74d   :  { %v2687_v25 = vmul.f32 0.001953125, %v2686_v24  ;;  %v5354_v24 = vld [vmem:[#allocation8 + $0x2e0] ss:$16 sps:$4 sm:$0xff]  }
 0x74f   :  { %v2688_v12 = vadd.f32 1e-05, %v2687_v25  ;;  %v5357_v25 = vld [vmem:[#allocation8 + $0x2e8] ss:$16 sps:$4 sm:$0xff]  }
 0x751   :  { %5444 = vrsqrt.f32 %v2688_v12  ;;  %v5362_v12 = vld [vmem:[#allocation8 + $0x304] ss:$16 sps:$4 sm:$0xff]  }
 0x75b   :  { %v5445_v33 = vpop.eup %5444 }
 0x75c   :  { %v2712_v38 = vmul.f32 %v5445_v33, %v2698_v14  ;;  %v2711_v39 = vmul.f32 %v5445_v33, %v2694_v26  ;;  %v2714_v40 = vmul.f32 %v5445_v33, %v2706_v27  ;;  %v2713_v29 = vmul.f32 %v5445_v33, %v2702_v21  ;;  %v5363_v14 = vld [vmem:[#allocation8 + $0x308] ss:$16 sps:$4 sm:$0xff]   ;;  %v5368_v26 = vld [vmem:[#allocation8 + $0x324] ss:$16 sps:$4 sm:$0xff]   ;;  %v5371_v27 = vld [vmem:[#allocation8 + $0x32c] ss:$16 sps:$4 sm:$0xff]  }
 0x75d   :  { %v5366_v21 = vld [vmem:[#allocation8 + $0x320] ss:$16 sps:$4 sm:$0xff]   ;;  %v5369_v33 = vld [vmem:[#allocation8 + $0x328] ss:$16 sps:$4 sm:$0xff]  }
 0x75e   :  { %v2716_v28 = vmul.f32 %v2712_v38, %v5849_v44  ;;  %v2715_v31 = vmul.f32 %v2711_v39, %v5846_v43  ;;  %v2718_v30 = vmul.f32 %v2714_v40, %v5855_v46  ;;  %v2717_v41 = vmul.f32 %v2713_v29, %v5852_v45  ;;  %v5320_v44 = vld [vmem:[#allocation8 + $0x224] ss:$16 sps:$4 sm:$0xff]   ;;  %v5323_v43 = vld [vmem:[#allocation8 + $0x22c] ss:$16 sps:$4 sm:$0xff]   ;;  %v5318_v45 = vld [vmem:[#allocation8 + $0x220] ss:$16 sps:$4 sm:$0xff]  }
 0x75f   :  { %v5380_v38 = vld [vmem:[#allocation8 + $0x364] ss:$16 sps:$4 sm:$0xff]   ;;  %v5383_v39 = vld [vmem:[#allocation8 + $0x36c] ss:$16 sps:$4 sm:$0xff]   ;;  %v5378_v40 = vld [vmem:[#allocation8 + $0x360] ss:$16 sps:$4 sm:$0xff]  }
 0x760   :  { %v2741_v42 = vadd.f32 %v2727_v32, %v2716_v28  ;;  %v2740_v35 = vadd.f32 %v2723_v34, %v2715_v31  ;;  %v2743_v48 = vadd.f32 %v2735_v36, %v2718_v30  ;;  %v5883_v50 = vadd.f32 %v2731_v37, %v2717_v41  ;;  %v5374_v32 = vld [vmem:[#allocation8 + $0x344] ss:$16 sps:$4 sm:$0xff]   ;;  %v5377_v34 = vld [vmem:[#allocation8 + $0x34c] ss:$16 sps:$4 sm:$0xff]   ;;  %v5372_v36 = vld [vmem:[#allocation8 + $0x340] ss:$16 sps:$4 sm:$0xff]  }
 0x761   :  { %v5375_v37 = vld [vmem:[#allocation8 + $0x348] ss:$16 sps:$4 sm:$0xff]   ;;  %v5386_v28 = vld [vmem:[#allocation8 + $0x384] ss:$16 sps:$4 sm:$0xff]   ;;  %v5389_v31 = vld [vmem:[#allocation8 + $0x38c] ss:$16 sps:$4 sm:$0xff]  }
 0x762   :  { %v2745_v47 = vmax.f32 %v2741_v42, 0.0  ;;  %v2744_v49 = vmax.f32 %v2740_v35, 0.0  ;;  %v2747_v51 = vmax.f32 %v2743_v48, 0.0  ;;  %v5381_v29 = vld [vmem:[#allocation8 + $0x368] ss:$16 sps:$4 sm:$0xff]  }
 0x763   :  { %v5384_v30 = vld [vmem:[#allocation8 + $0x380] ss:$16 sps:$4 sm:$0xff]   ;;  %v5387_v41 = vld [vmem:[#allocation8 + $0x388] ss:$16 sps:$4 sm:$0xff]   ;;  %v5392_v42 = vld [vmem:[#allocation8 + $0x3a4] ss:$16 sps:$4 sm:$0xff]  }
 0x764   :  { %v2749_v52 = vpack.c.bf16 %v2745_v47, %v2745_v47  ;;  %v2748_v55 = vpack.c.bf16 %v2744_v49, %v2744_v49  ;;  %v2751_v46 = vpack.c.bf16 %v2747_v51, %v2747_v51  ;;  %v5395_v35 = vld [vmem:[#allocation8 + $0x3ac] ss:$16 sps:$4 sm:$0xff]   ;;  %v5390_v48 = vld [vmem:[#allocation8 + $0x3a0] ss:$16 sps:$4 sm:$0xff]   ;;  %v5393_v47 = vld [vmem:[#allocation8 + $0x3a8] ss:$16 sps:$4 sm:$0xff]  }
 0x765   :  { %v5398_v49 = vld [vmem:[#allocation8 + $0x3c4] ss:$16 sps:$4 sm:$0xff]   ;;  %v5401_v51 = vld [vmem:[#allocation8 + $0x3cc] ss:$16 sps:$4 sm:$0xff]  }
 0x766   :  { %3579 = vmatprep.mubr.bf16.mxu0 %v2749_v52  ;;  %3661 = vmatprep.mubr.bf16.mxu1 %v2749_v52  ;;  %v5396_v52 = vld [vmem:[#allocation8 + $0x3c0] ss:$16 sps:$4 sm:$0xff]  }
 0x767   :  { %3580 = vmatmul.mubr.bf16.vlgmr.msra.gmra.mrb[12].mxu0 %v2748_v55  ;;  %3662 = vmatmul.mubr.bf16.vlgmr.msra.gmra.mrb[12].mxu1 %v2748_v55  ;;  %v5407_v55 = vld [vmem:[#allocation8 + $0x3ec] ss:$16 sps:$4 sm:$0xff]  }
 0x768   :  { %3589 = vmatpush1.bf16.msra.mxu0 %v5312_v53  ;;  %3671 = vmatpush1.bf16.msra.mxu1 %v5315_v54  ;;  %v5399_v53 = vld [vmem:[#allocation8 + $0x3c8] ss:$16 sps:$4 sm:$0xff]   ;;  %v5404_v54 = vld [vmem:[#allocation8 + $0x3e4] ss:$16 sps:$4 sm:$0xff]  }
 0x769   :  { %3620 = vmatprep.mubr.bf16.mxu0 %v2751_v46  ;;  %3702 = vmatprep.mubr.bf16.mxu1 %v2751_v46  ;;  %v2746_v46 = vmax.f32 %v5883_v50, 0.0 }
 0x76a   :  { %3590 = vmatprep.subr.bf16.mxu0 %v5320_v44  ;;  %3672 = vmatprep.subr.bf16.mxu1 %v5323_v43  ;;  %v5402_v44 = vld [vmem:[#allocation8 + $0x3e0] ss:$16 sps:$4 sm:$0xff]   ;;  %v5405_v43 = vld [vmem:[#allocation8 + $0x3e8] ss:$16 sps:$4 sm:$0xff]  }
 0x76c   :  { %3591 = vmatpush1.bf16.msra.mxu0 %v5318_v45  ;;  %3673 = vmatpush1.bf16.msra.mxu1 %v5321_v56  ;;  %v2750_v45 = vpack.c.bf16 %v2746_v46, %v2746_v46  ;;  %v4485_v56 = vld [vmem:[%s6044_s6 + $0x21] ss:$8 sm:$0xf] }
 0x76d   :  { %3592 = vmatprep.subr.bf16.mxu0 %v5326_v57  ;;  %3674 = vmatprep.subr.bf16.mxu1 %v5329_v58  ;;  %v2890_v57 = vrot.slane %v4485_v56, %v5698_v6  ;;  %v2894_v58 = vrot.slane %v4485_v56, %v5705_v9  ;;  %v5433_v46 = vld [vmem:[%s6043_s5 + $0xf0] sm:$0xff]  }
 0x770   :  { %3593 = vmatpush1.bf16.msra.mxu0 %v5324_v59  ;;  %3675 = vmatpush1.bf16.msra.mxu1 %v5327_v60  ;;  %v2898_v60 = vrot.slane %v4485_v56, %v5703_v8 }
 0x771   :  { %3594 = vmatprep.subr.bf16.mxu0 %v5332_v61  ;;  %3676 = vmatprep.subr.bf16.mxu1 %v5335_v62 }
 0x774   :  { %3595 = vmatpush1.bf16.msra.mxu0 %v5330_v63  ;;  %3677 = vmatpush1.bf16.msra.mxu1 %v5333_v0 }
 0x775   :  { %3596 = vmatprep.subr.bf16.mxu0 %v5338_v1  ;;  %3678 = vmatprep.subr.bf16.mxu1 %v5341_v2  ;;  %v2902_v1 = vrot.slane %v4485_v56, %v5710_v13  ;;  %v5435_v56 = vld [vmem:[%s6043_s5 + $0xb0] sm:$0xff]  }
 0x778   :  { %3597 = vmatpush1.bf16.msra.mxu0 %v5336_v3  ;;  %3679 = vmatpush1.bf16.msra.mxu1 %v5339_v4 }
 0x779   :  { %3598 = vmatprep.subr.bf16.mxu0 %v5344_v5  ;;  %3680 = vmatprep.subr.bf16.mxu1 %v5347_v7 }
 0x77c   :  { %3599 = vmatpush1.bf16.msra.mxu0 %v5342_v10  ;;  %3681 = vmatpush1.bf16.msra.mxu1 %v5345_v17 }
 0x77d   :  { %3600 = vmatprep.subr.bf16.mxu0 %v5350_v18  ;;  %3682 = vmatprep.subr.bf16.mxu1 %v5353_v16 }
 0x780   :  { %3601 = vmatpush1.bf16.msra.mxu0 %v5348_v20  ;;  %3683 = vmatpush1.bf16.msra.mxu1 %v5351_v22  ;;  %v5408_v20 = vld [vmem:[%s6043_s5 + $0x40] sm:$0xff]  }
 0x781   :  { %3602 = vmatprep.subr.bf16.mxu0 %v5356_v23  ;;  %3684 = vmatprep.subr.bf16.mxu1 %v5359_v19  ;;  %v5409_v22 = vld [vmem:[%s6043_s5 + $0xc0] sm:$0xff]  }
 0x782   :  { %v5410_v23 = vld [vmem:[%s6043_s5] sm:$0xff]  }
 0x783   :  { %v5411_v19 = vld [vmem:[%s6043_s5 + $0x80] sm:$0xff]  }
 0x784   :  { %3603 = vmatpush1.bf16.msra.mxu0 %v5354_v24  ;;  %3685 = vmatpush1.bf16.msra.mxu1 %v5357_v25  ;;  %v5412_v24 = vld [vmem:[%s6043_s5 + $0x48] sm:$0xff]  }
 0x785   :  { %3604 = vmatprep.subr.bf16.mxu0 %v5362_v12  ;;  %3686 = vmatprep.subr.bf16.mxu1 %v5365_v11  ;;  %v5413_v25 = vld [vmem:[%s6043_s5 + $0xc8] sm:$0xff]  }
 0x786   :  { %v5414_v12 = vld [vmem:[%s6043_s5 + $0x8] sm:$0xff]  }
 0x787   :  { %v5415_v11 = vld [vmem:[%s6043_s5 + $0x88] sm:$0xff]  }
 0x788   :  { %3605 = vmatpush1.bf16.msra.mxu0 %v5360_v15  ;;  %3687 = vmatpush1.bf16.msra.mxu1 %v5363_v14 }
 0x789   :  { %3606 = vmatprep.subr.bf16.mxu0 %v5368_v26  ;;  %3688 = vmatprep.subr.bf16.mxu1 %v5371_v27 }
 0x78c   :  { %3607 = vmatpush1.bf16.msra.mxu0 %v5366_v21  ;;  %3689 = vmatpush1.bf16.msra.mxu1 %v5369_v33 }
 0x78d   :  { %3608 = vmatprep.subr.bf16.mxu0 %v5374_v32  ;;  %3690 = vmatprep.subr.bf16.mxu1 %v5377_v34 }
 0x790   :  { %3609 = vmatpush1.bf16.msra.mxu0 %v5372_v36  ;;  %3691 = vmatpush1.bf16.msra.mxu1 %v5375_v37 }
 0x791   :  { %3610 = vmatprep.subr.bf16.mxu0 %v5380_v38  ;;  %3692 = vmatprep.subr.bf16.mxu1 %v5383_v39 }
 0x794   :  { %3611 = vmatpush1.bf16.msra.mxu0 %v5378_v40  ;;  %3693 = vmatpush1.bf16.msra.mxu1 %v5381_v29  ;;  %v5416_v29 = vld [vmem:[%s6043_s5 + $0x50] sm:$0xff]  }
 0x795   :  { %3612 = vmatprep.subr.bf16.mxu0 %v5386_v28  ;;  %3694 = vmatprep.subr.bf16.mxu1 %v5389_v31  ;;  %v5417_v28 = vld [vmem:[%s6043_s5 + $0xd0] sm:$0xff]  }
 0x796   :  { %v5418_v31 = vld [vmem:[%s6043_s5 + $0x10] sm:$0xff]  }
 0x798   :  { %3613 = vmatpush1.bf16.msra.mxu0 %v5384_v30  ;;  %3695 = vmatpush1.bf16.msra.mxu1 %v5387_v41  ;;  %v5419_v30 = vld [vmem:[%s6043_s5 + $0x90] sm:$0xff]   ;;  %v5420_v41 = vld [vmem:[%s6043_s5 + $0x58] sm:$0xff]  }
 0x799   :  { %3614 = vmatprep.subr.bf16.mxu0 %v5392_v42  ;;  %3696 = vmatprep.subr.bf16.mxu1 %v5395_v35  ;;  %v5421_v42 = vld [vmem:[%s6043_s5 + $0xd8] sm:$0xff]  }
 0x79a   :  { %v5422_v35 = vld [vmem:[%s6043_s5 + $0x18] sm:$0xff]  }
 0x79c   :  { %3615 = vmatpush1.bf16.msra.mxu0 %v5390_v48  ;;  %3697 = vmatpush1.bf16.msra.mxu1 %v5393_v47  ;;  %v5423_v48 = vld [vmem:[%s6043_s5 + $0x98] sm:$0xff]   ;;  %v5424_v47 = vld [vmem:[%s6043_s5 + $0x60] sm:$0xff]  }
 0x79d   :  { %3616 = vmatprep.subr.bf16.mxu0 %v5398_v49  ;;  %3698 = vmatprep.subr.bf16.mxu1 %v5401_v51  ;;  %v5425_v49 = vld [vmem:[%s6043_s5 + $0xe0] sm:$0xff]  }
 0x79e   :  { %v5426_v51 = vld [vmem:[%s6043_s5 + $0x20] sm:$0xff]  }
 0x7a0   :  { %3617 = vmatpush1.bf16.msra.mxu0 %v5396_v52  ;;  %3699 = vmatpush1.bf16.msra.mxu1 %v5399_v53  ;;  %v5427_v52 = vld [vmem:[%s6043_s5 + $0xa0] sm:$0xff]   ;;  %v5428_v53 = vld [vmem:[%s6043_s5 + $0x68] sm:$0xff]  }
 0x7a1   :  { %3618 = vmatprep.subr.bf16.mxu0 %v5404_v54  ;;  %3700 = vmatprep.subr.bf16.mxu1 %v5407_v55  ;;  %v5429_v54 = vld [vmem:[%s6043_s5 + $0xe8] sm:$0xff]  }
 0x7a2   :  { %v5430_v55 = vld [vmem:[%s6043_s5 + $0x28] sm:$0xff]  }
 0x7a4   :  { %3619 = vmatpush1.bf16.msra.mxu0 %v5402_v44  ;;  %3701 = vmatpush1.bf16.msra.mxu1 %v5405_v43  ;;  %v5431_v44 = vld [vmem:[%s6043_s5 + $0xa8] sm:$0xff]   ;;  %v5432_v43 = vld [vmem:[%s6043_s5 + $0x70] sm:$0xff]  }
 0x7a5   :  { %4649 = vmatprep.subr.bf16.mxu0 %v5408_v20  ;;  %4671 = vmatprep.subr.bf16.mxu1 %v5409_v22 }
 0x7a7   :  { %3621 = vmatmul.mubr.bf16.vlgmr.msra.gmra.mrb[12].mxu0 %v2750_v45  ;;  %3703 = vmatmul.mubr.bf16.vlgmr.msra.gmra.mrb[12].mxu1 %v2750_v45  ;;  %v5434_v45 = vld [vmem:[%s6043_s5 + $0x30] sm:$0xff]  }
 0x7a8   :  { %4650 = vmatpush3.bf16.msra.mxu0 %v5410_v23  ;;  %4672 = vmatpush3.bf16.msra.mxu1 %v5411_v19 }
 0x7a9   :  { %4651 = vmatprep.subr.bf16.mxu0 %v5412_v24  ;;  %4673 = vmatprep.subr.bf16.mxu1 %v5413_v25 }
 0x7ac   :  { %4652 = vmatpush3.bf16.msra.mxu0 %v5414_v12  ;;  %4674 = vmatpush3.bf16.msra.mxu1 %v5415_v11 }
 0x7ad   :  { %4653 = vmatprep.subr.bf16.mxu0 %v5416_v29  ;;  %4675 = vmatprep.subr.bf16.mxu1 %v5417_v28 }
 0x7b0   :  { %4654 = vmatpush3.bf16.msra.mxu0 %v5418_v31  ;;  %4676 = vmatpush3.bf16.msra.mxu1 %v5419_v30 }
 0x7b1   :  { %4655 = vmatprep.subr.bf16.mxu0 %v5420_v41  ;;  %4677 = vmatprep.subr.bf16.mxu1 %v5421_v42 }
 0x7b4   :  { %4656 = vmatpush3.bf16.msra.mxu0 %v5422_v35  ;;  %4678 = vmatpush3.bf16.msra.mxu1 %v5423_v48 }
 0x7b5   :  { %4657 = vmatprep.subr.bf16.mxu0 %v5424_v47  ;;  %4679 = vmatprep.subr.bf16.mxu1 %v5425_v49 }
 0x7b8   :  { %4658 = vmatpush3.bf16.msra.mxu0 %v5426_v51  ;;  %4680 = vmatpush3.bf16.msra.mxu1 %v5427_v52 }
 0x7b9   :  { %4659 = vmatprep.subr.bf16.mxu0 %v5428_v53  ;;  %4681 = vmatprep.subr.bf16.mxu1 %v5429_v54 }
 0x7bc   :  { %4660 = vmatpush3.bf16.msra.mxu0 %v5430_v55  ;;  %4682 = vmatpush3.bf16.msra.mxu1 %v5431_v44 }
 0x7bd   :  { %4661 = vmatprep.subr.bf16.mxu0 %v5432_v43  ;;  %4683 = vmatprep.subr.bf16.mxu1 %v5433_v46 }
 0x7c0   :  { %4662 = vmatpush3.bf16.msra.mxu0 %v5434_v45  ;;  %4684 = vmatpush3.bf16.msra.mxu1 %v5435_v56 }
 0x87a   :  { %v3622_v59 = vpop.f32.mrb[12].mxu0  ;;  %v3704_v61 = vpop.f32.mrb[12].mxu1 }
 0x87b   :  { %v4701_v62 = vadd.f32 %v3622_v59, %v2890_v57  ;;  %v3624_v63 = vpop.f32.mrb[13].mxu0  ;;  %v3706_v50 = vpop.f32.mrb[13].mxu1  ;;  %v4703_v7 = vadd.f32 %v3704_v61, %v2898_v60  ;;  %v5436_v57 = vld [vmem:[%s6043_s5 + $0x78] sm:$0xff]  }
 0x87c   :  { %v4702_v0 = vadd.f32 %v3624_v63, %v2894_v58  ;;  %v3626_v2 = vpop.f32.mrb[14].mxu0  ;;  %v3708_v3 = vpop.f32.mrb[14].mxu1  ;;  %v4704_v17 = vadd.f32 %v3706_v50, %v2902_v1  ;;  %v5437_v58 = vld [vmem:[%s6043_s5 + $0xf8] sm:$0xff]   ;;  %4663 = vmatprep.subr.bf16.mxu0 %v5436_v57 }
 0x87d   :  { %v3627_v4 = vpop.f32.mrb[15].mxu0  ;;  %v3709_v5 = vpop.f32.mrb[15].mxu1  ;;  %v5438_v59 = vld [vmem:[%s6043_s5 + $0x38] sm:$0xff]   ;;  %4685 = vmatprep.subr.bf16.mxu1 %v5437_v58 }
 0x87e   :  { %v3711_v10 = vadd.f32 %v4702_v0, %v4701_v62  ;;  %v5439_v60 = vld [vmem:[%s6043_s5 + $0xb8] sm:$0xff]   ;;  %4664 = vmatpush3.bf16.msra.mxu0 %v5438_v59 }
 0x87f   :  { %4686 = vmatpush3.bf16.msra.mxu1 %v5439_v60  ;;  %v4486_v50 = vld [vmem:[%s6044_s6 + $0x22] ss:$8 sm:$0xf] }
 0x880   :  { %v3712_v18 = vadd.f32 %v4703_v7, %v3711_v10  ;;  %v3741_v1 = vrot.slane %v4486_v50, %v5705_v9  ;;  %v3749_v2 = vrot.slane %v4486_v50, %v5710_v13  ;;  %v3737_v3 = vrot.slane %v4486_v50, %v5698_v6 }
 0x881   :  { %v3745_v4 = vrot.slane %v4486_v50, %v5703_v8 }
 0x882   :  { %v3713_v16 = vadd.f32 %v4704_v17, %v3712_v18 }
 0x884   :  { %3714 = vadd.xlane.f32.xlu0 %v3713_v16 }
 0x911   :  { %v3715_v15 = vpop.xlane.xlu0 %3714 }
 0x912   :  { %v3716_v14 = vmul.f32 0.001953125, %v3715_v15 }
 0x914   :  { %v5917_v26 = vsub.f32 %v4701_v62, %v3716_v14  ;;  %v5919_v27 = vsub.f32 %v4702_v0, %v3716_v14  ;;  %v5921_v21 = vsub.f32 %v4703_v7, %v3716_v14  ;;  %v5923_v33 = vsub.f32 %v4704_v17, %v3716_v14  ;;  %v4487_v0 = vld [vmem:[%s6044_s6 + $0x23] ss:$8 sm:$0xf] }
 0x915   :  { %v3770_v7 = vrot.slane %v4487_v0, %v5705_v9  ;;  %v3778_v10 = vrot.slane %v4487_v0, %v5710_v13  ;;  %v3766_v17 = vrot.slane %v4487_v0, %v5698_v6  ;;  %v3774_v18 = vrot.slane %v4487_v0, %v5703_v8 }
 0x916   :  { %v3721_v32 = vmul.f32 %v5917_v26, %v5917_v26  ;;  %v3722_v34 = vmul.f32 %v5919_v27, %v5919_v27  ;;  %v3723_v36 = vmul.f32 %v5921_v21, %v5921_v21  ;;  %v3724_v38 = vmul.f32 %v5923_v33, %v5923_v33 }
 0x918   :  { %v3725_v37 = vadd.f32 %v3722_v34, %v3721_v32 }
 0x91a   :  { %v3726_v39 = vadd.f32 %v3725_v37, %v3723_v36 }
 0x91c   :  { %v3727_v40 = vadd.f32 %v3726_v39, %v3724_v38 }
 0x91e   :  { %3728 = vadd.xlane.f32.xlu1 %v3727_v40 }
 0x9ab   :  { %v3729_v61 = vpop.xlane.xlu1 %3728 }
 0x9ac   :  { %v3730_v62 = vmul.f32 0.001953125, %v3729_v61 }
 0x9ae   :  { %v3731_v63 = vadd.f32 1e-05, %v3730_v62 }
 0x9b0   :  { %5446 = vrsqrt.f32 %v3731_v63 }
 0x9ba   :  { %v5447_v5 = vpop.eup %5446 }
 0x9bb   :  { %v3755_v16 = vmul.f32 %v5447_v5, %v3741_v1  ;;  %v3757_v20 = vmul.f32 %v5447_v5, %v3749_v2  ;;  %v3754_v22 = vmul.f32 %v5447_v5, %v3737_v3  ;;  %v3756_v23 = vmul.f32 %v5447_v5, %v3745_v4 }
 0x9bd   :  { %v3759_v19 = vmul.f32 %v3755_v16, %v5919_v27  ;;  %v3761_v24 = vmul.f32 %v3757_v20, %v5923_v33  ;;  %v3758_v25 = vmul.f32 %v3754_v22, %v5917_v26  ;;  %v3760_v12 = vmul.f32 %v3756_v23, %v5921_v21  ;;  %v4616_v21 = vld [vmem:[%s6045_s7] ss:$0 sm:$0xff] }
 0x9bf   :  { %v3784_v11 = vadd.f32 %v3770_v7, %v3759_v19  ;;  %v3786_v9 = vadd.f32 %v3778_v10, %v3761_v24  ;;  %v3783_v15 = vadd.f32 %v3766_v17, %v3758_v25  ;;  %v3785_v13 = vadd.f32 %v3774_v18, %v3760_v12 }
 0x9c1   :  { %v3788_v14 = vmax.f32 %v3784_v11, 0.0  ;;  %v3790_v6 = vmax.f32 %v3786_v9, 0.0  ;;  %v3787_v32 = vmax.f32 %v3783_v15, 0.0  ;;  %v3789_v8 = vmax.f32 %v3785_v13, 0.0 }
 0x9c3   :  { %v3792_v34 = vpack.c.bf16 %v3788_v14, %v3788_v14  ;;  %v3794_v36 = vpack.c.bf16 %v3790_v6, %v3790_v6  ;;  %v3791_v37 = vpack.c.bf16 %v3787_v32, %v3787_v32  ;;  %v3793_v38 = vpack.c.bf16 %v3789_v8, %v3789_v8 }
 0x9c5   :  { %4090 = vmatprep.mubr.bf16.mxu0 %v3792_v34  ;;  %4130 = vmatprep.mubr.bf16.mxu1 %v3794_v36 }
 0x9c6   :  { %4091 = vmatmul.mubr.bf16.vlgmr.msra.gmra.mrb[16].mxu0 %v3791_v37  ;;  %4131 = vmatmul.mubr.bf16.vlgmr.msra.gmra.mrb[16].mxu1 %v3793_v38 }
 0xa99   :  { %v4665_v27 = vpop.f32.mrb[16].mxu0  ;;  %v4687_v26 = vpop.f32.mrb[16].mxu1 }
 0xa9a   :  { %v4666_v33 = vpop.f32.mrb[17].mxu0  ;;  %v4688_v39 = vpop.f32.mrb[17].mxu1 }
 0xa9b   :  { %v4667_v40 = vadd.f32 %v4666_v33, %v4665_v27  ;;  %v4689_v29 = vadd.f32 %v4688_v39, %v4687_v26  ;;  %v4668_v28 = vpop.f32.mrb[18].mxu0  ;;  %v4690_v31 = vpop.f32.mrb[18].mxu1 }
 0xa9c   :  { %v4669_v30 = vpop.f32.mrb[19].mxu0  ;;  %v4691_v41 = vpop.f32.mrb[19].mxu1 }
 0xa9d   :  { %v4093_v42 = vadd.f32 %v4667_v40, %v4616_v21 }
 0xa9f   :  { %v4133_v35 = vadd.f32 %v4689_v29, %v4093_v42 }
 0xaa1   :  { %4139 = vst.msk [vmem:[#allocation10] sm:$0xff] %vm4138_vm0, %v4133_v35 }
 0xaa2   :  { %5547 = shalt.err (!%p5544_p8)
}
 0xaa3   :  { %s5548_s30 = scalar_lea.hbm %s6046_s8, 128 }
 0xaa4   :  { %p5549_p9 = scmp.ne.s32.totalorder %s6046_s8, %s5548_s30  ;;  %p5552_p10 = scmp.lt.u32.totalorder %s5548_s30, %s6046_s8 }
 0xaa6   :  { %p5554_p11 = pnand %p5552_p10, %p5549_p9 }
 0xaa8   :  { %5557 = shalt.err (!%p5554_p11)
}
 0xaa9   :  { %4149 = dma.vmem_to_hbm [thread:$0]  %s4147_s20, 128, %s6046_s8, [#allocation4]  }
 0xaaa   :  { %5564 = dma.done.wait [#allocation4], 128  }
 0xaab   :  { %5565 = vsyncadd [#allocation4], 4294967168 }
 0xaac   :  { %4153 = vsyncpa [#allocation3], 1 }
 0xaad   :  { %4154 = vsyncpa [#allocation6], 1 }
 0xaae   :  { %4155 = vsyncpa [#allocation9], 1 }
 0xaaf   :  { %4156 = vsyncpa [#allocation4], 1 }

// kernel: tpu_custom_call.1
= control target key start
LH: loop header
LB: loop body
LE: loop exit
PB: predicated region body
PF: predicated region fallthrough
CT: control target
= control target key end

     0   :  { %13 = vsyncpa [#allocation3], 0  ;;  %s6038_s0 = inlined_call_operand.vmem [shape: f32[8,256], index: 0, kind: input, shape index: {}]   ;;  %s6039_s1 = inlined_call_operand.hbm [shape: bf16[256,512], index: 1, kind: input, shape index: {}]   ;;  %s6040_s2 = inlined_call_operand.hbm [shape: bf16[512,512], index: 2, kind: input, shape index: {}]   ;;  %s6041_s3 = inlined_call_operand.hbm [shape: bf16[512,512], index: 3, kind: input, shape index: {}]   ;;  %s6042_s4 = inlined_call_operand.hbm [shape: bf16[512,512], index: 4, kind: input, shape index: {}]   ;;  %s6043_s5 = inlined_call_operand.vmem [shape: bf16[512,32], index: 5, kind: input, shape index: {}]   ;;  %s6044_s6 = inlined_call_operand.vmem [shape: f32[12,512], index: 6, kind: input, shape index: {}]   ;;  %s6045_s7 = inlined_call_operand.vmem [shape: f32[1,32], index: 7, kind: input, shape index: {}]   ;;  %s6046_s8 = inlined_call_operand.hbm [shape: f32[8,32], index: 8, kind: output, shape index: {}]  }
   0x1   :  { %14 = vsyncpa [#allocation6], 0 }
   0x2   :  { %15 = vsyncpa [#allocation9], 0 }
   0x3   :  { %16 = vsyncpa [#allocation4], 0  ;;  %s5566_s27 = smov [#allocation5]   ;;  %s5567_s29 = smov [#allocation2]  }
   0x4   :  { %s36_s28 = sshll.u32 %s5566_s27, 4  ;;  %s24_s30 = sshll.u32 %s5567_s29, 4  ;;  %s37_s28 = int_to_ptr.vmem [resolvable:$true] %s36_s28  ;;  %s5618_s30 = int_to_ptr.vmem [resolvable:$true] %s24_s30 }
   0x5   :  { %s5448_s11 = scalar_lea.hbm %s6040_s2, 16384 }
   0x6   :  { %p5449_p0 = scmp.ne.s32.totalorder %s6040_s2, %s5448_s11  ;;  %p5452_p1 = scmp.lt.u32.totalorder %s5448_s11, %s6040_s2 }
   0x8   :  { %p5454_p2 = pnand %p5452_p1, %p5449_p0 }
   0xa   :  { %5457 = shalt.err (!%p5454_p2)
}
   0xb   :  { %s5458_s16 = scalar_lea.vmem %s37_s28, 16384  ;;  %p5463_p4 = scmp.lt.s32.totalorder %s37_s28, %s37_s28 }
   0xc   :  { %p5459_p3 = scmp.ne.s32.totalorder %s37_s28, %s5458_s16  ;;  %p5464_p5 = scmp.lt.s32.totalorder %s5458_s16, %s5458_s16 }
   0xe   :  { %p5465_p6 = por %p5464_p5, %p5463_p4 }
  0x10   :  { %p5466_p7 = pnand %p5465_p6, %p5459_p3 }
  0x12   :  { %5469 = shalt.err (!%p5466_p7)
}
  0x13   :  { %s5568_s17 = smov 256   ;;  %s5569_s18 = smov 16  }
  0x14   :  { %42 = dma.hbm_to_vmem [thread:$0]  %s6040_s2, 16384, %s37_s28, [#allocation6], %s5568_s17, %s5568_s17, %s5569_s18  }
  0x15   :  { %s5470_s23 = scalar_lea.hbm %s6039_s1, 8192 }
  0x16   :  { %p5471_p8 = scmp.ne.s32.totalorder %s6039_s1, %s5470_s23  ;;  %p5474_p9 = scmp.lt.u32.totalorder %s5470_s23, %s6039_s1 }
  0x18   :  { %p5476_p10 = pnand %p5474_p9, %p5471_p8 }
  0x1a   :  { %5479 = shalt.err (!%p5476_p10)
}
  0x1b   :  { %s5480_s29 = scalar_lea.vmem %s5618_s30, 8192  ;;  %p5485_p12 = scmp.lt.s32.totalorder %s5618_s30, %s5618_s30 }
  0x1c   :  { %p5481_p11 = scmp.ne.s32.totalorder %s5618_s30, %s5480_s29  ;;  %p5486_p13 = scmp.lt.s32.totalorder %s5480_s29, %s5480_s29 }
  0x1e   :  { %p5487_p0 = por %p5486_p13, %p5485_p12 }
  0x20   :  { %p5488_p1 = pnand %p5487_p0, %p5481_p11 }
  0x22   :  { %5491 = shalt.err (!%p5488_p1)
}
  0x23   :  { %30 = dma.hbm_to_vmem [thread:$0]  %s6039_s1, 8192, %s5618_s30, [#allocation3], %s5568_s17, %s5568_s17, %s5569_s18  }
  0x24   :  { %s5570_s9 = smov [#allocation7]   ;;  %s5571_s11 = smov [#allocation8]  }
  0x25   :  { %s48_s10 = sshll.u32 %s5570_s9, 4  ;;  %s60_s12 = sshll.u32 %s5571_s11, 4  ;;  %s49_s10 = int_to_ptr.vmem [resolvable:$true] %s48_s10  ;;  %s5655_s12 = int_to_ptr.vmem [resolvable:$true] %s60_s12 }
  0x26   :  { %s5492_s15 = scalar_lea.hbm %s6041_s3, 16384 }
  0x27   :  { %p5493_p2 = scmp.ne.s32.totalorder %s6041_s3, %s5492_s15  ;;  %p5496_p3 = scmp.lt.u32.totalorder %s5492_s15, %s6041_s3 }
  0x29   :  { %p5498_p4 = pnand %p5496_p3, %p5493_p2 }
  0x2b   :  { %5501 = shalt.err (!%p5498_p4)
}
  0x2c   :  { %s5502_s1 = scalar_lea.vmem %s49_s10, 16384  ;;  %p5507_p6 = scmp.lt.s32.totalorder %s49_s10, %s49_s10 }
  0x2d   :  { %p5503_p5 = scmp.ne.s32.totalorder %s49_s10, %s5502_s1  ;;  %p5508_p7 = scmp.lt.s32.totalorder %s5502_s1, %s5502_s1 }
  0x2f   :  { %p5509_p8 = por %p5508_p7, %p5507_p6 }
  0x31   :  { %p5510_p9 = pnand %p5509_p8, %p5503_p5 }
  0x33   :  { %5513 = shalt.err (!%p5510_p9)
}
  0x34   :  { %54 = dma.hbm_to_vmem [thread:$0]  %s6041_s3, 16384, %s49_s10, [#allocation6], %s5568_s17, %s5568_s17, %s5569_s18  }
  0x35   :  { %s5514_s25 = scalar_lea.hbm %s6042_s4, 16384 }
  0x36   :  { %p5515_p10 = scmp.ne.s32.totalorder %s6042_s4, %s5514_s25  ;;  %p5518_p11 = scmp.lt.u32.totalorder %s5514_s25, %s6042_s4 }
  0x38   :  { %p5520_p12 = pnand %p5518_p11, %p5515_p10 }
  0x3a   :  { %5523 = shalt.err (!%p5520_p12)
}
  0x3b   :  { %s5524_s28 = scalar_lea.vmem %s5655_s12, 16384  ;;  %p5529_p0 = scmp.lt.s32.totalorder %s5655_s12, %s5655_s12 }
  0x3c   :  { %p5525_p13 = scmp.ne.s32.totalorder %s5655_s12, %s5524_s28  ;;  %p5530_p1 = scmp.lt.s32.totalorder %s5524_s28, %s5524_s28 }
  0x3e   :  { %p5531_p2 = por %p5530_p1, %p5529_p0 }
  0x40   :  { %p5532_p3 = pnand %p5531_p2, %p5525_p13 }
  0x42   :  { %5535 = shalt.err (!%p5532_p3)
}
  0x43   :  { %66 = dma.hbm_to_vmem [thread:$0]  %s6042_s4, 16384, %s5655_s12, [#allocation9], %s5568_s17, %s5568_s17, %s5569_s18  }
  0x44   :  { %5558 = dma.done.wait [#allocation3], 8192  }
  0x45   :  { %5559 = vsyncadd [#allocation3], 4294959104 }
  0x46   :  { %5560 = dma.done.wait [#allocation6], 32768  }
  0x47   :  { %5561 = vsyncadd [#allocation6], 4294934528 }
  0x48   :  { %5562 = dma.done.wait [#allocation9], 16384  }
  0x49   :  { %5563 = vsyncadd [#allocation9], 4294950912  ;;  %v4736_v0 = vld [vmem:[#allocation2 + $0x4] ss:$16 sps:$4 sm:$0xff]   ;;  %v4738_v1 = vld [vmem:[#allocation2 + $0xc] ss:$16 sps:$4 sm:$0xff]  }
  0x4a   :  { %500 = vmatprep.subr.bf16.mxu0 %v4736_v0  ;;  %v4740_v2 = vld [vmem:[#allocation2] ss:$16 sps:$4 sm:$0xff]   ;;  %v4741_v3 = vld [vmem:[#allocation2 + $0x8] ss:$16 sps:$4 sm:$0xff]   ;;  %541 = vmatprep.subr.bf16.mxu1 %v4738_v1  ;;  %v4742_v4 = vld [vmem:[#allocation2 + $0x24] ss:$16 sps:$4 sm:$0xff]  }
  0x4b   :  { %501 = vmatpush1.bf16.msra.mxu0 %v4740_v2  ;;  %542 = vmatpush1.bf16.msra.mxu1 %v4741_v3  ;;  %v4744_v5 = vld [vmem:[#allocation2 + $0x2c] ss:$16 sps:$4 sm:$0xff]   ;;  %v4746_v6 = vld [vmem:[#allocation2 + $0x20] ss:$16 sps:$4 sm:$0xff]   ;;  %v4747_v7 = vld [vmem:[#allocation2 + $0x28] ss:$16 sps:$4 sm:$0xff]  }
  0x4c   :  { %502 = vmatprep.subr.bf16.mxu0 %v4742_v4  ;;  %543 = vmatprep.subr.bf16.mxu1 %v4744_v5  ;;  %v4748_v8 = vld [vmem:[#allocation2 + $0x44] ss:$16 sps:$4 sm:$0xff]   ;;  %v4750_v9 = vld [vmem:[#allocation2 + $0x4c] ss:$16 sps:$4 sm:$0xff]   ;;  %v4752_v10 = vld [vmem:[#allocation2 + $0x40] ss:$16 sps:$4 sm:$0xff]   ;;  %v160_v4 = vlaneseq }
  0x4d   :  { %v4753_v11 = vld [vmem:[#allocation2 + $0x48] ss:$16 sps:$4 sm:$0xff]   ;;  %v4754_v12 = vld [vmem:[#allocation2 + $0x64] ss:$16 sps:$4 sm:$0xff]   ;;  %v4756_v13 = vld [vmem:[#allocation2 + $0x6c] ss:$16 sps:$4 sm:$0xff]  }
  0x4e   :  { %v4758_v14 = vld [vmem:[#allocation2 + $0x60] ss:$16 sps:$4 sm:$0xff]   ;;  %v4759_v15 = vld [vmem:[#allocation2 + $0x68] ss:$16 sps:$4 sm:$0xff]   ;;  %v4760_v16 = vld [vmem:[#allocation2 + $0x84] ss:$16 sps:$4 sm:$0xff]  }
  0x4f   :  { %503 = vmatpush1.bf16.msra.mxu0 %v4746_v6  ;;  %544 = vmatpush1.bf16.msra.mxu1 %v4747_v7  ;;  %v4762_v17 = vld [vmem:[#allocation2 + $0x8c] ss:$16 sps:$4 sm:$0xff]   ;;  %v4764_v18 = vld [vmem:[#allocation2 + $0x80] ss:$16 sps:$4 sm:$0xff]   ;;  %v4765_v19 = vld [vmem:[#allocation2 + $0x88] ss:$16 sps:$4 sm:$0xff]  }
  0x50   :  { %504 = vmatprep.subr.bf16.mxu0 %v4748_v8  ;;  %545 = vmatprep.subr.bf16.mxu1 %v4750_v9  ;;  %v4766_v20 = vld [vmem:[#allocation2 + $0xa4] ss:$16 sps:$4 sm:$0xff]   ;;  %v4768_v21 = vld [vmem:[#allocation2 + $0xac] ss:$16 sps:$4 sm:$0xff]   ;;  %v4770_v22 = vld [vmem:[#allocation2 + $0xa0] ss:$16 sps:$4 sm:$0xff]  }
  0x51   :  { %v4771_v23 = vld [vmem:[#allocation2 + $0xa8] ss:$16 sps:$4 sm:$0xff]   ;;  %v4772_v24 = vld [vmem:[#allocation2 + $0xc4] ss:$16 sps:$4 sm:$0xff]   ;;  %v4774_v25 = vld [vmem:[#allocation2 + $0xcc] ss:$16 sps:$4 sm:$0xff]  }
  0x52   :  { %v4776_v26 = vld [vmem:[#allocation2 + $0xc0] ss:$16 sps:$4 sm:$0xff]   ;;  %v4777_v27 = vld [vmem:[#allocation2 + $0xc8] ss:$16 sps:$4 sm:$0xff]   ;;  %v4778_v28 = vld [vmem:[#allocation2 + $0xe4] ss:$16 sps:$4 sm:$0xff]  }
  0x53   :  { %505 = vmatpush1.bf16.msra.mxu0 %v4752_v10  ;;  %546 = vmatpush1.bf16.msra.mxu1 %v4753_v11  ;;  %v4780_v29 = vld [vmem:[#allocation2 + $0xec] ss:$16 sps:$4 sm:$0xff]   ;;  %v4782_v30 = vld [vmem:[#allocation2 + $0xe0] ss:$16 sps:$4 sm:$0xff]   ;;  %v4783_v31 = vld [vmem:[#allocation2 + $0xe8] ss:$16 sps:$4 sm:$0xff]  }
  0x54   :  { %506 = vmatprep.subr.bf16.mxu0 %v4754_v12  ;;  %547 = vmatprep.subr.bf16.mxu1 %v4756_v13  ;;  %v4784_v32 = vld [vmem:[#allocation2 + $0x104] ss:$16 sps:$4 sm:$0xff]   ;;  %v4786_v33 = vld [vmem:[#allocation2 + $0x10c] ss:$16 sps:$4 sm:$0xff]   ;;  %v4788_v34 = vld [vmem:[#allocation2 + $0x100] ss:$16 sps:$4 sm:$0xff]  }
  0x55   :  { %v4789_v35 = vld [vmem:[#allocation2 + $0x108] ss:$16 sps:$4 sm:$0xff]   ;;  %v4790_v36 = vld [vmem:[#allocation2 + $0x124] ss:$16 sps:$4 sm:$0xff]   ;;  %v4792_v37 = vld [vmem:[#allocation2 + $0x12c] ss:$16 sps:$4 sm:$0xff]  }
  0x56   :  { %v4794_v38 = vld [vmem:[#allocation2 + $0x120] ss:$16 sps:$4 sm:$0xff]   ;;  %v4795_v39 = vld [vmem:[#allocation2 + $0x128] ss:$16 sps:$4 sm:$0xff]   ;;  %v4796_v40 = vld [vmem:[#allocation2 + $0x144] ss:$16 sps:$4 sm:$0xff]  }
  0x57   :  { %507 = vmatpush1.bf16.msra.mxu0 %v4758_v14  ;;  %548 = vmatpush1.bf16.msra.mxu1 %v4759_v15  ;;  %v4798_v41 = vld [vmem:[#allocation2 + $0x14c] ss:$16 sps:$4 sm:$0xff]   ;;  %v4800_v42 = vld [vmem:[#allocation2 + $0x140] ss:$16 sps:$4 sm:$0xff]   ;;  %v4801_v43 = vld [vmem:[#allocation2 + $0x148] ss:$16 sps:$4 sm:$0xff]  }
  0x58   :  { %508 = vmatprep.subr.bf16.mxu0 %v4760_v16  ;;  %549 = vmatprep.subr.bf16.mxu1 %v4762_v17  ;;  %v4802_v44 = vld [vmem:[#allocation2 + $0x164] ss:$16 sps:$4 sm:$0xff]   ;;  %v4804_v45 = vld [vmem:[#allocation2 + $0x16c] ss:$16 sps:$4 sm:$0xff]   ;;  %v4806_v46 = vld [vmem:[#allocation2 + $0x160] ss:$16 sps:$4 sm:$0xff]  }
  0x59   :  { %v4807_v47 = vld [vmem:[#allocation2 + $0x168] ss:$16 sps:$4 sm:$0xff]   ;;  %v4808_v49 = vld [vmem:[#allocation2 + $0x184] ss:$16 sps:$4 sm:$0xff]   ;;  %v4810_v50 = vld [vmem:[#allocation2 + $0x18c] ss:$16 sps:$4 sm:$0xff]  }
  0x5a   :  { %v87_v48 = vld [vmem:[%s6038_s0 + $0x8] sm:$0xff]  ;;  %v4812_v52 = vld [vmem:[#allocation2 + $0x180] ss:$16 sps:$4 sm:$0xff]   ;;  %v4814_v54 = vld [vmem:[#allocation2 + $0x1a4] ss:$16 sps:$4 sm:$0xff]   ;;  %v161_v5 = vshrl.u32 %v160_v4, 7 }
  0x5b   :  { %509 = vmatpush1.bf16.msra.mxu0 %v4764_v18  ;;  %550 = vmatpush1.bf16.msra.mxu1 %v4765_v19  ;;  %v89_v51 = vpack.c.bf16 %v87_v48, %v87_v48  ;;  %v4813_v53 = vld [vmem:[#allocation2 + $0x188] ss:$16 sps:$4 sm:$0xff]   ;;  %v4816_v55 = vld [vmem:[#allocation2 + $0x1ac] ss:$16 sps:$4 sm:$0xff]   ;;  %v4818_v56 = vld [vmem:[#allocation2 + $0x1a0] ss:$16 sps:$4 sm:$0xff]  }
  0x5c   :  { %510 = vmatprep.subr.bf16.mxu0 %v4766_v20  ;;  %551 = vmatprep.subr.bf16.mxu1 %v4768_v21  ;;  %v4819_v57 = vld [vmem:[#allocation2 + $0x1a8] ss:$16 sps:$4 sm:$0xff]   ;;  %v4820_v58 = vld [vmem:[#allocation2 + $0x1c4] ss:$16 sps:$4 sm:$0xff]   ;;  %v4822_v59 = vld [vmem:[#allocation2 + $0x1cc] ss:$16 sps:$4 sm:$0xff]  }
  0x5d   :  { %532 = vmatprep.mubr.bf16.mxu0 %v89_v51  ;;  %573 = vmatprep.mubr.bf16.mxu1 %v89_v51  ;;  %v4824_v60 = vld [vmem:[#allocation2 + $0x1c0] ss:$16 sps:$4 sm:$0xff]   ;;  %v4825_v61 = vld [vmem:[#allocation2 + $0x1c8] ss:$16 sps:$4 sm:$0xff]   ;;  %v4826_v62 = vld [vmem:[#allocation2 + $0x1e4] ss:$16 sps:$4 sm:$0xff]  }
  0x5e   :  { %v4828_v63 = vld [vmem:[#allocation2 + $0x1ec] ss:$16 sps:$4 sm:$0xff]   ;;  %v4830_v0 = vld [vmem:[#allocation2 + $0x1e0] ss:$16 sps:$4 sm:$0xff]   ;;  %v4831_v1 = vld [vmem:[#allocation2 + $0x1e8] ss:$16 sps:$4 sm:$0xff]  }
  0x5f   :  { %511 = vmatpush1.bf16.msra.mxu0 %v4770_v22  ;;  %552 = vmatpush1.bf16.msra.mxu1 %v4771_v23  ;;  %v86_v2 = vld [vmem:[%s6038_s0] sm:$0xff]  ;;  %v5698_v6 = vsub.s32 0, %v161_v5  ;;  %v5703_v8 = vsub.s32 2, %v161_v5  ;;  %v5705_v9 = vsub.s32 1, %v161_v5  ;;  %v5710_v13 = vsub.s32 3, %v161_v5  ;;  %s5572_s19 = smov [#allocation10]  }
  0x60   :  { %512 = vmatprep.subr.bf16.mxu0 %v4772_v24  ;;  %553 = vmatprep.subr.bf16.mxu1 %v4774_v25  ;;  %v88_v3 = vpack.c.bf16 %v86_v2, %v86_v2  ;;  %v154_v7 = vld [vmem:[%s6044_s6] ss:$8 sm:$0xf]  ;;  %v4867_v51 = vld [vmem:[#allocation5 + $0xac] ss:$16 sps:$4 sm:$0xff]   ;;  %s4146_s20 = sshll.u32 %s5572_s19, 4  ;;  %s4147_s20 = int_to_ptr.vmem [resolvable:$true] %s4146_s20 }
  0x61   :  { %v163_v10 = vrot.slane %v154_v7, %v5698_v6  ;;  %v171_v11 = vrot.slane %v154_v7, %v5703_v8  ;;  %v167_v12 = vrot.slane %v154_v7, %v5705_v9  ;;  %v175_v21 = vrot.slane %v154_v7, %v5710_v13  ;;  %v4856_v48 = vld [vmem:[#allocation5 + $0x80] ss:$16 sps:$4 sm:$0xff]   ;;  %v4888_v2 = vld [vmem:[#allocation5 + $0x124] ss:$16 sps:$4 sm:$0xff]   ;;  %v4889_v5 = vld [vmem:[#allocation5 + $0x128] ss:$16 sps:$4 sm:$0xff]   ;;  %p5541_p5 = scmp.lt.s32.totalorder %s4147_s20, %s4147_s20 }
  0x62   :  { %v4886_v4 = vld [vmem:[#allocation5 + $0x120] ss:$16 sps:$4 sm:$0xff]   ;;  %vm4138_vm0 = vcmask 261120   ;;  %s5536_s21 = scalar_lea.vmem %s4147_s20, 128 }
  0x63   :  { %513 = vmatpush1.bf16.msra.mxu0 %v4776_v26  ;;  %554 = vmatpush1.bf16.msra.mxu1 %v4777_v27  ;;  %p5537_p4 = scmp.ne.s32.totalorder %s4147_s20, %s5536_s21  ;;  %p5542_p6 = scmp.lt.s32.totalorder %s5536_s21, %s5536_s21 }
  0x64   :  { %514 = vmatprep.subr.bf16.mxu0 %v4778_v28  ;;  %555 = vmatprep.subr.bf16.mxu1 %v4780_v29 }
  0x65   :  { %p5543_p7 = por %p5542_p6, %p5541_p5 }
  0x67   :  { %515 = vmatpush1.bf16.msra.mxu0 %v4782_v30  ;;  %556 = vmatpush1.bf16.msra.mxu1 %v4783_v31  ;;  %v4832_v30 = vld [vmem:[#allocation5] ss:$16 sps:$4 sm:$0xff]   ;;  %v4834_v31 = vld [vmem:[#allocation5 + $0x4] ss:$16 sps:$4 sm:$0xff]   ;;  %p5544_p8 = pnand %p5543_p7, %p5537_p4 }
  0x68   :  { %516 = vmatprep.subr.bf16.mxu0 %v4784_v32  ;;  %557 = vmatprep.subr.bf16.mxu1 %v4786_v33  ;;  %v4835_v32 = vld [vmem:[#allocation5 + $0x8] ss:$16 sps:$4 sm:$0xff]   ;;  %v4837_v33 = vld [vmem:[#allocation5 + $0xc] ss:$16 sps:$4 sm:$0xff]  }
  0x6b   :  { %517 = vmatpush1.bf16.msra.mxu0 %v4788_v34  ;;  %558 = vmatpush1.bf16.msra.mxu1 %v4789_v35  ;;  %v4840_v34 = vld [vmem:[#allocation5 + $0x24] ss:$16 sps:$4 sm:$0xff]   ;;  %v4843_v35 = vld [vmem:[#allocation5 + $0x2c] ss:$16 sps:$4 sm:$0xff]  }
  0x6c   :  { %518 = vmatprep.subr.bf16.mxu0 %v4790_v36  ;;  %559 = vmatprep.subr.bf16.mxu1 %v4792_v37  ;;  %v4838_v36 = vld [vmem:[#allocation5 + $0x20] ss:$16 sps:$4 sm:$0xff]   ;;  %v4841_v37 = vld [vmem:[#allocation5 + $0x28] ss:$16 sps:$4 sm:$0xff]  }
  0x6f   :  { %519 = vmatpush1.bf16.msra.mxu0 %v4794_v38  ;;  %560 = vmatpush1.bf16.msra.mxu1 %v4795_v39  ;;  %v4846_v38 = vld [vmem:[#allocation5 + $0x44] ss:$16 sps:$4 sm:$0xff]   ;;  %v4849_v39 = vld [vmem:[#allocation5 + $0x4c] ss:$16 sps:$4 sm:$0xff]  }
  0x70   :  { %520 = vmatprep.subr.bf16.mxu0 %v4796_v40  ;;  %561 = vmatprep.subr.bf16.mxu1 %v4798_v41  ;;  %v4844_v40 = vld [vmem:[#allocation5 + $0x40] ss:$16 sps:$4 sm:$0xff]   ;;  %v4847_v41 = vld [vmem:[#allocation5 + $0x48] ss:$16 sps:$4 sm:$0xff]  }
  0x73   :  { %521 = vmatpush1.bf16.msra.mxu0 %v4800_v42  ;;  %562 = vmatpush1.bf16.msra.mxu1 %v4801_v43  ;;  %v4852_v42 = vld [vmem:[#allocation5 + $0x64] ss:$16 sps:$4 sm:$0xff]   ;;  %v4855_v43 = vld [vmem:[#allocation5 + $0x6c] ss:$16 sps:$4 sm:$0xff]  }
  0x74   :  { %522 = vmatprep.subr.bf16.mxu0 %v4802_v44  ;;  %563 = vmatprep.subr.bf16.mxu1 %v4804_v45  ;;  %v4850_v44 = vld [vmem:[#allocation5 + $0x60] ss:$16 sps:$4 sm:$0xff]   ;;  %v4853_v45 = vld [vmem:[#allocation5 + $0x68] ss:$16 sps:$4 sm:$0xff]  }
  0x77   :  { %523 = vmatpush1.bf16.msra.mxu0 %v4806_v46  ;;  %564 = vmatpush1.bf16.msra.mxu1 %v4807_v47  ;;  %v4858_v46 = vld [vmem:[#allocation5 + $0x84] ss:$16 sps:$4 sm:$0xff]   ;;  %v4861_v47 = vld [vmem:[#allocation5 + $0x8c] ss:$16 sps:$4 sm:$0xff]  }
  0x78   :  { %524 = vmatprep.subr.bf16.mxu0 %v4808_v49  ;;  %565 = vmatprep.subr.bf16.mxu1 %v4810_v50  ;;  %v4859_v49 = vld [vmem:[#allocation5 + $0x88] ss:$16 sps:$4 sm:$0xff]   ;;  %v4864_v50 = vld [vmem:[#allocation5 + $0xa4] ss:$16 sps:$4 sm:$0xff]  }
  0x7b   :  { %525 = vmatpush1.bf16.msra.mxu0 %v4812_v52  ;;  %566 = vmatpush1.bf16.msra.mxu1 %v4813_v53  ;;  %v4862_v52 = vld [vmem:[#allocation5 + $0xa0] ss:$16 sps:$4 sm:$0xff]   ;;  %v4865_v53 = vld [vmem:[#allocation5 + $0xa8] ss:$16 sps:$4 sm:$0xff]  }
  0x7c   :  { %526 = vmatprep.subr.bf16.mxu0 %v4814_v54  ;;  %567 = vmatprep.subr.bf16.mxu1 %v4816_v55  ;;  %v4870_v54 = vld [vmem:[#allocation5 + $0xc4] ss:$16 sps:$4 sm:$0xff]   ;;  %v4873_v55 = vld [vmem:[#allocation5 + $0xcc] ss:$16 sps:$4 sm:$0xff]  }
  0x7f   :  { %527 = vmatpush1.bf16.msra.mxu0 %v4818_v56  ;;  %568 = vmatpush1.bf16.msra.mxu1 %v4819_v57  ;;  %v4868_v56 = vld [vmem:[#allocation5 + $0xc0] ss:$16 sps:$4 sm:$0xff]   ;;  %v4871_v57 = vld [vmem:[#allocation5 + $0xc8] ss:$16 sps:$4 sm:$0xff]  }
  0x80   :  { %528 = vmatprep.subr.bf16.mxu0 %v4820_v58  ;;  %569 = vmatprep.subr.bf16.mxu1 %v4822_v59  ;;  %v4876_v58 = vld [vmem:[#allocation5 + $0xe4] ss:$16 sps:$4 sm:$0xff]   ;;  %v4879_v59 = vld [vmem:[#allocation5 + $0xec] ss:$16 sps:$4 sm:$0xff]  }
  0x83   :  { %529 = vmatpush1.bf16.msra.mxu0 %v4824_v60  ;;  %570 = vmatpush1.bf16.msra.mxu1 %v4825_v61  ;;  %v4874_v60 = vld [vmem:[#allocation5 + $0xe0] ss:$16 sps:$4 sm:$0xff]   ;;  %v4877_v61 = vld [vmem:[#allocation5 + $0xe8] ss:$16 sps:$4 sm:$0xff]  }
  0x84   :  { %530 = vmatprep.subr.bf16.mxu0 %v4826_v62  ;;  %571 = vmatprep.subr.bf16.mxu1 %v4828_v63  ;;  %v4882_v62 = vld [vmem:[#allocation5 + $0x104] ss:$16 sps:$4 sm:$0xff]   ;;  %v4885_v63 = vld [vmem:[#allocation5 + $0x10c] ss:$16 sps:$4 sm:$0xff]  }
  0x87   :  { %531 = vmatpush1.bf16.msra.mxu0 %v4830_v0  ;;  %572 = vmatpush1.bf16.msra.mxu1 %v4831_v1  ;;  %v4880_v0 = vld [vmem:[#allocation5 + $0x100] ss:$16 sps:$4 sm:$0xff]   ;;  %v4883_v1 = vld [vmem:[#allocation5 + $0x108] ss:$16 sps:$4 sm:$0xff]  }
  0x88   :  { %1461 = vmatprep.subr.bf16.mxu0 %v4834_v31  ;;  %1543 = vmatprep.subr.bf16.mxu1 %v4837_v33  ;;  %v4906_v31 = vld [vmem:[#allocation5 + $0x184] ss:$16 sps:$4 sm:$0xff]   ;;  %v4904_v33 = vld [vmem:[#allocation5 + $0x180] ss:$16 sps:$4 sm:$0xff]  }
  0x8a   :  { %533 = vmatmul.mubr.bf16.vlgmr.msra.gmra.mrb[0].mxu0 %v88_v3  ;;  %574 = vmatmul.mubr.bf16.vlgmr.msra.gmra.mrb[0].mxu1 %v88_v3  ;;  %v4891_v3 = vld [vmem:[#allocation5 + $0x12c] ss:$16 sps:$4 sm:$0xff]  }
  0x8b   :  { %1462 = vmatpush1.bf16.msra.mxu0 %v4832_v30  ;;  %1544 = vmatpush1.bf16.msra.mxu1 %v4835_v32  ;;  %v4901_v30 = vld [vmem:[#allocation5 + $0x168] ss:$16 sps:$4 sm:$0xff]   ;;  %v4909_v32 = vld [vmem:[#allocation5 + $0x18c] ss:$16 sps:$4 sm:$0xff]  }
  0x8c   :  { %1463 = vmatprep.subr.bf16.mxu0 %v4840_v34  ;;  %1545 = vmatprep.subr.bf16.mxu1 %v4843_v35  ;;  %v4907_v34 = vld [vmem:[#allocation5 + $0x188] ss:$16 sps:$4 sm:$0xff]   ;;  %v4912_v35 = vld [vmem:[#allocation5 + $0x1a4] ss:$16 sps:$4 sm:$0xff]  }
  0x8f   :  { %1464 = vmatpush1.bf16.msra.mxu0 %v4838_v36  ;;  %1546 = vmatpush1.bf16.msra.mxu1 %v4841_v37  ;;  %v4915_v36 = vld [vmem:[#allocation5 + $0x1ac] ss:$16 sps:$4 sm:$0xff]   ;;  %v4910_v37 = vld [vmem:[#allocation5 + $0x1a0] ss:$16 sps:$4 sm:$0xff]  }
  0x90   :  { %1465 = vmatprep.subr.bf16.mxu0 %v4846_v38  ;;  %1547 = vmatprep.subr.bf16.mxu1 %v4849_v39  ;;  %v4913_v38 = vld [vmem:[#allocation5 + $0x1a8] ss:$16 sps:$4 sm:$0xff]   ;;  %v4918_v39 = vld [vmem:[#allocation5 + $0x1c4] ss:$16 sps:$4 sm:$0xff]  }
  0x93   :  { %1466 = vmatpush1.bf16.msra.mxu0 %v4844_v40  ;;  %1548 = vmatpush1.bf16.msra.mxu1 %v4847_v41  ;;  %v4921_v40 = vld [vmem:[#allocation5 + $0x1cc] ss:$16 sps:$4 sm:$0xff]   ;;  %v4916_v41 = vld [vmem:[#allocation5 + $0x1c0] ss:$16 sps:$4 sm:$0xff]  }
  0x94   :  { %1467 = vmatprep.subr.bf16.mxu0 %v4852_v42  ;;  %1549 = vmatprep.subr.bf16.mxu1 %v4855_v43  ;;  %v4919_v42 = vld [vmem:[#allocation5 + $0x1c8] ss:$16 sps:$4 sm:$0xff]   ;;  %v4924_v43 = vld [vmem:[#allocation5 + $0x1e4] ss:$16 sps:$4 sm:$0xff]  }
  0x97   :  { %1468 = vmatpush1.bf16.msra.mxu0 %v4850_v44  ;;  %1550 = vmatpush1.bf16.msra.mxu1 %v4853_v45  ;;  %v4927_v44 = vld [vmem:[#allocation5 + $0x1ec] ss:$16 sps:$4 sm:$0xff]   ;;  %v4922_v45 = vld [vmem:[#allocation5 + $0x1e0] ss:$16 sps:$4 sm:$0xff]  }
  0x98   :  { %1469 = vmatprep.subr.bf16.mxu0 %v4858_v46  ;;  %1551 = vmatprep.subr.bf16.mxu1 %v4861_v47  ;;  %v4925_v46 = vld [vmem:[#allocation5 + $0x1e8] ss:$16 sps:$4 sm:$0xff]   ;;  %v4930_v47 = vld [vmem:[#allocation5 + $0x204] ss:$16 sps:$4 sm:$0xff]  }
  0x9b   :  { %1470 = vmatpush1.bf16.msra.mxu0 %v4856_v48  ;;  %1552 = vmatpush1.bf16.msra.mxu1 %v4859_v49  ;;  %v4933_v48 = vld [vmem:[#allocation5 + $0x20c] ss:$16 sps:$4 sm:$0xff]  }
  0x9c   :  { %1471 = vmatprep.subr.bf16.mxu0 %v4864_v50  ;;  %1553 = vmatprep.subr.bf16.mxu1 %v4867_v51 }
  0x9f   :  { %1472 = vmatpush1.bf16.msra.mxu0 %v4862_v52  ;;  %1554 = vmatpush1.bf16.msra.mxu1 %v4865_v53  ;;  %v4157_v52 = vld [vmem:[%s6044_s6 + $0x1] ss:$8 sm:$0xf]  ;;  %v4158_v53 = vld [vmem:[%s6044_s6 + $0x2] ss:$8 sm:$0xf] }
  0xa0   :  { %1473 = vmatprep.subr.bf16.mxu0 %v4870_v54  ;;  %1555 = vmatprep.subr.bf16.mxu1 %v4873_v55  ;;  %v612_v54 = vrot.slane %v4157_v52, %v5705_v9  ;;  %v608_v55 = vrot.slane %v4157_v52, %v5698_v6 }
  0xa3   :  { %1474 = vmatpush1.bf16.msra.mxu0 %v4868_v56  ;;  %1556 = vmatpush1.bf16.msra.mxu1 %v4871_v57  ;;  %v620_v56 = vrot.slane %v4157_v52, %v5710_v13  ;;  %v616_v57 = vrot.slane %v4157_v52, %v5703_v8  ;;  %v4981_v52 = vld [vmem:[#allocation5 + $0x30c] ss:$16 sps:$4 sm:$0xff]  }
  0xa4   :  { %1475 = vmatprep.subr.bf16.mxu0 %v4876_v58  ;;  %1557 = vmatprep.subr.bf16.mxu1 %v4879_v59  ;;  %v641_v59 = vrot.slane %v4158_v53, %v5705_v9 }
  0xa7   :  { %1476 = vmatpush1.bf16.msra.mxu0 %v4874_v60  ;;  %1558 = vmatpush1.bf16.msra.mxu1 %v4877_v61  ;;  %v637_v60 = vrot.slane %v4158_v53, %v5698_v6  ;;  %v649_v61 = vrot.slane %v4158_v53, %v5710_v13 }
  0xa8   :  { %1477 = vmatprep.subr.bf16.mxu0 %v4882_v62  ;;  %1559 = vmatprep.subr.bf16.mxu1 %v4885_v63  ;;  %v645_v62 = vrot.slane %v4158_v53, %v5703_v8  ;;  %v4976_v53 = vld [vmem:[#allocation5 + $0x300] ss:$16 sps:$4 sm:$0xff]  }
  0xab   :  { %1478 = vmatpush1.bf16.msra.mxu0 %v4880_v0  ;;  %1560 = vmatpush1.bf16.msra.mxu1 %v4883_v1 }
  0xac   :  { %1479 = vmatprep.subr.bf16.mxu0 %v4888_v2  ;;  %1561 = vmatprep.subr.bf16.mxu1 %v4891_v3 }
  0xaf   :  { %1480 = vmatpush1.bf16.msra.mxu0 %v4886_v4  ;;  %1562 = vmatpush1.bf16.msra.mxu1 %v4889_v5 }
 0x15d   :  { %v534_v14 = vpop.f32.mrb[0].mxu0  ;;  %v575_v15 = vpop.f32.mrb[0].mxu1 }
 0x15e   :  { %v5712_v16 = vadd.f32 %v534_v14, %v163_v10  ;;  %v536_v17 = vpop.f32.mrb[1].mxu0  ;;  %v577_v18 = vpop.f32.mrb[1].mxu1  ;;  %v5714_v19 = vadd.f32 %v575_v15, %v171_v11 }
 0x15f   :  { %v5716_v20 = vadd.f32 %v536_v17, %v167_v12  ;;  %v538_v22 = vpop.f32.mrb[2].mxu0  ;;  %v579_v23 = vpop.f32.mrb[2].mxu1  ;;  %v5721_v27 = vadd.f32 %v577_v18, %v175_v21 }
 0x160   :  { %v539_v24 = vpop.f32.mrb[3].mxu0  ;;  %v580_v25 = vpop.f32.mrb[3].mxu1 }
 0x161   :  { %v582_v26 = vadd.f32 %v5716_v20, %v5712_v16  ;;  %v4897_v24 = vld [vmem:[#allocation5 + $0x14c] ss:$16 sps:$4 sm:$0xff]   ;;  %v4892_v25 = vld [vmem:[#allocation5 + $0x140] ss:$16 sps:$4 sm:$0xff]  }
 0x162   :  { %1563 = vmatprep.subr.bf16.mxu1 %v4897_v24  ;;  %v4931_v24 = vld [vmem:[#allocation5 + $0x208] ss:$16 sps:$4 sm:$0xff]  }
 0x163   :  { %v583_v28 = vadd.f32 %v582_v26, %v5714_v19  ;;  %v4895_v26 = vld [vmem:[#allocation5 + $0x148] ss:$16 sps:$4 sm:$0xff]  }
 0x164   :  { %1564 = vmatpush1.bf16.msra.mxu1 %v4895_v26  ;;  %v4937_v26 = vld [vmem:[#allocation5 + $0x228] ss:$16 sps:$4 sm:$0xff]  }
 0x165   :  { %v584_v29 = vadd.f32 %v583_v28, %v5721_v27  ;;  %v4903_v28 = vld [vmem:[#allocation5 + $0x16c] ss:$16 sps:$4 sm:$0xff]  }
 0x166   :  { %1565 = vmatprep.subr.bf16.mxu1 %v4903_v28  ;;  %v4945_v28 = vld [vmem:[#allocation5 + $0x24c] ss:$16 sps:$4 sm:$0xff]  }
 0x167   :  { %585 = vadd.xlane.f32.xlu0 %v584_v29  ;;  %v4898_v29 = vld [vmem:[#allocation5 + $0x160] ss:$16 sps:$4 sm:$0xff]  }
 0x168   :  { %1566 = vmatpush1.bf16.msra.mxu1 %v4901_v30  ;;  %v4943_v30 = vld [vmem:[#allocation5 + $0x248] ss:$16 sps:$4 sm:$0xff]  }
 0x169   :  { %1567 = vmatprep.subr.bf16.mxu1 %v4909_v32  ;;  %v4951_v32 = vld [vmem:[#allocation5 + $0x26c] ss:$16 sps:$4 sm:$0xff]  }
 0x16c   :  { %1568 = vmatpush1.bf16.msra.mxu1 %v4907_v34  ;;  %v4949_v34 = vld [vmem:[#allocation5 + $0x268] ss:$16 sps:$4 sm:$0xff]  }
 0x16d   :  { %1569 = vmatprep.subr.bf16.mxu1 %v4915_v36  ;;  %v4957_v36 = vld [vmem:[#allocation5 + $0x28c] ss:$16 sps:$4 sm:$0xff]  }
 0x170   :  { %1570 = vmatpush1.bf16.msra.mxu1 %v4913_v38  ;;  %v4955_v38 = vld [vmem:[#allocation5 + $0x288] ss:$16 sps:$4 sm:$0xff]  }
 0x171   :  { %1571 = vmatprep.subr.bf16.mxu1 %v4921_v40  ;;  %v4963_v40 = vld [vmem:[#allocation5 + $0x2ac] ss:$16 sps:$4 sm:$0xff]  }
 0x174   :  { %1572 = vmatpush1.bf16.msra.mxu1 %v4919_v42  ;;  %v4961_v42 = vld [vmem:[#allocation5 + $0x2a8] ss:$16 sps:$4 sm:$0xff]  }
 0x175   :  { %1573 = vmatprep.subr.bf16.mxu1 %v4927_v44  ;;  %v4969_v44 = vld [vmem:[#allocation5 + $0x2cc] ss:$16 sps:$4 sm:$0xff]  }
 0x178   :  { %1574 = vmatpush1.bf16.msra.mxu1 %v4925_v46  ;;  %v4967_v46 = vld [vmem:[#allocation5 + $0x2c8] ss:$16 sps:$4 sm:$0xff]  }
 0x179   :  { %1584 = vmatprep.subr.bf16.mxu1 %v4933_v48  ;;  %v4975_v48 = vld [vmem:[#allocation5 + $0x2ec] ss:$16 sps:$4 sm:$0xff]  }
 0x1f4   :  { %v586_v7 = vpop.xlane.xlu0 %585 }
 0x1f5   :  { %v587_v10 = vmul.f32 0.001953125, %v586_v7 }
 0x1f7   :  { %v5726_v11 = vsub.f32 %v5712_v16, %v587_v10  ;;  %v5729_v12 = vsub.f32 %v5716_v20, %v587_v10  ;;  %v5732_v14 = vsub.f32 %v5714_v19, %v587_v10  ;;  %v5735_v15 = vsub.f32 %v5721_v27, %v587_v10  ;;  %v4894_v19 = vld [vmem:[#allocation5 + $0x144] ss:$16 sps:$4 sm:$0xff]  }
 0x1f8   :  { %1481 = vmatprep.subr.bf16.mxu0 %v4894_v19  ;;  %v4900_v27 = vld [vmem:[#allocation5 + $0x164] ss:$16 sps:$4 sm:$0xff]   ;;  %v4928_v19 = vld [vmem:[#allocation5 + $0x200] ss:$16 sps:$4 sm:$0xff]  }
 0x1f9   :  { %v592_v17 = vmul.f32 %v5726_v11, %v5726_v11  ;;  %v593_v18 = vmul.f32 %v5729_v12, %v5729_v12  ;;  %v594_v21 = vmul.f32 %v5732_v14, %v5732_v14  ;;  %v595_v20 = vmul.f32 %v5735_v15, %v5735_v15  ;;  %1482 = vmatpush1.bf16.msra.mxu0 %v4892_v25 }
 0x1fa   :  { %1483 = vmatprep.subr.bf16.mxu0 %v4900_v27  ;;  %v4942_v27 = vld [vmem:[#allocation5 + $0x244] ss:$16 sps:$4 sm:$0xff]  }
 0x1fb   :  { %v596_v16 = vadd.f32 %v593_v18, %v592_v17 }
 0x1fd   :  { %v597_v22 = vadd.f32 %v596_v16, %v594_v21  ;;  %1484 = vmatpush1.bf16.msra.mxu0 %v4898_v29  ;;  %v4940_v29 = vld [vmem:[#allocation5 + $0x240] ss:$16 sps:$4 sm:$0xff]  }
 0x1fe   :  { %1485 = vmatprep.subr.bf16.mxu0 %v4906_v31  ;;  %v4948_v31 = vld [vmem:[#allocation5 + $0x264] ss:$16 sps:$4 sm:$0xff]  }
 0x1ff   :  { %v598_v23 = vadd.f32 %v597_v22, %v595_v20 }
 0x201   :  { %599 = vadd.xlane.f32.xlu0 %v598_v23  ;;  %1486 = vmatpush1.bf16.msra.mxu0 %v4904_v33  ;;  %v4946_v33 = vld [vmem:[#allocation5 + $0x260] ss:$16 sps:$4 sm:$0xff]  }
 0x202   :  { %1487 = vmatprep.subr.bf16.mxu0 %v4912_v35  ;;  %v4954_v35 = vld [vmem:[#allocation5 + $0x284] ss:$16 sps:$4 sm:$0xff]  }
 0x205   :  { %1488 = vmatpush1.bf16.msra.mxu0 %v4910_v37  ;;  %v4952_v37 = vld [vmem:[#allocation5 + $0x280] ss:$16 sps:$4 sm:$0xff]  }
 0x206   :  { %1489 = vmatprep.subr.bf16.mxu0 %v4918_v39  ;;  %v4960_v39 = vld [vmem:[#allocation5 + $0x2a4] ss:$16 sps:$4 sm:$0xff]  }
 0x209   :  { %1490 = vmatpush1.bf16.msra.mxu0 %v4916_v41  ;;  %v4958_v41 = vld [vmem:[#allocation5 + $0x2a0] ss:$16 sps:$4 sm:$0xff]  }
 0x20a   :  { %1491 = vmatprep.subr.bf16.mxu0 %v4924_v43  ;;  %v4966_v43 = vld [vmem:[#allocation5 + $0x2c4] ss:$16 sps:$4 sm:$0xff]  }
 0x20d   :  { %1492 = vmatpush1.bf16.msra.mxu0 %v4922_v45  ;;  %v4964_v45 = vld [vmem:[#allocation5 + $0x2c0] ss:$16 sps:$4 sm:$0xff]  }
 0x20e   :  { %1502 = vmatprep.subr.bf16.mxu0 %v4930_v47  ;;  %v4972_v47 = vld [vmem:[#allocation5 + $0x2e4] ss:$16 sps:$4 sm:$0xff]  }
 0x28e   :  { %v600_v49 = vpop.xlane.xlu0 %599 }
 0x28f   :  { %v601_v50 = vmul.f32 0.001953125, %v600_v49  ;;  %v4970_v49 = vld [vmem:[#allocation5 + $0x2e0] ss:$16 sps:$4 sm:$0xff]  }
 0x291   :  { %v602_v51 = vadd.f32 1e-05, %v601_v50  ;;  %v4973_v50 = vld [vmem:[#allocation5 + $0x2e8] ss:$16 sps:$4 sm:$0xff]  }
 0x293   :  { %5440 = vrsqrt.f32 %v602_v51  ;;  %v4978_v51 = vld [vmem:[#allocation5 + $0x304] ss:$16 sps:$4 sm:$0xff]  }
 0x29d   :  { %v5441_v58 = vpop.eup %5440 }
 0x29e   :  { %v626_v63 = vmul.f32 %v5441_v58, %v612_v54  ;;  %v625_v0 = vmul.f32 %v5441_v58, %v608_v55  ;;  %v628_v1 = vmul.f32 %v5441_v58, %v620_v56  ;;  %v627_v2 = vmul.f32 %v5441_v58, %v616_v57  ;;  %v4979_v54 = vld [vmem:[#allocation5 + $0x308] ss:$16 sps:$4 sm:$0xff]   ;;  %v4984_v55 = vld [vmem:[#allocation5 + $0x324] ss:$16 sps:$4 sm:$0xff]   ;;  %v4987_v56 = vld [vmem:[#allocation5 + $0x32c] ss:$16 sps:$4 sm:$0xff]  }
 0x29f   :  { %v4982_v57 = vld [vmem:[#allocation5 + $0x320] ss:$16 sps:$4 sm:$0xff]   ;;  %v4985_v58 = vld [vmem:[#allocation5 + $0x328] ss:$16 sps:$4 sm:$0xff]  }
 0x2a0   :  { %v630_v3 = vmul.f32 %v626_v63, %v5729_v12  ;;  %v629_v4 = vmul.f32 %v625_v0, %v5726_v11  ;;  %v632_v5 = vmul.f32 %v628_v1, %v5735_v15  ;;  %v631_v7 = vmul.f32 %v627_v2, %v5732_v14  ;;  %v4936_v12 = vld [vmem:[#allocation5 + $0x224] ss:$16 sps:$4 sm:$0xff]   ;;  %v4939_v11 = vld [vmem:[#allocation5 + $0x22c] ss:$16 sps:$4 sm:$0xff]   ;;  %v4934_v14 = vld [vmem:[#allocation5 + $0x220] ss:$16 sps:$4 sm:$0xff]  }
 0x2a1   :  { %v4996_v63 = vld [vmem:[#allocation5 + $0x364] ss:$16 sps:$4 sm:$0xff]   ;;  %v4999_v0 = vld [vmem:[#allocation5 + $0x36c] ss:$16 sps:$4 sm:$0xff]   ;;  %v4994_v1 = vld [vmem:[#allocation5 + $0x360] ss:$16 sps:$4 sm:$0xff]  }
 0x2a2   :  { %v655_v10 = vadd.f32 %v641_v59, %v630_v3  ;;  %v654_v17 = vadd.f32 %v637_v60, %v629_v4  ;;  %v657_v18 = vadd.f32 %v649_v61, %v632_v5  ;;  %v5763_v21 = vadd.f32 %v645_v62, %v631_v7  ;;  %v4990_v59 = vld [vmem:[#allocation5 + $0x344] ss:$16 sps:$4 sm:$0xff]   ;;  %v4993_v60 = vld [vmem:[#allocation5 + $0x34c] ss:$16 sps:$4 sm:$0xff]   ;;  %v4988_v61 = vld [vmem:[#allocation5 + $0x340] ss:$16 sps:$4 sm:$0xff]  }
 0x2a3   :  { %v4991_v62 = vld [vmem:[#allocation5 + $0x348] ss:$16 sps:$4 sm:$0xff]   ;;  %v5002_v3 = vld [vmem:[#allocation5 + $0x384] ss:$16 sps:$4 sm:$0xff]   ;;  %v5005_v4 = vld [vmem:[#allocation5 + $0x38c] ss:$16 sps:$4 sm:$0xff]  }
 0x2a4   :  { %v659_v16 = vmax.f32 %v655_v10, 0.0  ;;  %v658_v20 = vmax.f32 %v654_v17, 0.0  ;;  %v661_v22 = vmax.f32 %v657_v18, 0.0  ;;  %v4997_v2 = vld [vmem:[#allocation5 + $0x368] ss:$16 sps:$4 sm:$0xff]  }
 0x2a5   :  { %v5000_v5 = vld [vmem:[#allocation5 + $0x380] ss:$16 sps:$4 sm:$0xff]   ;;  %v5003_v7 = vld [vmem:[#allocation5 + $0x388] ss:$16 sps:$4 sm:$0xff]   ;;  %v5008_v10 = vld [vmem:[#allocation5 + $0x3a4] ss:$16 sps:$4 sm:$0xff]  }
 0x2a6   :  { %v663_v23 = vpack.c.bf16 %v659_v16, %v659_v16  ;;  %v662_v25 = vpack.c.bf16 %v658_v20, %v658_v20  ;;  %v665_v15 = vpack.c.bf16 %v661_v22, %v661_v22  ;;  %v5011_v17 = vld [vmem:[#allocation5 + $0x3ac] ss:$16 sps:$4 sm:$0xff]   ;;  %v5006_v18 = vld [vmem:[#allocation5 + $0x3a0] ss:$16 sps:$4 sm:$0xff]   ;;  %v5009_v16 = vld [vmem:[#allocation5 + $0x3a8] ss:$16 sps:$4 sm:$0xff]  }
 0x2a7   :  { %v5014_v20 = vld [vmem:[#allocation5 + $0x3c4] ss:$16 sps:$4 sm:$0xff]   ;;  %v5017_v22 = vld [vmem:[#allocation5 + $0x3cc] ss:$16 sps:$4 sm:$0xff]  }
 0x2a8   :  { %1493 = vmatprep.mubr.bf16.mxu0 %v663_v23  ;;  %1575 = vmatprep.mubr.bf16.mxu1 %v663_v23  ;;  %v5012_v23 = vld [vmem:[#allocation5 + $0x3c0] ss:$16 sps:$4 sm:$0xff]  }
 0x2a9   :  { %1494 = vmatmul.mubr.bf16.vlgmr.msra.gmra.mrb[4].mxu0 %v662_v25  ;;  %1576 = vmatmul.mubr.bf16.vlgmr.msra.gmra.mrb[4].mxu1 %v662_v25  ;;  %v5023_v25 = vld [vmem:[#allocation5 + $0x3ec] ss:$16 sps:$4 sm:$0xff]  }
 0x2aa   :  { %1503 = vmatpush1.bf16.msra.mxu0 %v4928_v19  ;;  %1585 = vmatpush1.bf16.msra.mxu1 %v4931_v24  ;;  %v5015_v19 = vld [vmem:[#allocation5 + $0x3c8] ss:$16 sps:$4 sm:$0xff]   ;;  %v5020_v24 = vld [vmem:[#allocation5 + $0x3e4] ss:$16 sps:$4 sm:$0xff]  }
 0x2ab   :  { %1534 = vmatprep.mubr.bf16.mxu0 %v665_v15  ;;  %1616 = vmatprep.mubr.bf16.mxu1 %v665_v15  ;;  %v660_v15 = vmax.f32 %v5763_v21, 0.0 }
 0x2ac   :  { %1504 = vmatprep.subr.bf16.mxu0 %v4936_v12  ;;  %1586 = vmatprep.subr.bf16.mxu1 %v4939_v11  ;;  %v5018_v12 = vld [vmem:[#allocation5 + $0x3e0] ss:$16 sps:$4 sm:$0xff]   ;;  %v5021_v11 = vld [vmem:[#allocation5 + $0x3e8] ss:$16 sps:$4 sm:$0xff]  }
 0x2ae   :  { %1505 = vmatpush1.bf16.msra.mxu0 %v4934_v14  ;;  %1587 = vmatpush1.bf16.msra.mxu1 %v4937_v26  ;;  %v664_v14 = vpack.c.bf16 %v660_v15, %v660_v15  ;;  %v4223_v26 = vld [vmem:[%s6044_s6 + $0x3] ss:$8 sm:$0xf] }
 0x2af   :  { %1506 = vmatprep.subr.bf16.mxu0 %v4942_v27  ;;  %1588 = vmatprep.subr.bf16.mxu1 %v4945_v28  ;;  %v804_v27 = vrot.slane %v4223_v26, %v5698_v6  ;;  %v808_v28 = vrot.slane %v4223_v26, %v5705_v9  ;;  %v5078_v15 = vld [vmem:[#allocation7 + $0x120] ss:$16 sps:$4 sm:$0xff]  }
 0x2b2   :  { %1507 = vmatpush1.bf16.msra.mxu0 %v4940_v29  ;;  %1589 = vmatpush1.bf16.msra.mxu1 %v4943_v30  ;;  %v812_v30 = vrot.slane %v4223_v26, %v5703_v8 }
 0x2b3   :  { %1508 = vmatprep.subr.bf16.mxu0 %v4948_v31  ;;  %1590 = vmatprep.subr.bf16.mxu1 %v4951_v32 }
 0x2b6   :  { %1509 = vmatpush1.bf16.msra.mxu0 %v4946_v33  ;;  %1591 = vmatpush1.bf16.msra.mxu1 %v4949_v34 }
 0x2b7   :  { %1510 = vmatprep.subr.bf16.mxu0 %v4954_v35  ;;  %1592 = vmatprep.subr.bf16.mxu1 %v4957_v36  ;;  %v816_v35 = vrot.slane %v4223_v26, %v5710_v13 }
 0x2ba   :  { %1511 = vmatpush1.bf16.msra.mxu0 %v4952_v37  ;;  %1593 = vmatpush1.bf16.msra.mxu1 %v4955_v38 }
 0x2bb   :  { %1512 = vmatprep.subr.bf16.mxu0 %v4960_v39  ;;  %1594 = vmatprep.subr.bf16.mxu1 %v4963_v40 }
 0x2be   :  { %1513 = vmatpush1.bf16.msra.mxu0 %v4958_v41  ;;  %1595 = vmatpush1.bf16.msra.mxu1 %v4961_v42 }
 0x2bf   :  { %1514 = vmatprep.subr.bf16.mxu0 %v4966_v43  ;;  %1596 = vmatprep.subr.bf16.mxu1 %v4969_v44 }
 0x2c2   :  { %1515 = vmatpush1.bf16.msra.mxu0 %v4964_v45  ;;  %1597 = vmatpush1.bf16.msra.mxu1 %v4967_v46  ;;  %v5024_v45 = vld [vmem:[#allocation7] ss:$16 sps:$4 sm:$0xff]   ;;  %v5026_v46 = vld [vmem:[#allocation7 + $0x4] ss:$16 sps:$4 sm:$0xff]  }
 0x2c3   :  { %1516 = vmatprep.subr.bf16.mxu0 %v4972_v47  ;;  %1598 = vmatprep.subr.bf16.mxu1 %v4975_v48  ;;  %v5027_v47 = vld [vmem:[#allocation7 + $0x8] ss:$16 sps:$4 sm:$0xff]   ;;  %v5029_v48 = vld [vmem:[#allocation7 + $0xc] ss:$16 sps:$4 sm:$0xff]  }
 0x2c6   :  { %1517 = vmatpush1.bf16.msra.mxu0 %v4970_v49  ;;  %1599 = vmatpush1.bf16.msra.mxu1 %v4973_v50  ;;  %v5032_v49 = vld [vmem:[#allocation7 + $0x24] ss:$16 sps:$4 sm:$0xff]   ;;  %v5035_v50 = vld [vmem:[#allocation7 + $0x2c] ss:$16 sps:$4 sm:$0xff]  }
 0x2c7   :  { %1518 = vmatprep.subr.bf16.mxu0 %v4978_v51  ;;  %1600 = vmatprep.subr.bf16.mxu1 %v4981_v52  ;;  %v5030_v51 = vld [vmem:[#allocation7 + $0x20] ss:$16 sps:$4 sm:$0xff]   ;;  %v5033_v52 = vld [vmem:[#allocation7 + $0x28] ss:$16 sps:$4 sm:$0xff]  }
 0x2ca   :  { %1519 = vmatpush1.bf16.msra.mxu0 %v4976_v53  ;;  %1601 = vmatpush1.bf16.msra.mxu1 %v4979_v54  ;;  %v5038_v53 = vld [vmem:[#allocation7 + $0x44] ss:$16 sps:$4 sm:$0xff]   ;;  %v5041_v54 = vld [vmem:[#allocation7 + $0x4c] ss:$16 sps:$4 sm:$0xff]  }
 0x2cb   :  { %1520 = vmatprep.subr.bf16.mxu0 %v4984_v55  ;;  %1602 = vmatprep.subr.bf16.mxu1 %v4987_v56  ;;  %v5036_v55 = vld [vmem:[#allocation7 + $0x40] ss:$16 sps:$4 sm:$0xff]   ;;  %v5039_v56 = vld [vmem:[#allocation7 + $0x48] ss:$16 sps:$4 sm:$0xff]  }
 0x2ce   :  { %1521 = vmatpush1.bf16.msra.mxu0 %v4982_v57  ;;  %1603 = vmatpush1.bf16.msra.mxu1 %v4985_v58  ;;  %v5044_v57 = vld [vmem:[#allocation7 + $0x64] ss:$16 sps:$4 sm:$0xff]   ;;  %v5047_v58 = vld [vmem:[#allocation7 + $0x6c] ss:$16 sps:$4 sm:$0xff]  }
 0x2cf   :  { %1522 = vmatprep.subr.bf16.mxu0 %v4990_v59  ;;  %1604 = vmatprep.subr.bf16.mxu1 %v4993_v60  ;;  %v5042_v59 = vld [vmem:[#allocation7 + $0x60] ss:$16 sps:$4 sm:$0xff]   ;;  %v5045_v60 = vld [vmem:[#allocation7 + $0x68] ss:$16 sps:$4 sm:$0xff]  }
 0x2d2   :  { %1523 = vmatpush1.bf16.msra.mxu0 %v4988_v61  ;;  %1605 = vmatpush1.bf16.msra.mxu1 %v4991_v62  ;;  %v5050_v61 = vld [vmem:[#allocation7 + $0x84] ss:$16 sps:$4 sm:$0xff]   ;;  %v5053_v62 = vld [vmem:[#allocation7 + $0x8c] ss:$16 sps:$4 sm:$0xff]  }
 0x2d3   :  { %1524 = vmatprep.subr.bf16.mxu0 %v4996_v63  ;;  %1606 = vmatprep.subr.bf16.mxu1 %v4999_v0  ;;  %v5048_v63 = vld [vmem:[#allocation7 + $0x80] ss:$16 sps:$4 sm:$0xff]   ;;  %v5051_v0 = vld [vmem:[#allocation7 + $0x88] ss:$16 sps:$4 sm:$0xff]  }
 0x2d6   :  { %1525 = vmatpush1.bf16.msra.mxu0 %v4994_v1  ;;  %1607 = vmatpush1.bf16.msra.mxu1 %v4997_v2  ;;  %v5056_v1 = vld [vmem:[#allocation7 + $0xa4] ss:$16 sps:$4 sm:$0xff]   ;;  %v5059_v2 = vld [vmem:[#allocation7 + $0xac] ss:$16 sps:$4 sm:$0xff]  }
 0x2d7   :  { %1526 = vmatprep.subr.bf16.mxu0 %v5002_v3  ;;  %1608 = vmatprep.subr.bf16.mxu1 %v5005_v4  ;;  %v5054_v3 = vld [vmem:[#allocation7 + $0xa0] ss:$16 sps:$4 sm:$0xff]   ;;  %v5057_v4 = vld [vmem:[#allocation7 + $0xa8] ss:$16 sps:$4 sm:$0xff]  }
 0x2da   :  { %1527 = vmatpush1.bf16.msra.mxu0 %v5000_v5  ;;  %1609 = vmatpush1.bf16.msra.mxu1 %v5003_v7  ;;  %v5062_v5 = vld [vmem:[#allocation7 + $0xc4] ss:$16 sps:$4 sm:$0xff]   ;;  %v5065_v7 = vld [vmem:[#allocation7 + $0xcc] ss:$16 sps:$4 sm:$0xff]  }
 0x2db   :  { %1528 = vmatprep.subr.bf16.mxu0 %v5008_v10  ;;  %1610 = vmatprep.subr.bf16.mxu1 %v5011_v17  ;;  %v5060_v10 = vld [vmem:[#allocation7 + $0xc0] ss:$16 sps:$4 sm:$0xff]   ;;  %v5063_v17 = vld [vmem:[#allocation7 + $0xc8] ss:$16 sps:$4 sm:$0xff]  }
 0x2de   :  { %1529 = vmatpush1.bf16.msra.mxu0 %v5006_v18  ;;  %1611 = vmatpush1.bf16.msra.mxu1 %v5009_v16  ;;  %v5068_v18 = vld [vmem:[#allocation7 + $0xe4] ss:$16 sps:$4 sm:$0xff]   ;;  %v5071_v16 = vld [vmem:[#allocation7 + $0xec] ss:$16 sps:$4 sm:$0xff]  }
 0x2df   :  { %1530 = vmatprep.subr.bf16.mxu0 %v5014_v20  ;;  %1612 = vmatprep.subr.bf16.mxu1 %v5017_v22  ;;  %v5066_v20 = vld [vmem:[#allocation7 + $0xe0] ss:$16 sps:$4 sm:$0xff]   ;;  %v5069_v22 = vld [vmem:[#allocation7 + $0xe8] ss:$16 sps:$4 sm:$0xff]  }
 0x2e2   :  { %1531 = vmatpush1.bf16.msra.mxu0 %v5012_v23  ;;  %1613 = vmatpush1.bf16.msra.mxu1 %v5015_v19  ;;  %v5074_v23 = vld [vmem:[#allocation7 + $0x104] ss:$16 sps:$4 sm:$0xff]   ;;  %v5077_v19 = vld [vmem:[#allocation7 + $0x10c] ss:$16 sps:$4 sm:$0xff]  }
 0x2e3   :  { %1532 = vmatprep.subr.bf16.mxu0 %v5020_v24  ;;  %1614 = vmatprep.subr.bf16.mxu1 %v5023_v25  ;;  %v5072_v24 = vld [vmem:[#allocation7 + $0x100] ss:$16 sps:$4 sm:$0xff]   ;;  %v5075_v25 = vld [vmem:[#allocation7 + $0x108] ss:$16 sps:$4 sm:$0xff]  }
 0x2e6   :  { %1533 = vmatpush1.bf16.msra.mxu0 %v5018_v12  ;;  %1615 = vmatpush1.bf16.msra.mxu1 %v5021_v11  ;;  %v5080_v12 = vld [vmem:[#allocation7 + $0x124] ss:$16 sps:$4 sm:$0xff]   ;;  %v5083_v11 = vld [vmem:[#allocation7 + $0x12c] ss:$16 sps:$4 sm:$0xff]  }
 0x2e7   :  { %2504 = vmatprep.subr.bf16.mxu0 %v5026_v46  ;;  %2586 = vmatprep.subr.bf16.mxu1 %v5029_v48  ;;  %v5098_v46 = vld [vmem:[#allocation7 + $0x184] ss:$16 sps:$4 sm:$0xff]   ;;  %v5096_v48 = vld [vmem:[#allocation7 + $0x180] ss:$16 sps:$4 sm:$0xff]  }
 0x2e9   :  { %1535 = vmatmul.mubr.bf16.vlgmr.msra.gmra.mrb[4].mxu0 %v664_v14  ;;  %1617 = vmatmul.mubr.bf16.vlgmr.msra.gmra.mrb[4].mxu1 %v664_v14  ;;  %v5081_v14 = vld [vmem:[#allocation7 + $0x128] ss:$16 sps:$4 sm:$0xff]  }
 0x2ea   :  { %2505 = vmatpush1.bf16.msra.mxu0 %v5024_v45  ;;  %2587 = vmatpush1.bf16.msra.mxu1 %v5027_v47  ;;  %v5093_v45 = vld [vmem:[#allocation7 + $0x168] ss:$16 sps:$4 sm:$0xff]   ;;  %v5101_v47 = vld [vmem:[#allocation7 + $0x18c] ss:$16 sps:$4 sm:$0xff]  }
 0x2eb   :  { %2506 = vmatprep.subr.bf16.mxu0 %v5032_v49  ;;  %2588 = vmatprep.subr.bf16.mxu1 %v5035_v50  ;;  %v5099_v49 = vld [vmem:[#allocation7 + $0x188] ss:$16 sps:$4 sm:$0xff]   ;;  %v5104_v50 = vld [vmem:[#allocation7 + $0x1a4] ss:$16 sps:$4 sm:$0xff]  }
 0x2ee   :  { %2507 = vmatpush1.bf16.msra.mxu0 %v5030_v51  ;;  %2589 = vmatpush1.bf16.msra.mxu1 %v5033_v52  ;;  %v5107_v51 = vld [vmem:[#allocation7 + $0x1ac] ss:$16 sps:$4 sm:$0xff]   ;;  %v5102_v52 = vld [vmem:[#allocation7 + $0x1a0] ss:$16 sps:$4 sm:$0xff]  }
 0x2ef   :  { %2508 = vmatprep.subr.bf16.mxu0 %v5038_v53  ;;  %2590 = vmatprep.subr.bf16.mxu1 %v5041_v54  ;;  %v5105_v53 = vld [vmem:[#allocation7 + $0x1a8] ss:$16 sps:$4 sm:$0xff]   ;;  %v5110_v54 = vld [vmem:[#allocation7 + $0x1c4] ss:$16 sps:$4 sm:$0xff]  }
 0x2f2   :  { %2509 = vmatpush1.bf16.msra.mxu0 %v5036_v55  ;;  %2591 = vmatpush1.bf16.msra.mxu1 %v5039_v56  ;;  %v5113_v55 = vld [vmem:[#allocation7 + $0x1cc] ss:$16 sps:$4 sm:$0xff]   ;;  %v5108_v56 = vld [vmem:[#allocation7 + $0x1c0] ss:$16 sps:$4 sm:$0xff]  }
 0x2f3   :  { %2510 = vmatprep.subr.bf16.mxu0 %v5044_v57  ;;  %2592 = vmatprep.subr.bf16.mxu1 %v5047_v58  ;;  %v5111_v57 = vld [vmem:[#allocation7 + $0x1c8] ss:$16 sps:$4 sm:$0xff]   ;;  %v5116_v58 = vld [vmem:[#allocation7 + $0x1e4] ss:$16 sps:$4 sm:$0xff]  }
 0x2f6   :  { %2511 = vmatpush1.bf16.msra.mxu0 %v5042_v59  ;;  %2593 = vmatpush1.bf16.msra.mxu1 %v5045_v60  ;;  %v5119_v59 = vld [vmem:[#allocation7 + $0x1ec] ss:$16 sps:$4 sm:$0xff]   ;;  %v5114_v60 = vld [vmem:[#allocation7 + $0x1e0] ss:$16 sps:$4 sm:$0xff]  }
 0x2f7   :  { %2512 = vmatprep.subr.bf16.mxu0 %v5050_v61  ;;  %2594 = vmatprep.subr.bf16.mxu1 %v5053_v62  ;;  %v5117_v61 = vld [vmem:[#allocation7 + $0x1e8] ss:$16 sps:$4 sm:$0xff]   ;;  %v5122_v62 = vld [vmem:[#allocation7 + $0x204] ss:$16 sps:$4 sm:$0xff]  }
 0x2fa   :  { %2513 = vmatpush1.bf16.msra.mxu0 %v5048_v63  ;;  %2595 = vmatpush1.bf16.msra.mxu1 %v5051_v0  ;;  %v5125_v63 = vld [vmem:[#allocation7 + $0x20c] ss:$16 sps:$4 sm:$0xff]  }
 0x2fb   :  { %2514 = vmatprep.subr.bf16.mxu0 %v5056_v1  ;;  %2596 = vmatprep.subr.bf16.mxu1 %v5059_v2 }
 0x2fe   :  { %2515 = vmatpush1.bf16.msra.mxu0 %v5054_v3  ;;  %2597 = vmatpush1.bf16.msra.mxu1 %v5057_v4  ;;  %v4224_v3 = vld [vmem:[%s6044_s6 + $0x4] ss:$8 sm:$0xf]  ;;  %v4225_v4 = vld [vmem:[%s6044_s6 + $0x5] ss:$8 sm:$0xf] }
 0x2ff   :  { %2516 = vmatprep.subr.bf16.mxu0 %v5062_v5  ;;  %2598 = vmatprep.subr.bf16.mxu1 %v5065_v7  ;;  %v1655_v5 = vrot.slane %v4224_v3, %v5705_v9  ;;  %v1651_v7 = vrot.slane %v4224_v3, %v5698_v6 }
 0x302   :  { %2517 = vmatpush1.bf16.msra.mxu0 %v5060_v10  ;;  %2599 = vmatpush1.bf16.msra.mxu1 %v5063_v17  ;;  %v1663_v10 = vrot.slane %v4224_v3, %v5710_v13  ;;  %v1659_v17 = vrot.slane %v4224_v3, %v5703_v8  ;;  %v5173_v3 = vld [vmem:[#allocation7 + $0x30c] ss:$16 sps:$4 sm:$0xff]  }
 0x303   :  { %2518 = vmatprep.subr.bf16.mxu0 %v5068_v18  ;;  %2600 = vmatprep.subr.bf16.mxu1 %v5071_v16  ;;  %v1684_v16 = vrot.slane %v4225_v4, %v5705_v9 }
 0x306   :  { %2519 = vmatpush1.bf16.msra.mxu0 %v5066_v20  ;;  %2601 = vmatpush1.bf16.msra.mxu1 %v5069_v22  ;;  %v1680_v20 = vrot.slane %v4225_v4, %v5698_v6  ;;  %v1692_v22 = vrot.slane %v4225_v4, %v5710_v13 }
 0x307   :  { %2520 = vmatprep.subr.bf16.mxu0 %v5074_v23  ;;  %2602 = vmatprep.subr.bf16.mxu1 %v5077_v19  ;;  %v1688_v23 = vrot.slane %v4225_v4, %v5703_v8  ;;  %v5168_v4 = vld [vmem:[#allocation7 + $0x300] ss:$16 sps:$4 sm:$0xff]  }
 0x30a   :  { %2521 = vmatpush1.bf16.msra.mxu0 %v5072_v24  ;;  %2603 = vmatpush1.bf16.msra.mxu1 %v5075_v25 }
 0x30b   :  { %2522 = vmatprep.subr.bf16.mxu0 %v5080_v12  ;;  %2604 = vmatprep.subr.bf16.mxu1 %v5083_v11 }
 0x30e   :  { %2523 = vmatpush1.bf16.msra.mxu0 %v5078_v15  ;;  %2605 = vmatpush1.bf16.msra.mxu1 %v5081_v14 }
 0x3bc   :  { %v1536_v29 = vpop.f32.mrb[4].mxu0  ;;  %v1618_v31 = vpop.f32.mrb[4].mxu1 }
 0x3bd   :  { %v5772_v32 = vadd.f32 %v1536_v29, %v804_v27  ;;  %v1538_v21 = vpop.f32.mrb[5].mxu0  ;;  %v1620_v33 = vpop.f32.mrb[5].mxu1  ;;  %v5777_v40 = vadd.f32 %v1618_v31, %v812_v30 }
 0x3be   :  { %v5774_v34 = vadd.f32 %v1538_v21, %v808_v28  ;;  %v1540_v36 = vpop.f32.mrb[6].mxu0  ;;  %v1622_v37 = vpop.f32.mrb[6].mxu1  ;;  %v5781_v42 = vadd.f32 %v1620_v33, %v816_v35 }
 0x3bf   :  { %v1541_v38 = vpop.f32.mrb[7].mxu0  ;;  %v1623_v39 = vpop.f32.mrb[7].mxu1 }
 0x3c0   :  { %v1625_v41 = vadd.f32 %v5774_v34, %v5772_v32  ;;  %v5086_v38 = vld [vmem:[#allocation7 + $0x144] ss:$16 sps:$4 sm:$0xff]   ;;  %v5089_v39 = vld [vmem:[#allocation7 + $0x14c] ss:$16 sps:$4 sm:$0xff]  }
 0x3c1   :  { %2524 = vmatprep.subr.bf16.mxu0 %v5086_v38  ;;  %2606 = vmatprep.subr.bf16.mxu1 %v5089_v39  ;;  %v5120_v38 = vld [vmem:[#allocation7 + $0x200] ss:$16 sps:$4 sm:$0xff]   ;;  %v5123_v39 = vld [vmem:[#allocation7 + $0x208] ss:$16 sps:$4 sm:$0xff]  }
 0x3c2   :  { %v1626_v43 = vadd.f32 %v5777_v40, %v1625_v41  ;;  %v5087_v41 = vld [vmem:[#allocation7 + $0x148] ss:$16 sps:$4 sm:$0xff]  }
 0x3c3   :  { %2607 = vmatpush1.bf16.msra.mxu1 %v5087_v41  ;;  %v5129_v41 = vld [vmem:[#allocation7 + $0x228] ss:$16 sps:$4 sm:$0xff]  }
 0x3c4   :  { %v1627_v44 = vadd.f32 %v5781_v42, %v1626_v43  ;;  %v5095_v43 = vld [vmem:[#allocation7 + $0x16c] ss:$16 sps:$4 sm:$0xff]  }
 0x3c5   :  { %2608 = vmatprep.subr.bf16.mxu1 %v5095_v43  ;;  %v5137_v43 = vld [vmem:[#allocation7 + $0x24c] ss:$16 sps:$4 sm:$0xff]  }
 0x3c6   :  { %1628 = vadd.xlane.f32.xlu1 %v1627_v44  ;;  %v5090_v44 = vld [vmem:[#allocation7 + $0x160] ss:$16 sps:$4 sm:$0xff]  }
 0x3c7   :  { %2609 = vmatpush1.bf16.msra.mxu1 %v5093_v45  ;;  %v5135_v45 = vld [vmem:[#allocation7 + $0x248] ss:$16 sps:$4 sm:$0xff]  }
 0x3c8   :  { %2610 = vmatprep.subr.bf16.mxu1 %v5101_v47  ;;  %v5143_v47 = vld [vmem:[#allocation7 + $0x26c] ss:$16 sps:$4 sm:$0xff]  }
 0x3cb   :  { %2611 = vmatpush1.bf16.msra.mxu1 %v5099_v49  ;;  %v5141_v49 = vld [vmem:[#allocation7 + $0x268] ss:$16 sps:$4 sm:$0xff]  }
 0x3cc   :  { %2612 = vmatprep.subr.bf16.mxu1 %v5107_v51  ;;  %v5149_v51 = vld [vmem:[#allocation7 + $0x28c] ss:$16 sps:$4 sm:$0xff]  }
 0x3cf   :  { %2613 = vmatpush1.bf16.msra.mxu1 %v5105_v53  ;;  %v5147_v53 = vld [vmem:[#allocation7 + $0x288] ss:$16 sps:$4 sm:$0xff]  }
 0x3d0   :  { %2614 = vmatprep.subr.bf16.mxu1 %v5113_v55  ;;  %v5155_v55 = vld [vmem:[#allocation7 + $0x2ac] ss:$16 sps:$4 sm:$0xff]  }
 0x3d3   :  { %2615 = vmatpush1.bf16.msra.mxu1 %v5111_v57  ;;  %v5153_v57 = vld [vmem:[#allocation7 + $0x2a8] ss:$16 sps:$4 sm:$0xff]  }
 0x3d4   :  { %2616 = vmatprep.subr.bf16.mxu1 %v5119_v59  ;;  %v5161_v59 = vld [vmem:[#allocation7 + $0x2cc] ss:$16 sps:$4 sm:$0xff]  }
 0x3d7   :  { %2617 = vmatpush1.bf16.msra.mxu1 %v5117_v61  ;;  %v5159_v61 = vld [vmem:[#allocation7 + $0x2c8] ss:$16 sps:$4 sm:$0xff]  }
 0x3d8   :  { %2627 = vmatprep.subr.bf16.mxu1 %v5125_v63  ;;  %v5167_v63 = vld [vmem:[#allocation7 + $0x2ec] ss:$16 sps:$4 sm:$0xff]  }
 0x453   :  { %v1629_v26 = vpop.xlane.xlu1 %1628 }
 0x454   :  { %v1630_v27 = vmul.f32 0.001953125, %v1629_v26 }
 0x456   :  { %v5786_v28 = vsub.f32 %v5772_v32, %v1630_v27  ;;  %v5789_v29 = vsub.f32 %v5774_v34, %v1630_v27  ;;  %v5792_v30 = vsub.f32 %v5777_v40, %v1630_v27  ;;  %v5795_v31 = vsub.f32 %v5781_v42, %v1630_v27  ;;  %v5084_v40 = vld [vmem:[#allocation7 + $0x140] ss:$16 sps:$4 sm:$0xff]   ;;  %v5092_v42 = vld [vmem:[#allocation7 + $0x164] ss:$16 sps:$4 sm:$0xff]  }
 0x457   :  { %2525 = vmatpush1.bf16.msra.mxu0 %v5084_v40 }
 0x458   :  { %v1635_v21 = vmul.f32 %v5786_v28, %v5786_v28  ;;  %v1636_v33 = vmul.f32 %v5789_v29, %v5789_v29  ;;  %v1637_v35 = vmul.f32 %v5792_v30, %v5792_v30  ;;  %v1638_v34 = vmul.f32 %v5795_v31, %v5795_v31  ;;  %2526 = vmatprep.subr.bf16.mxu0 %v5092_v42  ;;  %v5134_v42 = vld [vmem:[#allocation7 + $0x244] ss:$16 sps:$4 sm:$0xff]  }
 0x45a   :  { %v1639_v32 = vadd.f32 %v1636_v33, %v1635_v21 }
 0x45b   :  { %2527 = vmatpush1.bf16.msra.mxu0 %v5090_v44  ;;  %v5132_v44 = vld [vmem:[#allocation7 + $0x240] ss:$16 sps:$4 sm:$0xff]  }
 0x45c   :  { %v1640_v36 = vadd.f32 %v1639_v32, %v1637_v35  ;;  %2528 = vmatprep.subr.bf16.mxu0 %v5098_v46  ;;  %v5140_v46 = vld [vmem:[#allocation7 + $0x264] ss:$16 sps:$4 sm:$0xff]  }
 0x45e   :  { %v1641_v37 = vadd.f32 %v1640_v36, %v1638_v34 }
 0x45f   :  { %2529 = vmatpush1.bf16.msra.mxu0 %v5096_v48  ;;  %v5138_v48 = vld [vmem:[#allocation7 + $0x260] ss:$16 sps:$4 sm:$0xff]  }
 0x460   :  { %1642 = vadd.xlane.f32.xlu1 %v1641_v37  ;;  %2530 = vmatprep.subr.bf16.mxu0 %v5104_v50  ;;  %v5146_v50 = vld [vmem:[#allocation7 + $0x284] ss:$16 sps:$4 sm:$0xff]  }
 0x463   :  { %2531 = vmatpush1.bf16.msra.mxu0 %v5102_v52  ;;  %v5144_v52 = vld [vmem:[#allocation7 + $0x280] ss:$16 sps:$4 sm:$0xff]  }
 0x464   :  { %2532 = vmatprep.subr.bf16.mxu0 %v5110_v54  ;;  %v5152_v54 = vld [vmem:[#allocation7 + $0x2a4] ss:$16 sps:$4 sm:$0xff]  }
 0x467   :  { %2533 = vmatpush1.bf16.msra.mxu0 %v5108_v56  ;;  %v5150_v56 = vld [vmem:[#allocation7 + $0x2a0] ss:$16 sps:$4 sm:$0xff]  }
 0x468   :  { %2534 = vmatprep.subr.bf16.mxu0 %v5116_v58  ;;  %v5158_v58 = vld [vmem:[#allocation7 + $0x2c4] ss:$16 sps:$4 sm:$0xff]  }
 0x46b   :  { %2535 = vmatpush1.bf16.msra.mxu0 %v5114_v60  ;;  %v5156_v60 = vld [vmem:[#allocation7 + $0x2c0] ss:$16 sps:$4 sm:$0xff]  }
 0x46c   :  { %2545 = vmatprep.subr.bf16.mxu0 %v5122_v62  ;;  %v5164_v62 = vld [vmem:[#allocation7 + $0x2e4] ss:$16 sps:$4 sm:$0xff]  }
 0x4ed   :  { %v1643_v0 = vpop.xlane.xlu1 %1642 }
 0x4ee   :  { %v1644_v1 = vmul.f32 0.001953125, %v1643_v0  ;;  %v5162_v0 = vld [vmem:[#allocation7 + $0x2e0] ss:$16 sps:$4 sm:$0xff]  }
 0x4f0   :  { %v1645_v2 = vadd.f32 1e-05, %v1644_v1  ;;  %v5165_v1 = vld [vmem:[#allocation7 + $0x2e8] ss:$16 sps:$4 sm:$0xff]  }
 0x4f2   :  { %5442 = vrsqrt.f32 %v1645_v2  ;;  %v5170_v2 = vld [vmem:[#allocation7 + $0x304] ss:$16 sps:$4 sm:$0xff]  }
 0x4fc   :  { %v5443_v18 = vpop.eup %5442 }
 0x4fd   :  { %v1669_v19 = vmul.f32 %v5443_v18, %v1655_v5  ;;  %v1668_v24 = vmul.f32 %v5443_v18, %v1651_v7  ;;  %v1671_v25 = vmul.f32 %v5443_v18, %v1663_v10  ;;  %v1670_v12 = vmul.f32 %v5443_v18, %v1659_v17  ;;  %v5171_v5 = vld [vmem:[#allocation7 + $0x308] ss:$16 sps:$4 sm:$0xff]   ;;  %v5176_v7 = vld [vmem:[#allocation7 + $0x324] ss:$16 sps:$4 sm:$0xff]   ;;  %v5179_v10 = vld [vmem:[#allocation7 + $0x32c] ss:$16 sps:$4 sm:$0xff]  }
 0x4fe   :  { %v5174_v17 = vld [vmem:[#allocation7 + $0x320] ss:$16 sps:$4 sm:$0xff]   ;;  %v5177_v18 = vld [vmem:[#allocation7 + $0x328] ss:$16 sps:$4 sm:$0xff]  }
 0x4ff   :  { %v1673_v11 = vmul.f32 %v1669_v19, %v5789_v29  ;;  %v1672_v15 = vmul.f32 %v1668_v24, %v5786_v28  ;;  %v1675_v14 = vmul.f32 %v1671_v25, %v5795_v31  ;;  %v1674_v26 = vmul.f32 %v1670_v12, %v5792_v30  ;;  %v5128_v29 = vld [vmem:[#allocation7 + $0x224] ss:$16 sps:$4 sm:$0xff]   ;;  %v5131_v28 = vld [vmem:[#allocation7 + $0x22c] ss:$16 sps:$4 sm:$0xff]   ;;  %v5126_v30 = vld [vmem:[#allocation7 + $0x220] ss:$16 sps:$4 sm:$0xff]  }
 0x500   :  { %v5188_v19 = vld [vmem:[#allocation7 + $0x364] ss:$16 sps:$4 sm:$0xff]   ;;  %v5191_v24 = vld [vmem:[#allocation7 + $0x36c] ss:$16 sps:$4 sm:$0xff]   ;;  %v5186_v25 = vld [vmem:[#allocation7 + $0x360] ss:$16 sps:$4 sm:$0xff]  }
 0x501   :  { %v1698_v27 = vadd.f32 %v1684_v16, %v1673_v11  ;;  %v1697_v21 = vadd.f32 %v1680_v20, %v1672_v15  ;;  %v1700_v33 = vadd.f32 %v1692_v22, %v1675_v14  ;;  %v5823_v35 = vadd.f32 %v1688_v23, %v1674_v26  ;;  %v5182_v16 = vld [vmem:[#allocation7 + $0x344] ss:$16 sps:$4 sm:$0xff]   ;;  %v5185_v20 = vld [vmem:[#allocation7 + $0x34c] ss:$16 sps:$4 sm:$0xff]   ;;  %v5180_v22 = vld [vmem:[#allocation7 + $0x340] ss:$16 sps:$4 sm:$0xff]  }
 0x502   :  { %v5183_v23 = vld [vmem:[#allocation7 + $0x348] ss:$16 sps:$4 sm:$0xff]   ;;  %v5194_v11 = vld [vmem:[#allocation7 + $0x384] ss:$16 sps:$4 sm:$0xff]   ;;  %v5197_v15 = vld [vmem:[#allocation7 + $0x38c] ss:$16 sps:$4 sm:$0xff]  }
 0x503   :  { %v1702_v32 = vmax.f32 %v1698_v27, 0.0  ;;  %v1701_v34 = vmax.f32 %v1697_v21, 0.0  ;;  %v1704_v36 = vmax.f32 %v1700_v33, 0.0  ;;  %v5189_v12 = vld [vmem:[#allocation7 + $0x368] ss:$16 sps:$4 sm:$0xff]  }
 0x504   :  { %v5192_v14 = vld [vmem:[#allocation7 + $0x380] ss:$16 sps:$4 sm:$0xff]   ;;  %v5195_v26 = vld [vmem:[#allocation7 + $0x388] ss:$16 sps:$4 sm:$0xff]   ;;  %v5200_v27 = vld [vmem:[#allocation7 + $0x3a4] ss:$16 sps:$4 sm:$0xff]  }
 0x505   :  { %v1706_v37 = vpack.c.bf16 %v1702_v32, %v1702_v32  ;;  %v1705_v40 = vpack.c.bf16 %v1701_v34, %v1701_v34  ;;  %v1708_v31 = vpack.c.bf16 %v1704_v36, %v1704_v36  ;;  %v5203_v21 = vld [vmem:[#allocation7 + $0x3ac] ss:$16 sps:$4 sm:$0xff]   ;;  %v5198_v33 = vld [vmem:[#allocation7 + $0x3a0] ss:$16 sps:$4 sm:$0xff]   ;;  %v5201_v32 = vld [vmem:[#allocation7 + $0x3a8] ss:$16 sps:$4 sm:$0xff]  }
 0x506   :  { %v5206_v34 = vld [vmem:[#allocation7 + $0x3c4] ss:$16 sps:$4 sm:$0xff]   ;;  %v5209_v36 = vld [vmem:[#allocation7 + $0x3cc] ss:$16 sps:$4 sm:$0xff]  }
 0x507   :  { %2536 = vmatprep.mubr.bf16.mxu0 %v1706_v37  ;;  %2618 = vmatprep.mubr.bf16.mxu1 %v1706_v37  ;;  %v5204_v37 = vld [vmem:[#allocation7 + $0x3c0] ss:$16 sps:$4 sm:$0xff]  }
 0x508   :  { %2537 = vmatmul.mubr.bf16.vlgmr.msra.gmra.mrb[8].mxu0 %v1705_v40  ;;  %2619 = vmatmul.mubr.bf16.vlgmr.msra.gmra.mrb[8].mxu1 %v1705_v40  ;;  %v5215_v40 = vld [vmem:[#allocation7 + $0x3ec] ss:$16 sps:$4 sm:$0xff]  }
 0x509   :  { %2546 = vmatpush1.bf16.msra.mxu0 %v5120_v38  ;;  %2628 = vmatpush1.bf16.msra.mxu1 %v5123_v39  ;;  %v5207_v38 = vld [vmem:[#allocation7 + $0x3c8] ss:$16 sps:$4 sm:$0xff]   ;;  %v5212_v39 = vld [vmem:[#allocation7 + $0x3e4] ss:$16 sps:$4 sm:$0xff]  }
 0x50a   :  { %2577 = vmatprep.mubr.bf16.mxu0 %v1708_v31  ;;  %2659 = vmatprep.mubr.bf16.mxu1 %v1708_v31  ;;  %v1703_v31 = vmax.f32 %v5823_v35, 0.0 }
 0x50b   :  { %2547 = vmatprep.subr.bf16.mxu0 %v5128_v29  ;;  %2629 = vmatprep.subr.bf16.mxu1 %v5131_v28  ;;  %v5210_v29 = vld [vmem:[#allocation7 + $0x3e0] ss:$16 sps:$4 sm:$0xff]   ;;  %v5213_v28 = vld [vmem:[#allocation7 + $0x3e8] ss:$16 sps:$4 sm:$0xff]  }
 0x50d   :  { %2548 = vmatpush1.bf16.msra.mxu0 %v5126_v30  ;;  %2630 = vmatpush1.bf16.msra.mxu1 %v5129_v41  ;;  %v1707_v30 = vpack.c.bf16 %v1703_v31, %v1703_v31  ;;  %v4354_v41 = vld [vmem:[%s6044_s6 + $0x6] ss:$8 sm:$0xf]  ;;  %v5270_v31 = vld [vmem:[#allocation8 + $0x120] ss:$16 sps:$4 sm:$0xff]  }
 0x50e   :  { %2549 = vmatprep.subr.bf16.mxu0 %v5134_v42  ;;  %2631 = vmatprep.subr.bf16.mxu1 %v5137_v43  ;;  %v1847_v42 = vrot.slane %v4354_v41, %v5698_v6  ;;  %v1851_v43 = vrot.slane %v4354_v41, %v5705_v9 }
 0x511   :  { %2550 = vmatpush1.bf16.msra.mxu0 %v5132_v44  ;;  %2632 = vmatpush1.bf16.msra.mxu1 %v5135_v45  ;;  %v1855_v45 = vrot.slane %v4354_v41, %v5703_v8 }
 0x512   :  { %2551 = vmatprep.subr.bf16.mxu0 %v5140_v46  ;;  %2633 = vmatprep.subr.bf16.mxu1 %v5143_v47 }
 0x515   :  { %2552 = vmatpush1.bf16.msra.mxu0 %v5138_v48  ;;  %2634 = vmatpush1.bf16.msra.mxu1 %v5141_v49 }
 0x516   :  { %2553 = vmatprep.subr.bf16.mxu0 %v5146_v50  ;;  %2635 = vmatprep.subr.bf16.mxu1 %v5149_v51  ;;  %v1859_v50 = vrot.slane %v4354_v41, %v5710_v13 }
 0x519   :  { %2554 = vmatpush1.bf16.msra.mxu0 %v5144_v52  ;;  %2636 = vmatpush1.bf16.msra.mxu1 %v5147_v53 }
 0x51a   :  { %2555 = vmatprep.subr.bf16.mxu0 %v5152_v54  ;;  %2637 = vmatprep.subr.bf16.mxu1 %v5155_v55 }
 0x51d   :  { %2556 = vmatpush1.bf16.msra.mxu0 %v5150_v56  ;;  %2638 = vmatpush1.bf16.msra.mxu1 %v5153_v57 }
 0x51e   :  { %2557 = vmatprep.subr.bf16.mxu0 %v5158_v58  ;;  %2639 = vmatprep.subr.bf16.mxu1 %v5161_v59 }
 0x521   :  { %2558 = vmatpush1.bf16.msra.mxu0 %v5156_v60  ;;  %2640 = vmatpush1.bf16.msra.mxu1 %v5159_v61  ;;  %v5216_v60 = vld [vmem:[#allocation8] ss:$16 sps:$4 sm:$0xff]   ;;  %v5218_v61 = vld [vmem:[#allocation8 + $0x4] ss:$16 sps:$4 sm:$0xff]  }
 0x522   :  { %2559 = vmatprep.subr.bf16.mxu0 %v5164_v62  ;;  %2641 = vmatprep.subr.bf16.mxu1 %v5167_v63  ;;  %v5219_v62 = vld [vmem:[#allocation8 + $0x8] ss:$16 sps:$4 sm:$0xff]   ;;  %v5221_v63 = vld [vmem:[#allocation8 + $0xc] ss:$16 sps:$4 sm:$0xff]  }
 0x525   :  { %2560 = vmatpush1.bf16.msra.mxu0 %v5162_v0  ;;  %2642 = vmatpush1.bf16.msra.mxu1 %v5165_v1  ;;  %v5224_v0 = vld [vmem:[#allocation8 + $0x24] ss:$16 sps:$4 sm:$0xff]   ;;  %v5227_v1 = vld [vmem:[#allocation8 + $0x2c] ss:$16 sps:$4 sm:$0xff]  }
 0x526   :  { %2561 = vmatprep.subr.bf16.mxu0 %v5170_v2  ;;  %2643 = vmatprep.subr.bf16.mxu1 %v5173_v3  ;;  %v5222_v2 = vld [vmem:[#allocation8 + $0x20] ss:$16 sps:$4 sm:$0xff]   ;;  %v5225_v3 = vld [vmem:[#allocation8 + $0x28] ss:$16 sps:$4 sm:$0xff]  }
 0x529   :  { %2562 = vmatpush1.bf16.msra.mxu0 %v5168_v4  ;;  %2644 = vmatpush1.bf16.msra.mxu1 %v5171_v5  ;;  %v5230_v4 = vld [vmem:[#allocation8 + $0x44] ss:$16 sps:$4 sm:$0xff]   ;;  %v5233_v5 = vld [vmem:[#allocation8 + $0x4c] ss:$16 sps:$4 sm:$0xff]  }
 0x52a   :  { %2563 = vmatprep.subr.bf16.mxu0 %v5176_v7  ;;  %2645 = vmatprep.subr.bf16.mxu1 %v5179_v10  ;;  %v5228_v7 = vld [vmem:[#allocation8 + $0x40] ss:$16 sps:$4 sm:$0xff]   ;;  %v5231_v10 = vld [vmem:[#allocation8 + $0x48] ss:$16 sps:$4 sm:$0xff]  }
 0x52d   :  { %2564 = vmatpush1.bf16.msra.mxu0 %v5174_v17  ;;  %2646 = vmatpush1.bf16.msra.mxu1 %v5177_v18  ;;  %v5236_v17 = vld [vmem:[#allocation8 + $0x64] ss:$16 sps:$4 sm:$0xff]   ;;  %v5239_v18 = vld [vmem:[#allocation8 + $0x6c] ss:$16 sps:$4 sm:$0xff]  }
 0x52e   :  { %2565 = vmatprep.subr.bf16.mxu0 %v5182_v16  ;;  %2647 = vmatprep.subr.bf16.mxu1 %v5185_v20  ;;  %v5234_v16 = vld [vmem:[#allocation8 + $0x60] ss:$16 sps:$4 sm:$0xff]   ;;  %v5237_v20 = vld [vmem:[#allocation8 + $0x68] ss:$16 sps:$4 sm:$0xff]  }
 0x531   :  { %2566 = vmatpush1.bf16.msra.mxu0 %v5180_v22  ;;  %2648 = vmatpush1.bf16.msra.mxu1 %v5183_v23  ;;  %v5242_v22 = vld [vmem:[#allocation8 + $0x84] ss:$16 sps:$4 sm:$0xff]   ;;  %v5245_v23 = vld [vmem:[#allocation8 + $0x8c] ss:$16 sps:$4 sm:$0xff]  }
 0x532   :  { %2567 = vmatprep.subr.bf16.mxu0 %v5188_v19  ;;  %2649 = vmatprep.subr.bf16.mxu1 %v5191_v24  ;;  %v5240_v19 = vld [vmem:[#allocation8 + $0x80] ss:$16 sps:$4 sm:$0xff]   ;;  %v5243_v24 = vld [vmem:[#allocation8 + $0x88] ss:$16 sps:$4 sm:$0xff]  }
 0x535   :  { %2568 = vmatpush1.bf16.msra.mxu0 %v5186_v25  ;;  %2650 = vmatpush1.bf16.msra.mxu1 %v5189_v12  ;;  %v5248_v25 = vld [vmem:[#allocation8 + $0xa4] ss:$16 sps:$4 sm:$0xff]   ;;  %v5251_v12 = vld [vmem:[#allocation8 + $0xac] ss:$16 sps:$4 sm:$0xff]  }
 0x536   :  { %2569 = vmatprep.subr.bf16.mxu0 %v5194_v11  ;;  %2651 = vmatprep.subr.bf16.mxu1 %v5197_v15  ;;  %v5246_v11 = vld [vmem:[#allocation8 + $0xa0] ss:$16 sps:$4 sm:$0xff]   ;;  %v5249_v15 = vld [vmem:[#allocation8 + $0xa8] ss:$16 sps:$4 sm:$0xff]  }
 0x539   :  { %2570 = vmatpush1.bf16.msra.mxu0 %v5192_v14  ;;  %2652 = vmatpush1.bf16.msra.mxu1 %v5195_v26  ;;  %v5254_v14 = vld [vmem:[#allocation8 + $0xc4] ss:$16 sps:$4 sm:$0xff]   ;;  %v5257_v26 = vld [vmem:[#allocation8 + $0xcc] ss:$16 sps:$4 sm:$0xff]  }
 0x53a   :  { %2571 = vmatprep.subr.bf16.mxu0 %v5200_v27  ;;  %2653 = vmatprep.subr.bf16.mxu1 %v5203_v21  ;;  %v5252_v27 = vld [vmem:[#allocation8 + $0xc0] ss:$16 sps:$4 sm:$0xff]   ;;  %v5255_v21 = vld [vmem:[#allocation8 + $0xc8] ss:$16 sps:$4 sm:$0xff]  }
 0x53d   :  { %2572 = vmatpush1.bf16.msra.mxu0 %v5198_v33  ;;  %2654 = vmatpush1.bf16.msra.mxu1 %v5201_v32  ;;  %v5260_v33 = vld [vmem:[#allocation8 + $0xe4] ss:$16 sps:$4 sm:$0xff]   ;;  %v5263_v32 = vld [vmem:[#allocation8 + $0xec] ss:$16 sps:$4 sm:$0xff]  }
 0x53e   :  { %2573 = vmatprep.subr.bf16.mxu0 %v5206_v34  ;;  %2655 = vmatprep.subr.bf16.mxu1 %v5209_v36  ;;  %v5258_v34 = vld [vmem:[#allocation8 + $0xe0] ss:$16 sps:$4 sm:$0xff]   ;;  %v5261_v36 = vld [vmem:[#allocation8 + $0xe8] ss:$16 sps:$4 sm:$0xff]  }
 0x541   :  { %2574 = vmatpush1.bf16.msra.mxu0 %v5204_v37  ;;  %2656 = vmatpush1.bf16.msra.mxu1 %v5207_v38  ;;  %v5266_v37 = vld [vmem:[#allocation8 + $0x104] ss:$16 sps:$4 sm:$0xff]   ;;  %v5269_v38 = vld [vmem:[#allocation8 + $0x10c] ss:$16 sps:$4 sm:$0xff]  }
 0x542   :  { %2575 = vmatprep.subr.bf16.mxu0 %v5212_v39  ;;  %2657 = vmatprep.subr.bf16.mxu1 %v5215_v40  ;;  %v5264_v39 = vld [vmem:[#allocation8 + $0x100] ss:$16 sps:$4 sm:$0xff]   ;;  %v5267_v40 = vld [vmem:[#allocation8 + $0x108] ss:$16 sps:$4 sm:$0xff]  }
 0x545   :  { %2576 = vmatpush1.bf16.msra.mxu0 %v5210_v29  ;;  %2658 = vmatpush1.bf16.msra.mxu1 %v5213_v28  ;;  %v5272_v29 = vld [vmem:[#allocation8 + $0x124] ss:$16 sps:$4 sm:$0xff]   ;;  %v5275_v28 = vld [vmem:[#allocation8 + $0x12c] ss:$16 sps:$4 sm:$0xff]  }
 0x546   :  { %3547 = vmatprep.subr.bf16.mxu0 %v5218_v61  ;;  %3629 = vmatprep.subr.bf16.mxu1 %v5221_v63  ;;  %v5290_v61 = vld [vmem:[#allocation8 + $0x184] ss:$16 sps:$4 sm:$0xff]   ;;  %v5288_v63 = vld [vmem:[#allocation8 + $0x180] ss:$16 sps:$4 sm:$0xff]  }
 0x548   :  { %2578 = vmatmul.mubr.bf16.vlgmr.msra.gmra.mrb[8].mxu0 %v1707_v30  ;;  %2660 = vmatmul.mubr.bf16.vlgmr.msra.gmra.mrb[8].mxu1 %v1707_v30  ;;  %v5273_v30 = vld [vmem:[#allocation8 + $0x128] ss:$16 sps:$4 sm:$0xff]  }
 0x549   :  { %3548 = vmatpush1.bf16.msra.mxu0 %v5216_v60  ;;  %3630 = vmatpush1.bf16.msra.mxu1 %v5219_v62  ;;  %v5285_v60 = vld [vmem:[#allocation8 + $0x168] ss:$16 sps:$4 sm:$0xff]   ;;  %v5293_v62 = vld [vmem:[#allocation8 + $0x18c] ss:$16 sps:$4 sm:$0xff]  }
 0x54a   :  { %3549 = vmatprep.subr.bf16.mxu0 %v5224_v0  ;;  %3631 = vmatprep.subr.bf16.mxu1 %v5227_v1  ;;  %v5291_v0 = vld [vmem:[#allocation8 + $0x188] ss:$16 sps:$4 sm:$0xff]   ;;  %v5296_v1 = vld [vmem:[#allocation8 + $0x1a4] ss:$16 sps:$4 sm:$0xff]  }
 0x54d   :  { %3550 = vmatpush1.bf16.msra.mxu0 %v5222_v2  ;;  %3632 = vmatpush1.bf16.msra.mxu1 %v5225_v3  ;;  %v5299_v2 = vld [vmem:[#allocation8 + $0x1ac] ss:$16 sps:$4 sm:$0xff]   ;;  %v5294_v3 = vld [vmem:[#allocation8 + $0x1a0] ss:$16 sps:$4 sm:$0xff]  }
 0x54e   :  { %3551 = vmatprep.subr.bf16.mxu0 %v5230_v4  ;;  %3633 = vmatprep.subr.bf16.mxu1 %v5233_v5  ;;  %v5297_v4 = vld [vmem:[#allocation8 + $0x1a8] ss:$16 sps:$4 sm:$0xff]   ;;  %v5302_v5 = vld [vmem:[#allocation8 + $0x1c4] ss:$16 sps:$4 sm:$0xff]  }
 0x551   :  { %3552 = vmatpush1.bf16.msra.mxu0 %v5228_v7  ;;  %3634 = vmatpush1.bf16.msra.mxu1 %v5231_v10  ;;  %v5305_v7 = vld [vmem:[#allocation8 + $0x1cc] ss:$16 sps:$4 sm:$0xff]   ;;  %v5300_v10 = vld [vmem:[#allocation8 + $0x1c0] ss:$16 sps:$4 sm:$0xff]  }
 0x552   :  { %3553 = vmatprep.subr.bf16.mxu0 %v5236_v17  ;;  %3635 = vmatprep.subr.bf16.mxu1 %v5239_v18  ;;  %v5303_v17 = vld [vmem:[#allocation8 + $0x1c8] ss:$16 sps:$4 sm:$0xff]   ;;  %v5308_v18 = vld [vmem:[#allocation8 + $0x1e4] ss:$16 sps:$4 sm:$0xff]  }
 0x555   :  { %3554 = vmatpush1.bf16.msra.mxu0 %v5234_v16  ;;  %3636 = vmatpush1.bf16.msra.mxu1 %v5237_v20  ;;  %v5311_v16 = vld [vmem:[#allocation8 + $0x1ec] ss:$16 sps:$4 sm:$0xff]   ;;  %v5306_v20 = vld [vmem:[#allocation8 + $0x1e0] ss:$16 sps:$4 sm:$0xff]  }
 0x556   :  { %3555 = vmatprep.subr.bf16.mxu0 %v5242_v22  ;;  %3637 = vmatprep.subr.bf16.mxu1 %v5245_v23  ;;  %v5309_v22 = vld [vmem:[#allocation8 + $0x1e8] ss:$16 sps:$4 sm:$0xff]   ;;  %v5314_v23 = vld [vmem:[#allocation8 + $0x204] ss:$16 sps:$4 sm:$0xff]  }
 0x559   :  { %3556 = vmatpush1.bf16.msra.mxu0 %v5240_v19  ;;  %3638 = vmatpush1.bf16.msra.mxu1 %v5243_v24  ;;  %v5317_v19 = vld [vmem:[#allocation8 + $0x20c] ss:$16 sps:$4 sm:$0xff]  }
 0x55a   :  { %3557 = vmatprep.subr.bf16.mxu0 %v5248_v25  ;;  %3639 = vmatprep.subr.bf16.mxu1 %v5251_v12 }
 0x55d   :  { %3558 = vmatpush1.bf16.msra.mxu0 %v5246_v11  ;;  %3640 = vmatpush1.bf16.msra.mxu1 %v5249_v15  ;;  %v4355_v11 = vld [vmem:[%s6044_s6 + $0x7] ss:$8 sm:$0xf]  ;;  %v4356_v15 = vld [vmem:[%s6044_s6 + $0x20] ss:$8 sm:$0xf] }
 0x55e   :  { %3559 = vmatprep.subr.bf16.mxu0 %v5254_v14  ;;  %3641 = vmatprep.subr.bf16.mxu1 %v5257_v26  ;;  %v2698_v14 = vrot.slane %v4355_v11, %v5705_v9  ;;  %v2694_v26 = vrot.slane %v4355_v11, %v5698_v6 }
 0x561   :  { %3560 = vmatpush1.bf16.msra.mxu0 %v5252_v27  ;;  %3642 = vmatpush1.bf16.msra.mxu1 %v5255_v21  ;;  %v2706_v27 = vrot.slane %v4355_v11, %v5710_v13  ;;  %v2702_v21 = vrot.slane %v4355_v11, %v5703_v8  ;;  %v5365_v11 = vld [vmem:[#allocation8 + $0x30c] ss:$16 sps:$4 sm:$0xff]  }
 0x562   :  { %3561 = vmatprep.subr.bf16.mxu0 %v5260_v33  ;;  %3643 = vmatprep.subr.bf16.mxu1 %v5263_v32  ;;  %v2727_v32 = vrot.slane %v4356_v15, %v5705_v9 }
 0x565   :  { %3562 = vmatpush1.bf16.msra.mxu0 %v5258_v34  ;;  %3644 = vmatpush1.bf16.msra.mxu1 %v5261_v36  ;;  %v2723_v34 = vrot.slane %v4356_v15, %v5698_v6  ;;  %v2735_v36 = vrot.slane %v4356_v15, %v5710_v13 }
 0x566   :  { %3563 = vmatprep.subr.bf16.mxu0 %v5266_v37  ;;  %3645 = vmatprep.subr.bf16.mxu1 %v5269_v38  ;;  %v2731_v37 = vrot.slane %v4356_v15, %v5703_v8  ;;  %v5360_v15 = vld [vmem:[#allocation8 + $0x300] ss:$16 sps:$4 sm:$0xff]  }
 0x569   :  { %3564 = vmatpush1.bf16.msra.mxu0 %v5264_v39  ;;  %3646 = vmatpush1.bf16.msra.mxu1 %v5267_v40 }
 0x56a   :  { %3565 = vmatprep.subr.bf16.mxu0 %v5272_v29  ;;  %3647 = vmatprep.subr.bf16.mxu1 %v5275_v28 }
 0x56d   :  { %3566 = vmatpush1.bf16.msra.mxu0 %v5270_v31  ;;  %3648 = vmatpush1.bf16.msra.mxu1 %v5273_v30 }
 0x61b   :  { %v2579_v44 = vpop.f32.mrb[8].mxu0  ;;  %v2661_v46 = vpop.f32.mrb[8].mxu1 }
 0x61c   :  { %v5832_v47 = vadd.f32 %v2579_v44, %v1847_v42  ;;  %v2581_v35 = vpop.f32.mrb[9].mxu0  ;;  %v2663_v48 = vpop.f32.mrb[9].mxu1  ;;  %v5837_v55 = vadd.f32 %v2661_v46, %v1855_v45 }
 0x61d   :  { %v5834_v49 = vadd.f32 %v2581_v35, %v1851_v43  ;;  %v2583_v51 = vpop.f32.mrb[10].mxu0  ;;  %v2665_v52 = vpop.f32.mrb[10].mxu1  ;;  %v5841_v57 = vadd.f32 %v2663_v48, %v1859_v50 }
 0x61e   :  { %v2584_v53 = vpop.f32.mrb[11].mxu0  ;;  %v2666_v54 = vpop.f32.mrb[11].mxu1 }
 0x61f   :  { %v2668_v56 = vadd.f32 %v5834_v49, %v5832_v47  ;;  %v5278_v53 = vld [vmem:[#allocation8 + $0x144] ss:$16 sps:$4 sm:$0xff]   ;;  %v5281_v54 = vld [vmem:[#allocation8 + $0x14c] ss:$16 sps:$4 sm:$0xff]  }
 0x620   :  { %3567 = vmatprep.subr.bf16.mxu0 %v5278_v53  ;;  %3649 = vmatprep.subr.bf16.mxu1 %v5281_v54  ;;  %v5312_v53 = vld [vmem:[#allocation8 + $0x200] ss:$16 sps:$4 sm:$0xff]   ;;  %v5315_v54 = vld [vmem:[#allocation8 + $0x208] ss:$16 sps:$4 sm:$0xff]  }
 0x621   :  { %v2669_v58 = vadd.f32 %v5837_v55, %v2668_v56  ;;  %v5279_v56 = vld [vmem:[#allocation8 + $0x148] ss:$16 sps:$4 sm:$0xff]  }
 0x622   :  { %3650 = vmatpush1.bf16.msra.mxu1 %v5279_v56  ;;  %v5321_v56 = vld [vmem:[#allocation8 + $0x228] ss:$16 sps:$4 sm:$0xff]  }
 0x623   :  { %v2670_v59 = vadd.f32 %v5841_v57, %v2669_v58  ;;  %v5287_v58 = vld [vmem:[#allocation8 + $0x16c] ss:$16 sps:$4 sm:$0xff]  }
 0x624   :  { %3651 = vmatprep.subr.bf16.mxu1 %v5287_v58  ;;  %v5329_v58 = vld [vmem:[#allocation8 + $0x24c] ss:$16 sps:$4 sm:$0xff]  }
 0x625   :  { %2671 = vadd.xlane.f32.xlu0 %v2670_v59  ;;  %v5282_v59 = vld [vmem:[#allocation8 + $0x160] ss:$16 sps:$4 sm:$0xff]  }
 0x626   :  { %3652 = vmatpush1.bf16.msra.mxu1 %v5285_v60  ;;  %v5327_v60 = vld [vmem:[#allocation8 + $0x248] ss:$16 sps:$4 sm:$0xff]  }
 0x627   :  { %3653 = vmatprep.subr.bf16.mxu1 %v5293_v62  ;;  %v5335_v62 = vld [vmem:[#allocation8 + $0x26c] ss:$16 sps:$4 sm:$0xff]  }
 0x62a   :  { %3654 = vmatpush1.bf16.msra.mxu1 %v5291_v0  ;;  %v5333_v0 = vld [vmem:[#allocation8 + $0x268] ss:$16 sps:$4 sm:$0xff]  }
 0x62b   :  { %3655 = vmatprep.subr.bf16.mxu1 %v5299_v2  ;;  %v5341_v2 = vld [vmem:[#allocation8 + $0x28c] ss:$16 sps:$4 sm:$0xff]  }
 0x62e   :  { %3656 = vmatpush1.bf16.msra.mxu1 %v5297_v4  ;;  %v5339_v4 = vld [vmem:[#allocation8 + $0x288] ss:$16 sps:$4 sm:$0xff]  }
 0x62f   :  { %3657 = vmatprep.subr.bf16.mxu1 %v5305_v7  ;;  %v5347_v7 = vld [vmem:[#allocation8 + $0x2ac] ss:$16 sps:$4 sm:$0xff]  }
 0x632   :  { %3658 = vmatpush1.bf16.msra.mxu1 %v5303_v17  ;;  %v5345_v17 = vld [vmem:[#allocation8 + $0x2a8] ss:$16 sps:$4 sm:$0xff]  }
 0x633   :  { %3659 = vmatprep.subr.bf16.mxu1 %v5311_v16  ;;  %v5353_v16 = vld [vmem:[#allocation8 + $0x2cc] ss:$16 sps:$4 sm:$0xff]  }
 0x636   :  { %3660 = vmatpush1.bf16.msra.mxu1 %v5309_v22  ;;  %v5351_v22 = vld [vmem:[#allocation8 + $0x2c8] ss:$16 sps:$4 sm:$0xff]  }
 0x637   :  { %3670 = vmatprep.subr.bf16.mxu1 %v5317_v19  ;;  %v5359_v19 = vld [vmem:[#allocation8 + $0x2ec] ss:$16 sps:$4 sm:$0xff]  }
 0x6b2   :  { %v2672_v41 = vpop.xlane.xlu0 %2671 }
 0x6b3   :  { %v2673_v42 = vmul.f32 0.001953125, %v2672_v41 }
 0x6b5   :  { %v5846_v43 = vsub.f32 %v5832_v47, %v2673_v42  ;;  %v5849_v44 = vsub.f32 %v5834_v49, %v2673_v42  ;;  %v5852_v45 = vsub.f32 %v5837_v55, %v2673_v42  ;;  %v5855_v46 = vsub.f32 %v5841_v57, %v2673_v42  ;;  %v5276_v55 = vld [vmem:[#allocation8 + $0x140] ss:$16 sps:$4 sm:$0xff]   ;;  %v5284_v57 = vld [vmem:[#allocation8 + $0x164] ss:$16 sps:$4 sm:$0xff]  }
 0x6b6   :  { %3568 = vmatpush1.bf16.msra.mxu0 %v5276_v55 }
 0x6b7   :  { %v2678_v35 = vmul.f32 %v5846_v43, %v5846_v43  ;;  %v2679_v48 = vmul.f32 %v5849_v44, %v5849_v44  ;;  %v2680_v50 = vmul.f32 %v5852_v45, %v5852_v45  ;;  %v2681_v49 = vmul.f32 %v5855_v46, %v5855_v46  ;;  %3569 = vmatprep.subr.bf16.mxu0 %v5284_v57  ;;  %v5326_v57 = vld [vmem:[#allocation8 + $0x244] ss:$16 sps:$4 sm:$0xff]  }
 0x6b9   :  { %v2682_v47 = vadd.f32 %v2679_v48, %v2678_v35 }
 0x6ba   :  { %3570 = vmatpush1.bf16.msra.mxu0 %v5282_v59  ;;  %v5324_v59 = vld [vmem:[#allocation8 + $0x240] ss:$16 sps:$4 sm:$0xff]  }
 0x6bb   :  { %v2683_v51 = vadd.f32 %v2682_v47, %v2680_v50  ;;  %3571 = vmatprep.subr.bf16.mxu0 %v5290_v61  ;;  %v5332_v61 = vld [vmem:[#allocation8 + $0x264] ss:$16 sps:$4 sm:$0xff]  }
 0x6bd   :  { %v2684_v52 = vadd.f32 %v2683_v51, %v2681_v49 }
 0x6be   :  { %3572 = vmatpush1.bf16.msra.mxu0 %v5288_v63  ;;  %v5330_v63 = vld [vmem:[#allocation8 + $0x260] ss:$16 sps:$4 sm:$0xff]  }
 0x6bf   :  { %2685 = vadd.xlane.f32.xlu1 %v2684_v52  ;;  %3573 = vmatprep.subr.bf16.mxu0 %v5296_v1  ;;  %v5338_v1 = vld [vmem:[#allocation8 + $0x284] ss:$16 sps:$4 sm:$0xff]  }
 0x6c2   :  { %3574 = vmatpush1.bf16.msra.mxu0 %v5294_v3  ;;  %v5336_v3 = vld [vmem:[#allocation8 + $0x280] ss:$16 sps:$4 sm:$0xff]  }
 0x6c3   :  { %3575 = vmatprep.subr.bf16.mxu0 %v5302_v5  ;;  %v5344_v5 = vld [vmem:[#allocation8 + $0x2a4] ss:$16 sps:$4 sm:$0xff]  }
 0x6c6   :  { %3576 = vmatpush1.bf16.msra.mxu0 %v5300_v10  ;;  %v5342_v10 = vld [vmem:[#allocation8 + $0x2a0] ss:$16 sps:$4 sm:$0xff]  }
 0x6c7   :  { %3577 = vmatprep.subr.bf16.mxu0 %v5308_v18  ;;  %v5350_v18 = vld [vmem:[#allocation8 + $0x2c4] ss:$16 sps:$4 sm:$0xff]  }
 0x6ca   :  { %3578 = vmatpush1.bf16.msra.mxu0 %v5306_v20  ;;  %v5348_v20 = vld [vmem:[#allocation8 + $0x2c0] ss:$16 sps:$4 sm:$0xff]  }
 0x6cb   :  { %3588 = vmatprep.subr.bf16.mxu0 %v5314_v23  ;;  %v5356_v23 = vld [vmem:[#allocation8 + $0x2e4] ss:$16 sps:$4 sm:$0xff]  }
 0x74c   :  { %v2686_v24 = vpop.xlane.xlu1 %2685 }
 0x74d   :  { %v2687_v25 = vmul.f32 0.001953125, %v2686_v24  ;;  %v5354_v24 = vld [vmem:[#allocation8 + $0x2e0] ss:$16 sps:$4 sm:$0xff]  }
 0x74f   :  { %v2688_v12 = vadd.f32 1e-05, %v2687_v25  ;;  %v5357_v25 = vld [vmem:[#allocation8 + $0x2e8] ss:$16 sps:$4 sm:$0xff]  }
 0x751   :  { %5444 = vrsqrt.f32 %v2688_v12  ;;  %v5362_v12 = vld [vmem:[#allocation8 + $0x304] ss:$16 sps:$4 sm:$0xff]  }
 0x75b   :  { %v5445_v33 = vpop.eup %5444 }
 0x75c   :  { %v2712_v38 = vmul.f32 %v5445_v33, %v2698_v14  ;;  %v2711_v39 = vmul.f32 %v5445_v33, %v2694_v26  ;;  %v2714_v40 = vmul.f32 %v5445_v33, %v2706_v27  ;;  %v2713_v29 = vmul.f32 %v5445_v33, %v2702_v21  ;;  %v5363_v14 = vld [vmem:[#allocation8 + $0x308] ss:$16 sps:$4 sm:$0xff]   ;;  %v5368_v26 = vld [vmem:[#allocation8 + $0x324] ss:$16 sps:$4 sm:$0xff]   ;;  %v5371_v27 = vld [vmem:[#allocation8 + $0x32c] ss:$16 sps:$4 sm:$0xff]  }
 0x75d   :  { %v5366_v21 = vld [vmem:[#allocation8 + $0x320] ss:$16 sps:$4 sm:$0xff]   ;;  %v5369_v33 = vld [vmem:[#allocation8 + $0x328] ss:$16 sps:$4 sm:$0xff]  }
 0x75e   :  { %v2716_v28 = vmul.f32 %v2712_v38, %v5849_v44  ;;  %v2715_v31 = vmul.f32 %v2711_v39, %v5846_v43  ;;  %v2718_v30 = vmul.f32 %v2714_v40, %v5855_v46  ;;  %v2717_v41 = vmul.f32 %v2713_v29, %v5852_v45  ;;  %v5320_v44 = vld [vmem:[#allocation8 + $0x224] ss:$16 sps:$4 sm:$0xff]   ;;  %v5323_v43 = vld [vmem:[#allocation8 + $0x22c] ss:$16 sps:$4 sm:$0xff]   ;;  %v5318_v45 = vld [vmem:[#allocation8 + $0x220] ss:$16 sps:$4 sm:$0xff]  }
 0x75f   :  { %v5380_v38 = vld [vmem:[#allocation8 + $0x364] ss:$16 sps:$4 sm:$0xff]   ;;  %v5383_v39 = vld [vmem:[#allocation8 + $0x36c] ss:$16 sps:$4 sm:$0xff]   ;;  %v5378_v40 = vld [vmem:[#allocation8 + $0x360] ss:$16 sps:$4 sm:$0xff]  }
 0x760   :  { %v2741_v42 = vadd.f32 %v2727_v32, %v2716_v28  ;;  %v2740_v35 = vadd.f32 %v2723_v34, %v2715_v31  ;;  %v2743_v48 = vadd.f32 %v2735_v36, %v2718_v30  ;;  %v5883_v50 = vadd.f32 %v2731_v37, %v2717_v41  ;;  %v5374_v32 = vld [vmem:[#allocation8 + $0x344] ss:$16 sps:$4 sm:$0xff]   ;;  %v5377_v34 = vld [vmem:[#allocation8 + $0x34c] ss:$16 sps:$4 sm:$0xff]   ;;  %v5372_v36 = vld [vmem:[#allocation8 + $0x340] ss:$16 sps:$4 sm:$0xff]  }
 0x761   :  { %v5375_v37 = vld [vmem:[#allocation8 + $0x348] ss:$16 sps:$4 sm:$0xff]   ;;  %v5386_v28 = vld [vmem:[#allocation8 + $0x384] ss:$16 sps:$4 sm:$0xff]   ;;  %v5389_v31 = vld [vmem:[#allocation8 + $0x38c] ss:$16 sps:$4 sm:$0xff]  }
 0x762   :  { %v2745_v47 = vmax.f32 %v2741_v42, 0.0  ;;  %v2744_v49 = vmax.f32 %v2740_v35, 0.0  ;;  %v2747_v51 = vmax.f32 %v2743_v48, 0.0  ;;  %v5381_v29 = vld [vmem:[#allocation8 + $0x368] ss:$16 sps:$4 sm:$0xff]  }
 0x763   :  { %v5384_v30 = vld [vmem:[#allocation8 + $0x380] ss:$16 sps:$4 sm:$0xff]   ;;  %v5387_v41 = vld [vmem:[#allocation8 + $0x388] ss:$16 sps:$4 sm:$0xff]   ;;  %v5392_v42 = vld [vmem:[#allocation8 + $0x3a4] ss:$16 sps:$4 sm:$0xff]  }
 0x764   :  { %v2749_v52 = vpack.c.bf16 %v2745_v47, %v2745_v47  ;;  %v2748_v55 = vpack.c.bf16 %v2744_v49, %v2744_v49  ;;  %v2751_v46 = vpack.c.bf16 %v2747_v51, %v2747_v51  ;;  %v5395_v35 = vld [vmem:[#allocation8 + $0x3ac] ss:$16 sps:$4 sm:$0xff]   ;;  %v5390_v48 = vld [vmem:[#allocation8 + $0x3a0] ss:$16 sps:$4 sm:$0xff]   ;;  %v5393_v47 = vld [vmem:[#allocation8 + $0x3a8] ss:$16 sps:$4 sm:$0xff]  }
 0x765   :  { %v5398_v49 = vld [vmem:[#allocation8 + $0x3c4] ss:$16 sps:$4 sm:$0xff]   ;;  %v5401_v51 = vld [vmem:[#allocation8 + $0x3cc] ss:$16 sps:$4 sm:$0xff]  }
 0x766   :  { %3579 = vmatprep.mubr.bf16.mxu0 %v2749_v52  ;;  %3661 = vmatprep.mubr.bf16.mxu1 %v2749_v52  ;;  %v5396_v52 = vld [vmem:[#allocation8 + $0x3c0] ss:$16 sps:$4 sm:$0xff]  }
 0x767   :  { %3580 = vmatmul.mubr.bf16.vlgmr.msra.gmra.mrb[12].mxu0 %v2748_v55  ;;  %3662 = vmatmul.mubr.bf16.vlgmr.msra.gmra.mrb[12].mxu1 %v2748_v55  ;;  %v5407_v55 = vld [vmem:[#allocation8 + $0x3ec] ss:$16 sps:$4 sm:$0xff]  }
 0x768   :  { %3589 = vmatpush1.bf16.msra.mxu0 %v5312_v53  ;;  %3671 = vmatpush1.bf16.msra.mxu1 %v5315_v54  ;;  %v5399_v53 = vld [vmem:[#allocation8 + $0x3c8] ss:$16 sps:$4 sm:$0xff]   ;;  %v5404_v54 = vld [vmem:[#allocation8 + $0x3e4] ss:$16 sps:$4 sm:$0xff]  }
 0x769   :  { %3620 = vmatprep.mubr.bf16.mxu0 %v2751_v46  ;;  %3702 = vmatprep.mubr.bf16.mxu1 %v2751_v46  ;;  %v2746_v46 = vmax.f32 %v5883_v50, 0.0 }
 0x76a   :  { %3590 = vmatprep.subr.bf16.mxu0 %v5320_v44  ;;  %3672 = vmatprep.subr.bf16.mxu1 %v5323_v43  ;;  %v5402_v44 = vld [vmem:[#allocation8 + $0x3e0] ss:$16 sps:$4 sm:$0xff]   ;;  %v5405_v43 = vld [vmem:[#allocation8 + $0x3e8] ss:$16 sps:$4 sm:$0xff]  }
 0x76c   :  { %3591 = vmatpush1.bf16.msra.mxu0 %v5318_v45  ;;  %3673 = vmatpush1.bf16.msra.mxu1 %v5321_v56  ;;  %v2750_v45 = vpack.c.bf16 %v2746_v46, %v2746_v46  ;;  %v4485_v56 = vld [vmem:[%s6044_s6 + $0x21] ss:$8 sm:$0xf] }
 0x76d   :  { %3592 = vmatprep.subr.bf16.mxu0 %v5326_v57  ;;  %3674 = vmatprep.subr.bf16.mxu1 %v5329_v58  ;;  %v2890_v57 = vrot.slane %v4485_v56, %v5698_v6  ;;  %v2894_v58 = vrot.slane %v4485_v56, %v5705_v9  ;;  %v5433_v46 = vld [vmem:[%s6043_s5 + $0xf0] sm:$0xff]  }
 0x770   :  { %3593 = vmatpush1.bf16.msra.mxu0 %v5324_v59  ;;  %3675 = vmatpush1.bf16.msra.mxu1 %v5327_v60  ;;  %v2898_v60 = vrot.slane %v4485_v56, %v5703_v8 }
 0x771   :  { %3594 = vmatprep.subr.bf16.mxu0 %v5332_v61  ;;  %3676 = vmatprep.subr.bf16.mxu1 %v5335_v62 }
 0x774   :  { %3595 = vmatpush1.bf16.msra.mxu0 %v5330_v63  ;;  %3677 = vmatpush1.bf16.msra.mxu1 %v5333_v0 }
 0x775   :  { %3596 = vmatprep.subr.bf16.mxu0 %v5338_v1  ;;  %3678 = vmatprep.subr.bf16.mxu1 %v5341_v2  ;;  %v2902_v1 = vrot.slane %v4485_v56, %v5710_v13  ;;  %v5435_v56 = vld [vmem:[%s6043_s5 + $0xb0] sm:$0xff]  }
 0x778   :  { %3597 = vmatpush1.bf16.msra.mxu0 %v5336_v3  ;;  %3679 = vmatpush1.bf16.msra.mxu1 %v5339_v4 }
 0x779   :  { %3598 = vmatprep.subr.bf16.mxu0 %v5344_v5  ;;  %3680 = vmatprep.subr.bf16.mxu1 %v5347_v7 }
 0x77c   :  { %3599 = vmatpush1.bf16.msra.mxu0 %v5342_v10  ;;  %3681 = vmatpush1.bf16.msra.mxu1 %v5345_v17 }
 0x77d   :  { %3600 = vmatprep.subr.bf16.mxu0 %v5350_v18  ;;  %3682 = vmatprep.subr.bf16.mxu1 %v5353_v16 }
 0x780   :  { %3601 = vmatpush1.bf16.msra.mxu0 %v5348_v20  ;;  %3683 = vmatpush1.bf16.msra.mxu1 %v5351_v22  ;;  %v5408_v20 = vld [vmem:[%s6043_s5 + $0x40] sm:$0xff]  }
 0x781   :  { %3602 = vmatprep.subr.bf16.mxu0 %v5356_v23  ;;  %3684 = vmatprep.subr.bf16.mxu1 %v5359_v19  ;;  %v5409_v22 = vld [vmem:[%s6043_s5 + $0xc0] sm:$0xff]  }
 0x782   :  { %v5410_v23 = vld [vmem:[%s6043_s5] sm:$0xff]  }
 0x783   :  { %v5411_v19 = vld [vmem:[%s6043_s5 + $0x80] sm:$0xff]  }
 0x784   :  { %3603 = vmatpush1.bf16.msra.mxu0 %v5354_v24  ;;  %3685 = vmatpush1.bf16.msra.mxu1 %v5357_v25  ;;  %v5412_v24 = vld [vmem:[%s6043_s5 + $0x48] sm:$0xff]  }
 0x785   :  { %3604 = vmatprep.subr.bf16.mxu0 %v5362_v12  ;;  %3686 = vmatprep.subr.bf16.mxu1 %v5365_v11  ;;  %v5413_v25 = vld [vmem:[%s6043_s5 + $0xc8] sm:$0xff]  }
 0x786   :  { %v5414_v12 = vld [vmem:[%s6043_s5 + $0x8] sm:$0xff]  }
 0x787   :  { %v5415_v11 = vld [vmem:[%s6043_s5 + $0x88] sm:$0xff]  }
 0x788   :  { %3605 = vmatpush1.bf16.msra.mxu0 %v5360_v15  ;;  %3687 = vmatpush1.bf16.msra.mxu1 %v5363_v14 }
 0x789   :  { %3606 = vmatprep.subr.bf16.mxu0 %v5368_v26  ;;  %3688 = vmatprep.subr.bf16.mxu1 %v5371_v27 }
 0x78c   :  { %3607 = vmatpush1.bf16.msra.mxu0 %v5366_v21  ;;  %3689 = vmatpush1.bf16.msra.mxu1 %v5369_v33 }
 0x78d   :  { %3608 = vmatprep.subr.bf16.mxu0 %v5374_v32  ;;  %3690 = vmatprep.subr.bf16.mxu1 %v5377_v34 }
 0x790   :  { %3609 = vmatpush1.bf16.msra.mxu0 %v5372_v36  ;;  %3691 = vmatpush1.bf16.msra.mxu1 %v5375_v37 }
 0x791   :  { %3610 = vmatprep.subr.bf16.mxu0 %v5380_v38  ;;  %3692 = vmatprep.subr.bf16.mxu1 %v5383_v39 }
 0x794   :  { %3611 = vmatpush1.bf16.msra.mxu0 %v5378_v40  ;;  %3693 = vmatpush1.bf16.msra.mxu1 %v5381_v29  ;;  %v5416_v29 = vld [vmem:[%s6043_s5 + $0x50] sm:$0xff]  }
 0x795   :  { %3612 = vmatprep.subr.bf16.mxu0 %v5386_v28  ;;  %3694 = vmatprep.subr.bf16.mxu1 %v5389_v31  ;;  %v5417_v28 = vld [vmem:[%s6043_s5 + $0xd0] sm:$0xff]  }
 0x796   :  { %v5418_v31 = vld [vmem:[%s6043_s5 + $0x10] sm:$0xff]  }
 0x798   :  { %3613 = vmatpush1.bf16.msra.mxu0 %v5384_v30  ;;  %3695 = vmatpush1.bf16.msra.mxu1 %v5387_v41  ;;  %v5419_v30 = vld [vmem:[%s6043_s5 + $0x90] sm:$0xff]   ;;  %v5420_v41 = vld [vmem:[%s6043_s5 + $0x58] sm:$0xff]  }
 0x799   :  { %3614 = vmatprep.subr.bf16.mxu0 %v5392_v42  ;;  %3696 = vmatprep.subr.bf16.mxu1 %v5395_v35  ;;  %v5421_v42 = vld [vmem:[%s6043_s5 + $0xd8] sm:$0xff]  }
 0x79a   :  { %v5422_v35 = vld [vmem:[%s6043_s5 + $0x18] sm:$0xff]  }
 0x79c   :  { %3615 = vmatpush1.bf16.msra.mxu0 %v5390_v48  ;;  %3697 = vmatpush1.bf16.msra.mxu1 %v5393_v47  ;;  %v5423_v48 = vld [vmem:[%s6043_s5 + $0x98] sm:$0xff]   ;;  %v5424_v47 = vld [vmem:[%s6043_s5 + $0x60] sm:$0xff]  }
 0x79d   :  { %3616 = vmatprep.subr.bf16.mxu0 %v5398_v49  ;;  %3698 = vmatprep.subr.bf16.mxu1 %v5401_v51  ;;  %v5425_v49 = vld [vmem:[%s6043_s5 + $0xe0] sm:$0xff]  }
 0x79e   :  { %v5426_v51 = vld [vmem:[%s6043_s5 + $0x20] sm:$0xff]  }
 0x7a0   :  { %3617 = vmatpush1.bf16.msra.mxu0 %v5396_v52  ;;  %3699 = vmatpush1.bf16.msra.mxu1 %v5399_v53  ;;  %v5427_v52 = vld [vmem:[%s6043_s5 + $0xa0] sm:$0xff]   ;;  %v5428_v53 = vld [vmem:[%s6043_s5 + $0x68] sm:$0xff]  }
 0x7a1   :  { %3618 = vmatprep.subr.bf16.mxu0 %v5404_v54  ;;  %3700 = vmatprep.subr.bf16.mxu1 %v5407_v55  ;;  %v5429_v54 = vld [vmem:[%s6043_s5 + $0xe8] sm:$0xff]  }
 0x7a2   :  { %v5430_v55 = vld [vmem:[%s6043_s5 + $0x28] sm:$0xff]  }
 0x7a4   :  { %3619 = vmatpush1.bf16.msra.mxu0 %v5402_v44  ;;  %3701 = vmatpush1.bf16.msra.mxu1 %v5405_v43  ;;  %v5431_v44 = vld [vmem:[%s6043_s5 + $0xa8] sm:$0xff]   ;;  %v5432_v43 = vld [vmem:[%s6043_s5 + $0x70] sm:$0xff]  }
 0x7a5   :  { %4649 = vmatprep.subr.bf16.mxu0 %v5408_v20  ;;  %4671 = vmatprep.subr.bf16.mxu1 %v5409_v22 }
 0x7a7   :  { %3621 = vmatmul.mubr.bf16.vlgmr.msra.gmra.mrb[12].mxu0 %v2750_v45  ;;  %3703 = vmatmul.mubr.bf16.vlgmr.msra.gmra.mrb[12].mxu1 %v2750_v45  ;;  %v5434_v45 = vld [vmem:[%s6043_s5 + $0x30] sm:$0xff]  }
 0x7a8   :  { %4650 = vmatpush3.bf16.msra.mxu0 %v5410_v23  ;;  %4672 = vmatpush3.bf16.msra.mxu1 %v5411_v19 }
 0x7a9   :  { %4651 = vmatprep.subr.bf16.mxu0 %v5412_v24  ;;  %4673 = vmatprep.subr.bf16.mxu1 %v5413_v25 }
 0x7ac   :  { %4652 = vmatpush3.bf16.msra.mxu0 %v5414_v12  ;;  %4674 = vmatpush3.bf16.msra.mxu1 %v5415_v11 }
 0x7ad   :  { %4653 = vmatprep.subr.bf16.mxu0 %v5416_v29  ;;  %4675 = vmatprep.subr.bf16.mxu1 %v5417_v28 }
 0x7b0   :  { %4654 = vmatpush3.bf16.msra.mxu0 %v5418_v31  ;;  %4676 = vmatpush3.bf16.msra.mxu1 %v5419_v30 }
 0x7b1   :  { %4655 = vmatprep.subr.bf16.mxu0 %v5420_v41  ;;  %4677 = vmatprep.subr.bf16.mxu1 %v5421_v42 }
 0x7b4   :  { %4656 = vmatpush3.bf16.msra.mxu0 %v5422_v35  ;;  %4678 = vmatpush3.bf16.msra.mxu1 %v5423_v48 }
 0x7b5   :  { %4657 = vmatprep.subr.bf16.mxu0 %v5424_v47  ;;  %4679 = vmatprep.subr.bf16.mxu1 %v5425_v49 }
 0x7b8   :  { %4658 = vmatpush3.bf16.msra.mxu0 %v5426_v51  ;;  %4680 = vmatpush3.bf16.msra.mxu1 %v5427_v52 }
 0x7b9   :  { %4659 = vmatprep.subr.bf16.mxu0 %v5428_v53  ;;  %4681 = vmatprep.subr.bf16.mxu1 %v5429_v54 }
 0x7bc   :  { %4660 = vmatpush3.bf16.msra.mxu0 %v5430_v55  ;;  %4682 = vmatpush3.bf16.msra.mxu1 %v5431_v44 }
 0x7bd   :  { %4661 = vmatprep.subr.bf16.mxu0 %v5432_v43  ;;  %4683 = vmatprep.subr.bf16.mxu1 %v5433_v46 }
 0x7c0   :  { %4662 = vmatpush3.bf16.msra.mxu0 %v5434_v45  ;;  %4684 = vmatpush3.bf16.msra.mxu1 %v5435_v56 }
 0x87a   :  { %v3622_v59 = vpop.f32.mrb[12].mxu0  ;;  %v3704_v61 = vpop.f32.mrb[12].mxu1 }
 0x87b   :  { %v4701_v62 = vadd.f32 %v3622_v59, %v2890_v57  ;;  %v3624_v63 = vpop.f32.mrb[13].mxu0  ;;  %v3706_v50 = vpop.f32.mrb[13].mxu1  ;;  %v4703_v7 = vadd.f32 %v3704_v61, %v2898_v60  ;;  %v5436_v57 = vld [vmem:[%s6043_s5 + $0x78] sm:$0xff]  }
 0x87c   :  { %v4702_v0 = vadd.f32 %v3624_v63, %v2894_v58  ;;  %v3626_v2 = vpop.f32.mrb[14].mxu0  ;;  %v3708_v3 = vpop.f32.mrb[14].mxu1  ;;  %v4704_v17 = vadd.f32 %v3706_v50, %v2902_v1  ;;  %v5437_v58 = vld [vmem:[%s6043_s5 + $0xf8] sm:$0xff]   ;;  %4663 = vmatprep.subr.bf16.mxu0 %v5436_v57 }
 0x87d   :  { %v3627_v4 = vpop.f32.mrb[15].mxu0  ;;  %v3709_v5 = vpop.f32.mrb[15].mxu1  ;;  %v5438_v59 = vld [vmem:[%s6043_s5 + $0x38] sm:$0xff]   ;;  %4685 = vmatprep.subr.bf16.mxu1 %v5437_v58 }
 0x87e   :  { %v3711_v10 = vadd.f32 %v4702_v0, %v4701_v62  ;;  %v5439_v60 = vld [vmem:[%s6043_s5 + $0xb8] sm:$0xff]   ;;  %4664 = vmatpush3.bf16.msra.mxu0 %v5438_v59 }
 0x87f   :  { %4686 = vmatpush3.bf16.msra.mxu1 %v5439_v60  ;;  %v4486_v50 = vld [vmem:[%s6044_s6 + $0x22] ss:$8 sm:$0xf] }
 0x880   :  { %v3712_v18 = vadd.f32 %v4703_v7, %v3711_v10  ;;  %v3741_v1 = vrot.slane %v4486_v50, %v5705_v9  ;;  %v3749_v2 = vrot.slane %v4486_v50, %v5710_v13  ;;  %v3737_v3 = vrot.slane %v4486_v50, %v5698_v6 }
 0x881   :  { %v3745_v4 = vrot.slane %v4486_v50, %v5703_v8 }
 0x882   :  { %v3713_v16 = vadd.f32 %v4704_v17, %v3712_v18 }
 0x884   :  { %3714 = vadd.xlane.f32.xlu0 %v3713_v16 }
 0x911   :  { %v3715_v15 = vpop.xlane.xlu0 %3714 }
 0x912   :  { %v3716_v14 = vmul.f32 0.001953125, %v3715_v15 }
 0x914   :  { %v5917_v26 = vsub.f32 %v4701_v62, %v3716_v14  ;;  %v5919_v27 = vsub.f32 %v4702_v0, %v3716_v14  ;;  %v5921_v21 = vsub.f32 %v4703_v7, %v3716_v14  ;;  %v5923_v33 = vsub.f32 %v4704_v17, %v3716_v14  ;;  %v4487_v0 = vld [vmem:[%s6044_s6 + $0x23] ss:$8 sm:$0xf] }
 0x915   :  { %v3770_v7 = vrot.slane %v4487_v0, %v5705_v9  ;;  %v3778_v10 = vrot.slane %v4487_v0, %v5710_v13  ;;  %v3766_v17 = vrot.slane %v4487_v0, %v5698_v6  ;;  %v3774_v18 = vrot.slane %v4487_v0, %v5703_v8 }
 0x916   :  { %v3721_v32 = vmul.f32 %v5917_v26, %v5917_v26  ;;  %v3722_v34 = vmul.f32 %v5919_v27, %v5919_v27  ;;  %v3723_v36 = vmul.f32 %v5921_v21, %v5921_v21  ;;  %v3724_v38 = vmul.f32 %v5923_v33, %v5923_v33 }
 0x918   :  { %v3725_v37 = vadd.f32 %v3722_v34, %v3721_v32 }
 0x91a   :  { %v3726_v39 = vadd.f32 %v3725_v37, %v3723_v36 }
 0x91c   :  { %v3727_v40 = vadd.f32 %v3726_v39, %v3724_v38 }
 0x91e   :  { %3728 = vadd.xlane.f32.xlu1 %v3727_v40 }
 0x9ab   :  { %v3729_v61 = vpop.xlane.xlu1 %3728 }
 0x9ac   :  { %v3730_v62 = vmul.f32 0.001953125, %v3729_v61 }
 0x9ae   :  { %v3731_v63 = vadd.f32 1e-05, %v3730_v62 }
 0x9b0   :  { %5446 = vrsqrt.f32 %v3731_v63 }
 0x9ba   :  { %v5447_v5 = vpop.eup %5446 }
 0x9bb   :  { %v3755_v16 = vmul.f32 %v5447_v5, %v3741_v1  ;;  %v3757_v20 = vmul.f32 %v5447_v5, %v3749_v2  ;;  %v3754_v22 = vmul.f32 %v5447_v5, %v3737_v3  ;;  %v3756_v23 = vmul.f32 %v5447_v5, %v3745_v4 }
 0x9bd   :  { %v3759_v19 = vmul.f32 %v3755_v16, %v5919_v27  ;;  %v3761_v24 = vmul.f32 %v3757_v20, %v5923_v33  ;;  %v3758_v25 = vmul.f32 %v3754_v22, %v5917_v26  ;;  %v3760_v12 = vmul.f32 %v3756_v23, %v5921_v21  ;;  %v4616_v21 = vld [vmem:[%s6045_s7] ss:$0 sm:$0xff] }
 0x9bf   :  { %v3784_v11 = vadd.f32 %v3770_v7, %v3759_v19  ;;  %v3786_v9 = vadd.f32 %v3778_v10, %v3761_v24  ;;  %v3783_v15 = vadd.f32 %v3766_v17, %v3758_v25  ;;  %v3785_v13 = vadd.f32 %v3774_v18, %v3760_v12 }
 0x9c1   :  { %v3788_v14 = vmax.f32 %v3784_v11, 0.0  ;;  %v3790_v6 = vmax.f32 %v3786_v9, 0.0  ;;  %v3787_v32 = vmax.f32 %v3783_v15, 0.0  ;;  %v3789_v8 = vmax.f32 %v3785_v13, 0.0 }
 0x9c3   :  { %v3792_v34 = vpack.c.bf16 %v3788_v14, %v3788_v14  ;;  %v3794_v36 = vpack.c.bf16 %v3790_v6, %v3790_v6  ;;  %v3791_v37 = vpack.c.bf16 %v3787_v32, %v3787_v32  ;;  %v3793_v38 = vpack.c.bf16 %v3789_v8, %v3789_v8 }
 0x9c5   :  { %4090 = vmatprep.mubr.bf16.mxu0 %v3792_v34  ;;  %4130 = vmatprep.mubr.bf16.mxu1 %v3794_v36 }
 0x9c6   :  { %4091 = vmatmul.mubr.bf16.vlgmr.msra.gmra.mrb[16].mxu0 %v3791_v37  ;;  %4131 = vmatmul.mubr.bf16.vlgmr.msra.gmra.mrb[16].mxu1 %v3793_v38 }
 0xa99   :  { %v4665_v27 = vpop.f32.mrb[16].mxu0  ;;  %v4687_v26 = vpop.f32.mrb[16].mxu1 }
 0xa9a   :  { %v4666_v33 = vpop.f32.mrb[17].mxu0  ;;  %v4688_v39 = vpop.f32.mrb[17].mxu1 }
 0xa9b   :  { %v4667_v40 = vadd.f32 %v4666_v33, %v4665_v27  ;;  %v4689_v29 = vadd.f32 %v4688_v39, %v4687_v26  ;;  %v4668_v28 = vpop.f32.mrb[18].mxu0  ;;  %v4690_v31 = vpop.f32.mrb[18].mxu1 }
 0xa9c   :  { %v4669_v30 = vpop.f32.mrb[19].mxu0  ;;  %v4691_v41 = vpop.f32.mrb[19].mxu1 }
 0xa9d   :  { %v4093_v42 = vadd.f32 %v4667_v40, %v4616_v21 }
 0xa9f   :  { %v4133_v35 = vadd.f32 %v4689_v29, %v4093_v42 }
 0xaa1   :  { %4139 = vst.msk [vmem:[#allocation10] sm:$0xff] %vm4138_vm0, %v4133_v35 }
 0xaa2   :  { %5547 = shalt.err (!%p5544_p8)
}
 0xaa3   :  { %s5548_s30 = scalar_lea.hbm %s6046_s8, 128 }
 0xaa4   :  { %p5549_p9 = scmp.ne.s32.totalorder %s6046_s8, %s5548_s30  ;;  %p5552_p10 = scmp.lt.u32.totalorder %s5548_s30, %s6046_s8 }
 0xaa6   :  { %p5554_p11 = pnand %p5552_p10, %p5549_p9 }
 0xaa8   :  { %5557 = shalt.err (!%p5554_p11)
}
 0xaa9   :  { %4149 = dma.vmem_to_hbm [thread:$0]  %s4147_s20, 128, %s6046_s8, [#allocation4]  }
 0xaaa   :  { %5564 = dma.done.wait [#allocation4], 128  }
 0xaab   :  { %5565 = vsyncadd [#allocation4], 4294967168 }
 0xaac   :  { %4153 = vsyncpa [#allocation3], 1 }
 0xaad   :  { %4154 = vsyncpa [#allocation6], 1 }
 0xaae   :  { %4155 = vsyncpa [#allocation9], 1 }
 0xaaf   :  { %4156 = vsyncpa [#allocation4], 1 }

</bundles_post_ra>
